<compile_context>
chip_gen: v7x
topology: tpu7x:2x2x1
jax: 0.10.0
libtpu: 0.0.40
codegen_flags: <defaults>
</compile_context>

<pallas_src>
import math

import jax
import jax.numpy as jnp
from jax import lax
from jax.experimental import pallas as pl
from jax.experimental.pallas import tpu as pltpu  # noqa: F401  (imported per convention)


# ----------------------------- configuration --------------------------------
B = 1                 # batch (module hard-codes self.B = 1)
N_CAMS = 6            # module hard-codes self.N = 6
C = 128               # embed dims
H = W = 8             # feature map spatial size
L = N_CAMS * H * W    # flattened key/value length = 384
NUM_QUERY = 120       # newly generated queries
NUM_PROPAGATED = 8    # propagated temporal queries
NQ = NUM_QUERY + NUM_PROPAGATED   # 128 total queries
MEMORY_LEN = 16
NUM_CLASSES = 10
CODE_SIZE = 10        # (cx, cy, w, l, cz, h, sin, cos, vx, vy)
FFN_DIM = 256
MAX_NUM = 32          # top-k boxes returned by get_bboxes
OUT_PAD = 128         # lane-dense output width
PC_RANGE = (-51.2, -51.2, -5.0, 51.2, 51.2, 3.0)

assert FFN_DIM == 2 * C
assert OUT_PAD == C


def _layernorm(x, g, b):
    # one-pass variance: var = E[x^2] - mu^2 (two independent lane reductions)
    mu = jnp.mean(x, axis=-1, keepdims=True)
    ms = jnp.mean(x * x, axis=-1, keepdims=True)
    var = ms - mu * mu
    return (x - mu) * lax.rsqrt(var + 1e-5) * g + b


# -------------------- fused kernel: decoder + heads + decode -----------------
def fused_kernel(q_ref, feat_ref, pos_ref, refpad_ref,
                 wqk_ref, wvo_ref,
                 ffn_w1_ref, ffn_w2_ref,
                 head_w1_ref, head_w2_ref,
                 p128_ref, p256_ref,
                 out_ref):
    # ---- inputs -------------------------------------------------------------
    q_emb = q_ref[...]                                    # [NQ, C] f32
    kv_bf = feat_ref[...] + pos_ref[...]                  # [L,  C] bf16 (pos fused)

    # packed small params
    ln1_g = p128_ref[0:1, :]
    ln1_b = p128_ref[1:2, :]
    ln2_g = p128_ref[2:3, :]
    ln2_b = p128_ref[3:4, :]
    ffn_b2 = p128_ref[4:5, :]
    head_b2 = p128_ref[5:6, :]
    scale_row = p128_ref[6:7, :]
    offset_row = p128_ref[7:8, :]
    ffn_b1 = p256_ref[0:1, :]
    head_b1 = p256_ref[1:2, :]

    # ---- cross attention (W_qk / W_vo folded, deferred softmax normalize) ---
    q_scaled = jnp.dot(q_emb.astype(jnp.bfloat16), wqk_ref[...],
                       preferred_element_type=jnp.float32)            # [NQ, C]
    # Q @ K^T collapsed to (q_emb @ W_qk) @ kv^T  (scale folded into W_qk).
    logits = lax.dot_general(q_scaled.astype(jnp.bfloat16), kv_bf,
                             (((1,), (1,)), ((), ())),
                             preferred_element_type=jnp.float32)       # [NQ, L]

    m = jnp.max(logits, axis=-1, keepdims=True)
    p = jnp.exp(logits - m)                                            # unnormalized
    denom = jnp.sum(p, axis=-1, keepdims=True)
    ctx = jnp.dot(p.astype(jnp.bfloat16), kv_bf,
                  preferred_element_type=jnp.float32)                  # [NQ, C]
    attn = jnp.dot(ctx.astype(jnp.bfloat16), wvo_ref[...],
                   preferred_element_type=jnp.float32)                 # [NQ, C]
    # NOTE: approx reciprocal (EUP) deviates ~1e-3 rel. from an exact divide.
    attn = attn * pl.reciprocal(denom, approx=True)                    # late normalize

    x = _layernorm(q_emb + attn, ln1_g, ln1_b)

    # ---- FFN ----------------------------------------------------------------
    h1 = jnp.maximum(jnp.dot(x.astype(jnp.bfloat16), ffn_w1_ref[...],
                             preferred_element_type=jnp.float32) + ffn_b1, 0.0)
    x = x + jnp.dot(h1.astype(jnp.bfloat16), ffn_w2_ref[...],
                    preferred_element_type=jnp.float32) + ffn_b2
    x = _layernorm(x, ln2_g, ln2_b)

    # ---- fused cls/reg heads (single 256-wide then block-diag 128-wide) -----
    h2 = jnp.maximum(jnp.dot(x.astype(jnp.bfloat16), head_w1_ref[...],
                             preferred_element_type=jnp.float32) + head_b1, 0.0)
    head = jnp.dot(h2.astype(jnp.bfloat16), head_w2_ref[...],
                   preferred_element_type=jnp.float32) + head_b2       # [NQ, 128]
    # column layout of `head`: 0:10 = cls logits, 10:20 = reg (dx,dy,dw,dl,dz,dh,
    # sin,cos,vx,vy), 20: = 0.

    # ---- fused box decode epilogue (mask-based, no lane concat) -------------
    # refpad has inverse-sigmoid reference points at cols 10,11 (xy) and 14 (z);
    # zeros elsewhere.  scale_row/offset_row hold 1/0 at score columns and the
    # pc_range de-normalization at the center columns.
    col = lax.broadcasted_iota(jnp.int32, (NQ, OUT_PAD), 1)
    sig = jax.nn.sigmoid(head + refpad_ref[...])          # scores & centers
    sig_part = sig * scale_row + offset_row               # de-normalize centers

    is_size = (col == 12) | (col == 13) | (col == 15)     # dw, dl, dh -> exp
    is_copy = (col >= 16) & (col < 20)                    # sin, cos, vx, vy

    out = jnp.where(is_size, jnp.exp(head), sig_part)     # unclamped, as PETR ref
    out = jnp.where(is_copy, head, out)
    out = jnp.where(col >= NUM_CLASSES + CODE_SIZE, 0.0, out)

    out_ref[...] = out                                    # single 128-wide store


# ------------------------------ module wrapper -------------------------------
class Far3DExportPtsBbox:
    def __init__(self, key):
        self.B = B
        self.N = N_CAMS
        self.num_propagated = NUM_PROPAGATED
        self.memory_len = MEMORY_LEN
        self.pc_range = jnp.asarray(PC_RANGE, jnp.float32)

        ks = list(jax.random.split(key, 24))
        g = iter(ks)

        def init(shape, scale=0.05):
            return (scale * jax.random.normal(next(g), shape)).astype(jnp.float32)

        # learned query embeddings / reference points
        self.query_embed = init((NUM_QUERY, C), 0.1)
        self.reference_points = jax.random.uniform(next(g), (NUM_QUERY, 3),
                                                   jnp.float32, 0.05, 0.95)
        self.pseudo_reference_points = jax.random.uniform(
            next(g), (NUM_PROPAGATED, 3), jnp.float32, 0.05, 0.95)
        # learned position embedding for flattened image features (stored bf16)
        # TODO(synk): real Far3D builds 3D position encoding from img2lidars frustum points.
        self.pos_embed = init((L, C), 0.1).astype(jnp.bfloat16)

        # attention weights folded algebraically (f32 products, single bf16 cast)
        wq = init((C, C)); wk = init((C, C)); wv = init((C, C)); wo = init((C, C))
        self.wqk = ((wq @ wk.T) * (1.0 / math.sqrt(C))).astype(jnp.bfloat16)  # [C, C]
        self.wvo = (wv @ wo).astype(jnp.bfloat16)                             # [C, C]

        # FFN
        self.ffn_w1 = init((C, FFN_DIM)).astype(jnp.bfloat16)
        self.ffn_w2 = init((FFN_DIM, C)).astype(jnp.bfloat16)

        # cls / reg branches fused: first layers side-by-side, second layers
        # block-diagonal and padded to a lane-dense 128-wide output.
        cls_w1 = init((C, C)); reg_w1 = init((C, C))
        cls_w2 = init((C, NUM_CLASSES)); reg_w2 = init((C, CODE_SIZE))
        self.head_w1 = jnp.concatenate([cls_w1, reg_w1], axis=1).astype(jnp.bfloat16)
        head_w2 = jnp.zeros((2 * C, OUT_PAD), jnp.float32)
        head_w2 = head_w2.at[:C, 0:NUM_CLASSES].set(cls_w2)
        head_w2 = head_w2.at[C:, NUM_CLASSES:NUM_CLASSES + CODE_SIZE].set(reg_w2)
        self.head_w2 = head_w2.astype(jnp.bfloat16)

        # packed small f32 params (LN gains/biases, biases, decode scale/offset)
        x_min, y_min, z_min, x_max, y_max, z_max = PC_RANGE
        ln1_g = jnp.ones((C,), jnp.float32);  ln1_b = jnp.zeros((C,), jnp.float32)
        ln2_g = jnp.ones((C,), jnp.float32);  ln2_b = jnp.zeros((C,), jnp.float32)
        ffn_b2 = jnp.zeros((C,), jnp.float32)
        head_b2 = jnp.zeros((OUT_PAD,), jnp.float32)   # cls_b2 | reg_b2 (zero-init), padded
        scale_row = jnp.ones((OUT_PAD,), jnp.float32)
        scale_row = scale_row.at[10].set(x_max - x_min).at[11].set(y_max - y_min)
        scale_row = scale_row.at[14].set(z_max - z_min)
        offset_row = jnp.zeros((OUT_PAD,), jnp.float32)
        offset_row = offset_row.at[10].set(x_min).at[11].set(y_min).at[14].set(z_min)
        self.params128 = jnp.stack(
            [ln1_g, ln1_b, ln2_g, ln2_b, ffn_b2, head_b2, scale_row, offset_row])

        ffn_b1 = jnp.zeros((FFN_DIM,), jnp.float32)
        head_b1 = jnp.zeros((2 * C,), jnp.float32)     # cls_b1 | reg_b1 (zero-init)
        self.params256 = jnp.stack([ffn_b1, head_b1])

        # prebuilt lane-dense inverse-sigmoid reference pad for the 120 static
        # queries (rows 120:128 are filled per call).  Kept in f32 on purpose.
        ref_norm = jnp.clip(self.reference_points, 1e-5, 1.0 - 1e-5)
        ref_logit = jnp.log(ref_norm / (1.0 - ref_norm))                   # [120, 3]
        ref_pad = jnp.zeros((NQ, OUT_PAD), jnp.float32)
        ref_pad = ref_pad.at[:NUM_QUERY, 10:12].set(ref_logit[:, 0:2])     # xy -> cols 10,11
        ref_pad = ref_pad.at[:NUM_QUERY, 14:15].set(ref_logit[:, 2:3])     # z  -> col 14
        self.ref_pad_static = ref_pad

    # -------- single fused pallas call (no grid: no dead double-buffer) --------
    def _run_fused(self, q_emb, feats, ref_pad):
        return pl.pallas_call(
            fused_kernel,
            out_shape=jax.ShapeDtypeStruct((NQ, OUT_PAD), jnp.float32),
            cost_estimate=pl.CostEstimate(flops=70_000_000,
                                          transcendentals=80_000,
                                          bytes_accessed=750_000),
        )(q_emb, feats, self.pos_embed, ref_pad,
          self.wqk, self.wvo,
          self.ffn_w1, self.ffn_w2,
          self.head_w1, self.head_w2,
          self.params128, self.params256)

    # -------- forward: mirrors Far3D_export_pts_bbox.forward --------
    def forward(self, img_feats, outs_roi=None,
                memory_embedding=None, memory_reference_point=None,
                memory_timestamp=None, memory_egopose=None, memory_velo=None,
                intrinsics=None, extrinsics=None,
                lidar2imgs=None, img2lidars=None):
        # TODO(synk): outs_roi-based 2D->3D query proposal generation not modeled.
        # TODO(synk): temporal ego-pose alignment (memory_timestamp/egopose/velo) not modeled.
        del outs_roi, memory_timestamp, memory_egopose, memory_velo
        del intrinsics, extrinsics, lidar2imgs, img2lidars

        # glue: NCHW -> channel-last, flatten cams+spatial, cast bf16 (one fused XLA pass)
        # TODO(synk): a channel-last upstream neck would remove this transpose round-trip.
        feats = jnp.transpose(img_feats[0], (0, 2, 3, 1)).reshape(L, C).astype(jnp.bfloat16)

        # glue: propagate temporal memory queries
        prop_emb = memory_embedding[0, :NUM_PROPAGATED]                    # [P, C]
        q_emb = jnp.concatenate([self.query_embed, prop_emb], axis=0)      # [NQ, C] f32

        # glue: only the 8 propagated reference rows change per call
        pc_min = self.pc_range[:3]
        pc_max = self.pc_range[3:]
        mem_ref = memory_reference_point[0, :NUM_PROPAGATED]               # [P, 3] metric
        mem_norm = jnp.clip((mem_ref - pc_min) / (pc_max - pc_min), 1e-5, 1.0 - 1e-5)
        mem_logit = jnp.log(mem_norm / (1.0 - mem_norm))                   # [P, 3]
        prop_rows = jnp.zeros((NUM_PROPAGATED, OUT_PAD), jnp.float32)
        prop_rows = prop_rows.at[:, 10:12].set(mem_logit[:, 0:2])
        prop_rows = prop_rows.at[:, 14:15].set(mem_logit[:, 2:3])
        ref_pad = lax.dynamic_update_slice(self.ref_pad_static, prop_rows,
                                           (NUM_QUERY, 0))                 # [NQ, 128] f32

        # fused hot path: decoder + heads + box decode (single Pallas kernel)
        out = self._run_fused(q_emb, feats, ref_pad)                       # [NQ, 128]

        scores = out[:, 0:NUM_CLASSES]                                     # sigmoid(cls)
        cx = out[:, 10]; cy = out[:, 11]
        w_ = out[:, 12]; l_ = out[:, 13]
        cz_center = out[:, 14]; h_ = out[:, 15]
        sin_r = out[:, 16]; cos_r = out[:, 17]
        vx = out[:, 18]; vy = out[:, 19]

        # glue: get_bboxes — rotation, gravity-center shift, top-k selection
        rot = jnp.arctan2(sin_r, cos_r)
        cz = cz_center - 0.5 * h_
        bboxes9 = jnp.stack([cx, cy, cz, w_, l_, h_, rot, vx, vy], axis=-1)  # [NQ, 9]

        flat_scores = scores.reshape(-1)                                   # [NQ*K]
        top_scores, top_idx = jax.lax.top_k(flat_scores, MAX_NUM)
        labels = (top_idx % NUM_CLASSES).astype(jnp.int32)
        q_idx = top_idx // NUM_CLASSES
        top_boxes = bboxes9[q_idx]

        # bbox_list (B = 1): [(boxes, scores, labels)]
        return [(top_boxes, top_scores, labels)]

    __call__ = forward


# ---------------------------------- main -------------------------------------
if __name__ == "__main__":
    key = jax.random.PRNGKey(0)
    k_feat, k_mem_e, k_mem_r, k_roi, k_geo = jax.random.split(key, 5)

    # inputs (small, consistent with module conventions)
    img_feats = [jax.random.normal(k_feat, (N_CAMS, C, H, W), jnp.float32)]  # NCHW per cam
    outs_roi = jax.random.normal(k_roi, (1, N_CAMS, 8, 5), jnp.float32)
    memory_embedding = 0.1 * jax.random.normal(k_mem_e, (B, MEMORY_LEN, C), jnp.float32)
    memory_reference_point = jax.random.uniform(
        k_mem_r, (B, MEMORY_LEN, 3), jnp.float32, -20.0, 20.0)
    memory_timestamp = jnp.zeros((B, MEMORY_LEN, 1), jnp.float32)
    memory_egopose = jnp.tile(jnp.eye(4, dtype=jnp.float32), (B, MEMORY_LEN, 1, 1))
    memory_velo = jnp.zeros((B, MEMORY_LEN, 2), jnp.float32)
    geo = jnp.tile(jnp.eye(4, dtype=jnp.float32), (B, N_CAMS, 1, 1))
    intrinsics, extrinsics, lidar2imgs, img2lidars = geo, geo, geo, geo

    model = Far3DExportPtsBbox(jax.random.PRNGKey(42))
    forward_jit = jax.jit(model.forward)
    bbox_list = forward_jit(img_feats, outs_roi,
                            memory_embedding, memory_reference_point,
                            memory_timestamp, memory_egopose, memory_velo,
                            intrinsics, extrinsics, lidar2imgs, img2lidars)

    boxes, scores, labels = bbox_list[0]
    jax.block_until_ready((boxes, scores, labels))
    assert boxes.shape == (MAX_NUM, 9)
    assert scores.shape == (MAX_NUM,)
    assert labels.shape == (MAX_NUM,)
    print("KERNEL_OK")
</pallas_src>

<mosaic_0001>
module attributes {stable_mosaic.version = 11 : i64} {
  func.func @fused_kernel(%arg0: memref<128x128xf32, #tpu.memory_space<vmem>>, %arg1: memref<384x128xbf16, #tpu.memory_space<vmem>>, %arg2: memref<384x128xbf16, #tpu.memory_space<vmem>>, %arg3: memref<128x128xf32, #tpu.memory_space<vmem>>, %arg4: memref<128x128xbf16, #tpu.memory_space<vmem>>, %arg5: memref<128x128xbf16, #tpu.memory_space<vmem>>, %arg6: memref<128x256xbf16, #tpu.memory_space<vmem>>, %arg7: memref<256x128xbf16, #tpu.memory_space<vmem>>, %arg8: memref<128x256xbf16, #tpu.memory_space<vmem>>, %arg9: memref<256x128xbf16, #tpu.memory_space<vmem>>, %arg10: memref<8x128xf32, #tpu.memory_space<vmem>>, %arg11: memref<2x256xf32, #tpu.memory_space<vmem>>, %arg12: memref<128x128xf32, #tpu.memory_space<vmem>>) attributes {dimension_semantics = [], scalar_prefetch = 0 : i64, scratch_operands = 0 : i64, tpu.core_type = #tpu.core_type<tc>} {
    %c0 = arith.constant 0 : index
    %c0_0 = arith.constant 0 : index
    %0 = vector.load %arg0[%c0, %c0_0] : memref<128x128xf32, #tpu.memory_space<vmem>>, vector<128x128xf32>
    %c0_1 = arith.constant 0 : index
    %c0_2 = arith.constant 0 : index
    %1 = vector.load %arg1[%c0_1, %c0_2] : memref<384x128xbf16, #tpu.memory_space<vmem>>, vector<384x128xbf16>
    %c0_3 = arith.constant 0 : index
    %c0_4 = arith.constant 0 : index
    %2 = vector.load %arg2[%c0_3, %c0_4] : memref<384x128xbf16, #tpu.memory_space<vmem>>, vector<384x128xbf16>
    %3 = arith.addf %1, %2 : vector<384x128xbf16>
    %c0_5 = arith.constant 0 : index
    %c0_6 = arith.constant 0 : index
    %4 = vector.load %arg10[%c0_5, %c0_6] : memref<8x128xf32, #tpu.memory_space<vmem>>, vector<1x128xf32>
    %c1 = arith.constant 1 : index
    %c0_7 = arith.constant 0 : index
    %5 = vector.load %arg10[%c1, %c0_7] : memref<8x128xf32, #tpu.memory_space<vmem>>, vector<1x128xf32>
    %c2 = arith.constant 2 : index
    %c0_8 = arith.constant 0 : index
    %6 = vector.load %arg10[%c2, %c0_8] : memref<8x128xf32, #tpu.memory_space<vmem>>, vector<1x128xf32>
    %c3 = arith.constant 3 : index
    %c0_9 = arith.constant 0 : index
    %7 = vector.load %arg10[%c3, %c0_9] : memref<8x128xf32, #tpu.memory_space<vmem>>, vector<1x128xf32>
    %c4 = arith.constant 4 : index
    %c0_10 = arith.constant 0 : index
    %8 = vector.load %arg10[%c4, %c0_10] : memref<8x128xf32, #tpu.memory_space<vmem>>, vector<1x128xf32>
    %c5 = arith.constant 5 : index
    %c0_11 = arith.constant 0 : index
    %9 = vector.load %arg10[%c5, %c0_11] : memref<8x128xf32, #tpu.memory_space<vmem>>, vector<1x128xf32>
    %c6 = arith.constant 6 : index
    %c0_12 = arith.constant 0 : index
    %10 = vector.load %arg10[%c6, %c0_12] : memref<8x128xf32, #tpu.memory_space<vmem>>, vector<1x128xf32>
    %c7 = arith.constant 7 : index
    %c0_13 = arith.constant 0 : index
    %11 = vector.load %arg10[%c7, %c0_13] : memref<8x128xf32, #tpu.memory_space<vmem>>, vector<1x128xf32>
    %c0_14 = arith.constant 0 : index
    %c0_15 = arith.constant 0 : index
    %12 = vector.load %arg11[%c0_14, %c0_15] : memref<2x256xf32, #tpu.memory_space<vmem>>, vector<1x256xf32>
    %c1_16 = arith.constant 1 : index
    %c0_17 = arith.constant 0 : index
    %13 = vector.load %arg11[%c1_16, %c0_17] : memref<2x256xf32, #tpu.memory_space<vmem>>, vector<1x256xf32>
    %14 = arith.truncf %0 : vector<128x128xf32> to vector<128x128xbf16>
    %c0_18 = arith.constant 0 : index
    %c0_19 = arith.constant 0 : index
    %15 = vector.load %arg4[%c0_18, %c0_19] : memref<128x128xbf16, #tpu.memory_space<vmem>>, vector<128x128xbf16>
    %cst = arith.constant dense<0.000000e+00> : vector<128x128xf32>
    %16 = tpu.matmul %14, %15, %cst {dimension_numbers = #tpu.dot_dimension_numbers<[1], [0], [0], [1], [0, 0, 1, 1], [], []>} : vector<128x128xbf16>, vector<128x128xbf16>, vector<128x128xf32> -> vector<128x128xf32>
    %17 = arith.truncf %16 : vector<128x128xf32> to vector<128x128xbf16>
    %cst_20 = arith.constant dense<0.000000e+00> : vector<128x384xf32>
    %18 = tpu.matmul %17, %3, %cst_20 {dimension_numbers = #tpu.dot_dimension_numbers<[1], [1], [0], [0], [0, 0, 1, 0], [], []>} : vector<128x128xbf16>, vector<384x128xbf16>, vector<128x384xf32> -> vector<128x384xf32>
    %cst_21 = arith.constant dense<0xFF800000> : vector<128xf32>
    %19 = vector.multi_reduction <maximumf>, %18, %cst_21 [1] : vector<128x384xf32> to vector<128xf32>
    %20 = vector.shape_cast %19 : vector<128xf32> to vector<128x1xf32>
    %21 = vector.broadcast %20 : vector<128x1xf32> to vector<128x384xf32>
    %22 = arith.subf %18, %21 : vector<128x384xf32>
    %23 = math.exp %22 : vector<128x384xf32>
    %cst_22 = arith.constant dense<0.000000e+00> : vector<128xf32>
    %24 = vector.multi_reduction <add>, %23, %cst_22 [1] : vector<128x384xf32> to vector<128xf32>
    %25 = vector.shape_cast %24 : vector<128xf32> to vector<128x1xf32>
    %26 = arith.truncf %23 : vector<128x384xf32> to vector<128x384xbf16>
    %cst_23 = arith.constant dense<0.000000e+00> : vector<128x128xf32>
    %27 = tpu.matmul %26, %3, %cst_23 {dimension_numbers = #tpu.dot_dimension_numbers<[1], [0], [0], [1], [0, 0, 1, 1], [], []>} : vector<128x384xbf16>, vector<384x128xbf16>, vector<128x128xf32> -> vector<128x128xf32>
    %28 = arith.truncf %27 : vector<128x128xf32> to vector<128x128xbf16>
    %c0_24 = arith.constant 0 : index
    %c0_25 = arith.constant 0 : index
    %29 = vector.load %arg5[%c0_24, %c0_25] : memref<128x128xbf16, #tpu.memory_space<vmem>>, vector<128x128xbf16>
    %cst_26 = arith.constant dense<0.000000e+00> : vector<128x128xf32>
    %30 = tpu.matmul %28, %29, %cst_26 {dimension_numbers = #tpu.dot_dimension_numbers<[1], [0], [0], [1], [0, 0, 1, 1], [], []>} : vector<128x128xbf16>, vector<128x128xbf16>, vector<128x128xf32> -> vector<128x128xf32>
    %31 = tpu.reciprocal %25 {approx = true} : vector<128x1xf32> -> vector<128x1xf32>
    %32 = vector.broadcast %31 : vector<128x1xf32> to vector<128x128xf32>
    %33 = arith.mulf %30, %32 : vector<128x128xf32>
    %34 = arith.addf %0, %33 : vector<128x128xf32>
    %cst_27 = arith.constant dense<0.000000e+00> : vector<128xf32>
    %35 = vector.multi_reduction <add>, %34, %cst_27 [1] : vector<128x128xf32> to vector<128xf32>
    %36 = vector.shape_cast %35 : vector<128xf32> to vector<128x1xf32>
    %cst_28 = arith.constant 1.280000e+02 : f32
    %37 = vector.broadcast %cst_28 : f32 to vector<128x1xf32>
    %38 = arith.divf %36, %37 : vector<128x1xf32>
    %39 = arith.mulf %34, %34 : vector<128x128xf32>
    %cst_29 = arith.constant dense<0.000000e+00> : vector<128xf32>
    %40 = vector.multi_reduction <add>, %39, %cst_29 [1] : vector<128x128xf32> to vector<128xf32>
    %41 = vector.shape_cast %40 : vector<128xf32> to vector<128x1xf32>
    %cst_30 = arith.constant 1.280000e+02 : f32
    %42 = vector.broadcast %cst_30 : f32 to vector<128x1xf32>
    %43 = arith.divf %41, %42 : vector<128x1xf32>
    %44 = arith.mulf %38, %38 : vector<128x1xf32>
    %45 = arith.subf %43, %44 : vector<128x1xf32>
    %46 = vector.broadcast %38 : vector<128x1xf32> to vector<128x128xf32>
    %47 = arith.subf %34, %46 : vector<128x128xf32>
    %cst_31 = arith.constant 9.99999974E-6 : f32
    %48 = vector.broadcast %cst_31 : f32 to vector<128x1xf32>
    %49 = arith.addf %45, %48 : vector<128x1xf32>
    %50 = math.rsqrt %49 : vector<128x1xf32>
    %51 = vector.broadcast %50 : vector<128x1xf32> to vector<128x128xf32>
    %52 = arith.mulf %47, %51 : vector<128x128xf32>
    %53 = vector.broadcast %4 : vector<1x128xf32> to vector<128x128xf32>
    %54 = arith.mulf %52, %53 : vector<128x128xf32>
    %55 = vector.broadcast %5 : vector<1x128xf32> to vector<128x128xf32>
    %56 = arith.addf %54, %55 : vector<128x128xf32>
    %57 = arith.truncf %56 : vector<128x128xf32> to vector<128x128xbf16>
    %c0_32 = arith.constant 0 : index
    %c0_33 = arith.constant 0 : index
    %58 = vector.load %arg6[%c0_32, %c0_33] : memref<128x256xbf16, #tpu.memory_space<vmem>>, vector<128x256xbf16>
    %cst_34 = arith.constant dense<0.000000e+00> : vector<128x256xf32>
    %59 = tpu.matmul %57, %58, %cst_34 {dimension_numbers = #tpu.dot_dimension_numbers<[1], [0], [0], [1], [0, 0, 1, 1], [], []>} : vector<128x128xbf16>, vector<128x256xbf16>, vector<128x256xf32> -> vector<128x256xf32>
    %60 = vector.broadcast %12 : vector<1x256xf32> to vector<128x256xf32>
    %61 = arith.addf %59, %60 : vector<128x256xf32>
    %cst_35 = arith.constant 0.000000e+00 : f32
    %62 = vector.broadcast %cst_35 : f32 to vector<128x256xf32>
    %63 = arith.maximumf %61, %62 : vector<128x256xf32>
    %64 = arith.truncf %63 : vector<128x256xf32> to vector<128x256xbf16>
    %c0_36 = arith.constant 0 : index
    %c0_37 = arith.constant 0 : index
    %65 = vector.load %arg7[%c0_36, %c0_37] : memref<256x128xbf16, #tpu.memory_space<vmem>>, vector<256x128xbf16>
    %cst_38 = arith.constant dense<0.000000e+00> : vector<128x128xf32>
    %66 = tpu.matmul %64, %65, %cst_38 {dimension_numbers = #tpu.dot_dimension_numbers<[1], [0], [0], [1], [0, 0, 1, 1], [], []>} : vector<128x256xbf16>, vector<256x128xbf16>, vector<128x128xf32> -> vector<128x128xf32>
    %67 = arith.addf %56, %66 : vector<128x128xf32>
    %68 = vector.broadcast %8 : vector<1x128xf32> to vector<128x128xf32>
    %69 = arith.addf %67, %68 : vector<128x128xf32>
    %cst_39 = arith.constant dense<0.000000e+00> : vector<128xf32>
    %70 = vector.multi_reduction <add>, %69, %cst_39 [1] : vector<128x128xf32> to vector<128xf32>
    %71 = vector.shape_cast %70 : vector<128xf32> to vector<128x1xf32>
    %cst_40 = arith.constant 1.280000e+02 : f32
    %72 = vector.broadcast %cst_40 : f32 to vector<128x1xf32>
    %73 = arith.divf %71, %72 : vector<128x1xf32>
    %74 = arith.mulf %69, %69 : vector<128x128xf32>
    %cst_41 = arith.constant dense<0.000000e+00> : vector<128xf32>
    %75 = vector.multi_reduction <add>, %74, %cst_41 [1] : vector<128x128xf32> to vector<128xf32>
    %76 = vector.shape_cast %75 : vector<128xf32> to vector<128x1xf32>
    %cst_42 = arith.constant 1.280000e+02 : f32
    %77 = vector.broadcast %cst_42 : f32 to vector<128x1xf32>
    %78 = arith.divf %76, %77 : vector<128x1xf32>
    %79 = arith.mulf %73, %73 : vector<128x1xf32>
    %80 = arith.subf %78, %79 : vector<128x1xf32>
    %81 = vector.broadcast %73 : vector<128x1xf32> to vector<128x128xf32>
    %82 = arith.subf %69, %81 : vector<128x128xf32>
    %cst_43 = arith.constant 9.99999974E-6 : f32
    %83 = vector.broadcast %cst_43 : f32 to vector<128x1xf32>
    %84 = arith.addf %80, %83 : vector<128x1xf32>
    %85 = math.rsqrt %84 : vector<128x1xf32>
    %86 = vector.broadcast %85 : vector<128x1xf32> to vector<128x128xf32>
    %87 = arith.mulf %82, %86 : vector<128x128xf32>
    %88 = vector.broadcast %6 : vector<1x128xf32> to vector<128x128xf32>
    %89 = arith.mulf %87, %88 : vector<128x128xf32>
    %90 = vector.broadcast %7 : vector<1x128xf32> to vector<128x128xf32>
    %91 = arith.addf %89, %90 : vector<128x128xf32>
    %92 = arith.truncf %91 : vector<128x128xf32> to vector<128x128xbf16>
    %c0_44 = arith.constant 0 : index
    %c0_45 = arith.constant 0 : index
    %93 = vector.load %arg8[%c0_44, %c0_45] : memref<128x256xbf16, #tpu.memory_space<vmem>>, vector<128x256xbf16>
    %cst_46 = arith.constant dense<0.000000e+00> : vector<128x256xf32>
    %94 = tpu.matmul %92, %93, %cst_46 {dimension_numbers = #tpu.dot_dimension_numbers<[1], [0], [0], [1], [0, 0, 1, 1], [], []>} : vector<128x128xbf16>, vector<128x256xbf16>, vector<128x256xf32> -> vector<128x256xf32>
    %95 = vector.broadcast %13 : vector<1x256xf32> to vector<128x256xf32>
    %96 = arith.addf %94, %95 : vector<128x256xf32>
    %cst_47 = arith.constant 0.000000e+00 : f32
    %97 = vector.broadcast %cst_47 : f32 to vector<128x256xf32>
    %98 = arith.maximumf %96, %97 : vector<128x256xf32>
    %99 = arith.truncf %98 : vector<128x256xf32> to vector<128x256xbf16>
    %c0_48 = arith.constant 0 : index
    %c0_49 = arith.constant 0 : index
    %100 = vector.load %arg9[%c0_48, %c0_49] : memref<256x128xbf16, #tpu.memory_space<vmem>>, vector<256x128xbf16>
    %cst_50 = arith.constant dense<0.000000e+00> : vector<128x128xf32>
    %101 = tpu.matmul %99, %100, %cst_50 {dimension_numbers = #tpu.dot_dimension_numbers<[1], [0], [0], [1], [0, 0, 1, 1], [], []>} : vector<128x256xbf16>, vector<256x128xbf16>, vector<128x128xf32> -> vector<128x128xf32>
    %102 = vector.broadcast %9 : vector<1x128xf32> to vector<128x128xf32>
    %103 = arith.addf %101, %102 : vector<128x128xf32>
    %104 = tpu.iota {dimensions = array<i32: 1>} : vector<128x128xi32>
    %c0_51 = arith.constant 0 : index
    %c0_52 = arith.constant 0 : index
    %105 = vector.load %arg3[%c0_51, %c0_52] : memref<128x128xf32, #tpu.memory_space<vmem>>, vector<128x128xf32>
    %106 = arith.addf %103, %105 : vector<128x128xf32>
    %107 = arith.negf %106 : vector<128x128xf32>
    %108 = math.exp %107 : vector<128x128xf32>
    %cst_53 = arith.constant 1.000000e+00 : f32
    %109 = vector.broadcast %cst_53 : f32 to vector<128x128xf32>
    %110 = arith.addf %109, %108 : vector<128x128xf32>
    %111 = arith.divf %109, %110 : vector<128x128xf32>
    %112 = vector.broadcast %10 : vector<1x128xf32> to vector<128x128xf32>
    %113 = arith.mulf %111, %112 : vector<128x128xf32>
    %114 = vector.broadcast %11 : vector<1x128xf32> to vector<128x128xf32>
    %115 = arith.addf %113, %114 : vector<128x128xf32>
    %c12_i32 = arith.constant 12 : i32
    %116 = vector.broadcast %c12_i32 : i32 to vector<128x128xi32>
    %117 = arith.cmpi eq, %104, %116 : vector<128x128xi32>
    %c13_i32 = arith.constant 13 : i32
    %118 = vector.broadcast %c13_i32 : i32 to vector<128x128xi32>
    %119 = arith.cmpi eq, %104, %118 : vector<128x128xi32>
    %120 = arith.ori %117, %119 : vector<128x128xi1>
    %c15_i32 = arith.constant 15 : i32
    %121 = vector.broadcast %c15_i32 : i32 to vector<128x128xi32>
    %122 = arith.cmpi eq, %104, %121 : vector<128x128xi32>
    %123 = arith.ori %120, %122 : vector<128x128xi1>
    %c16_i32 = arith.constant 16 : i32
    %124 = vector.broadcast %c16_i32 : i32 to vector<128x128xi32>
    %125 = arith.cmpi sge, %104, %124 : vector<128x128xi32>
    %c20_i32 = arith.constant 20 : i32
    %126 = vector.broadcast %c20_i32 : i32 to vector<128x128xi32>
    %127 = arith.cmpi slt, %104, %126 : vector<128x128xi32>
    %128 = arith.andi %125, %127 : vector<128x128xi1>
    %129 = math.exp %103 : vector<128x128xf32>
    %130 = arith.select %123, %129, %115 : vector<128x128xi1>, vector<128x128xf32>
    %131 = arith.select %128, %103, %130 : vector<128x128xi1>, vector<128x128xf32>
    %c20_i32_54 = arith.constant 20 : i32
    %132 = vector.broadcast %c20_i32_54 : i32 to vector<128x128xi32>
    %133 = arith.cmpi sge, %104, %132 : vector<128x128xi32>
    %cst_55 = arith.constant 0.000000e+00 : f32
    %134 = vector.broadcast %cst_55 : f32 to vector<128x128xf32>
    %135 = arith.select %133, %134, %131 : vector<128x128xi1>, vector<128x128xf32>
    %c0_56 = arith.constant 0 : index
    %c0_57 = arith.constant 0 : index
    %136 = vector.load %arg12[%c0_56, %c0_57] : memref<128x128xf32, #tpu.memory_space<vmem>>, vector<128x128xf32>
    tpu.vector_store %arg12[%c0_56, %c0_57], %135 {strides = array<i32>} : memref<128x128xf32, #tpu.memory_space<vmem>>, vector<128x128xf32>,
    return
  }
}

</mosaic_0001>

<bundles_post_ra>
// kernel: forward.1
= control target key start
LH: loop header
LB: loop body
LE: loop exit
PB: predicated region body
PF: predicated region fallthrough
CT: control target
= control target key end

     0   :  { %s6146_s4 = inlined_call_operand.vmem [shape: bf16[128,128], index: 4, kind: input, shape index: {}]   ;;  %s6147_s0 = inlined_call_operand.vmem [shape: f32[128,128], index: 0, kind: input, shape index: {}]   ;;  %s6148_s1 = inlined_call_operand.vmem [shape: bf16[384,128], index: 1, kind: input, shape index: {}]   ;;  %s6149_s2 = inlined_call_operand.vmem [shape: bf16[384,128], index: 2, kind: input, shape index: {}]   ;;  %s6150_s5 = inlined_call_operand.vmem [shape: bf16[128,128], index: 5, kind: input, shape index: {}]   ;;  %s6151_s6 = inlined_call_operand.vmem [shape: bf16[128,256], index: 6, kind: input, shape index: {}]   ;;  %s6152_s7 = inlined_call_operand.vmem [shape: bf16[256,128], index: 7, kind: input, shape index: {}]   ;;  %s6153_s10 = inlined_call_operand.vmem [shape: f32[8,128], index: 10, kind: input, shape index: {}]   ;;  %s6154_s11 = inlined_call_operand.vmem [shape: f32[2,256], index: 11, kind: input, shape index: {}]   ;;  %s6155_s8 = inlined_call_operand.vmem [shape: bf16[128,256], index: 8, kind: input, shape index: {}]   ;;  %s6156_s9 = inlined_call_operand.vmem [shape: bf16[256,128], index: 9, kind: input, shape index: {}]   ;;  %s6157_s3 = inlined_call_operand.vmem [shape: f32[128,128], index: 3, kind: input, shape index: {}]   ;;  %s6158_s12 = inlined_call_operand.vmem [shape: f32[128,128], index: 12, kind: output, shape index: {}]  }
   0x1   :  { %v3815_v0 = vld [vmem:[%s6146_s4] sm:$0xff]   ;;  %v3816_v1 = vld [vmem:[%s6146_s4 + $0x8] sm:$0xff]   ;;  %v3817_v2 = vld [vmem:[%s6146_s4 + $0x10] sm:$0xff]  }
   0x2   :  { %3686 = vmatprep.subr.bf16.mxu0 %v3815_v0  ;;  %v3818_v3 = vld [vmem:[%s6146_s4 + $0x18] sm:$0xff]   ;;  %v42_v4 = vld [vmem:[%s6147_s0] sm:$0xff]  ;;  %v43_v5 = vld [vmem:[%s6147_s0 + $0x8] sm:$0xff] }
   0x3   :  { %3687 = vmatpush3.bf16.msra.mxu0 %v3815_v0  ;;  %v213_v6 = vpack.c.bf16 %v43_v5, %v42_v4  ;;  %v3819_v7 = vld [vmem:[%s6146_s4 + $0x20] sm:$0xff]   ;;  %v3820_v12 = vld [vmem:[%s6146_s4 + $0x28] sm:$0xff]   ;;  %v3821_v23 = vld [vmem:[%s6146_s4 + $0x30] sm:$0xff]  }
   0x4   :  { %3688 = vmatprep.subr.bf16.mxu0 %v3816_v1  ;;  %v74_v8 = vld [vmem:[%s6148_s1 + $0x40] sm:$0xf]  ;;  %v75_v9 = vld [vmem:[%s6148_s1 + $0x44] sm:$0xf]  ;;  %v76_v21 = vld [vmem:[%s6148_s1 + $0x48] sm:$0xf] }
   0x5   :  { %3702 = vmatprep.mubr.bf16.mxu0 %v213_v6  ;;  %v122_v10 = vld [vmem:[%s6149_s2 + $0x40] sm:$0xf]  ;;  %v123_v11 = vld [vmem:[%s6149_s2 + $0x44] sm:$0xf]  ;;  %v77_v22 = vld [vmem:[%s6148_s1 + $0x4c] sm:$0xf] }
   0x6   :  { %v170_v13 = vadd.bf16 %v122_v10, %v74_v8  ;;  %v171_v14 = vadd.bf16 %v123_v11, %v75_v9  ;;  %v58_v15 = vld [vmem:[%s6148_s1] sm:$0xf]  ;;  %v59_v16 = vld [vmem:[%s6148_s1 + $0x4] sm:$0xf]  ;;  %v124_v25 = vld [vmem:[%s6149_s2 + $0x48] sm:$0xf] }
   0x7   :  { %3689 = vmatpush3.bf16.msra.mxu0 %v3816_v1  ;;  %v106_v17 = vld [vmem:[%s6149_s2] sm:$0xf]  ;;  %v107_v19 = vld [vmem:[%s6149_s2 + $0x4] sm:$0xf]  ;;  %v125_v26 = vld [vmem:[%s6149_s2 + $0x4c] sm:$0xf]  ;;  %v172_v31 = vadd.bf16 %v124_v25, %v76_v21 }
   0x8   :  { %3690 = vmatprep.subr.bf16.mxu0 %v3817_v2  ;;  %v4326_v18 = vcombine.low %v170_v13, %v171_v14  ;;  %v154_v20 = vadd.bf16 %v106_v17, %v58_v15  ;;  %v155_v24 = vadd.bf16 %v107_v19, %v59_v16  ;;  %v90_v27 = vld [vmem:[%s6148_s1 + $0x80] sm:$0xf]  ;;  %v91_v28 = vld [vmem:[%s6148_s1 + $0x84] sm:$0xf]  ;;  %v173_v32 = vadd.bf16 %v125_v26, %v77_v22  ;;  %v60_v34 = vld [vmem:[%s6148_s1 + $0x8] sm:$0xf] }
   0x9   :  { %v138_v29 = vld [vmem:[%s6149_s2 + $0x80] sm:$0xf]  ;;  %v139_v30 = vld [vmem:[%s6149_s2 + $0x84] sm:$0xf]  ;;  %v61_v35 = vld [vmem:[%s6148_s1 + $0xc] sm:$0xf] }
   0xa   :  { %3414 = vmatprep.subr.bf16.mxu1 %v4326_v18  ;;  %v4359_v33 = vcombine.low %v154_v20, %v155_v24  ;;  %v108_v36 = vld [vmem:[%s6149_s2 + $0x8] sm:$0xf]  ;;  %v4370_v37 = vcombine.low %v172_v31, %v173_v32  ;;  %v109_v38 = vld [vmem:[%s6149_s2 + $0xc] sm:$0xf]  ;;  %v78_v39 = vld [vmem:[%s6148_s1 + $0x50] sm:$0xf]  ;;  %v186_v48 = vadd.bf16 %v138_v29, %v90_v27  ;;  %v187_v49 = vadd.bf16 %v139_v30, %v91_v28 }
   0xb   :  { %3691 = vmatpush3.bf16.msra.mxu0 %v3817_v2  ;;  %v79_v40 = vld [vmem:[%s6148_s1 + $0x54] sm:$0xf]  ;;  %v156_v41 = vadd.bf16 %v108_v36, %v60_v34  ;;  %v157_v42 = vadd.bf16 %v109_v38, %v61_v35  ;;  %v126_v43 = vld [vmem:[%s6149_s2 + $0x50] sm:$0xf]  ;;  %v3822_v47 = vld [vmem:[%s6146_s4 + $0x38] sm:$0xff]  }
   0xc   :  { %3692 = vmatprep.subr.bf16.mxu0 %v3818_v3  ;;  %3415 = vmatpush3.bf16.xpose.msra.mxu1 %v4359_v33  ;;  %v127_v44 = vld [vmem:[%s6149_s2 + $0x54] sm:$0xf]  ;;  %v174_v45 = vadd.bf16 %v126_v43, %v78_v39  ;;  %v45_v51 = vld [vmem:[%s6147_s0 + $0x18] sm:$0xff]  ;;  %v46_v52 = vld [vmem:[%s6147_s0 + $0x20] sm:$0xff]  ;;  %v4423_v61 = vcombine.low %v186_v48, %v187_v49 }
   0xd   :  { %3416 = vmatprep.subr.bf16.mxu1 %v4370_v37  ;;  %v175_v46 = vadd.bf16 %v127_v44, %v79_v40  ;;  %v44_v50 = vld [vmem:[%s6147_s0 + $0x10] sm:$0xff]  ;;  %v47_v53 = vld [vmem:[%s6147_s0 + $0x28] sm:$0xff]  ;;  %v4404_v54 = vcombine.low %v156_v41, %v157_v42  ;;  %v80_v60 = vld [vmem:[%s6148_s1 + $0x58] sm:$0xf] }
   0xe   :  { %v62_v55 = vld [vmem:[%s6148_s1 + $0x10] sm:$0xf]  ;;  %v63_v56 = vld [vmem:[%s6148_s1 + $0x14] sm:$0xf]  ;;  %v81_v62 = vld [vmem:[%s6148_s1 + $0x5c] sm:$0xf]  ;;  %v214_v2 = vpack.c.bf16 %v45_v51, %v44_v50  ;;  %v215_v8 = vpack.c.bf16 %v47_v53, %v46_v52 }
   0xf   :  { %3693 = vmatpush3.bf16.msra.mxu0 %v3818_v3  ;;  %v4412_v57 = vcombine.low %v174_v45, %v175_v46  ;;  %v110_v58 = vld [vmem:[%s6149_s2 + $0x10] sm:$0xf]  ;;  %v111_v59 = vld [vmem:[%s6149_s2 + $0x14] sm:$0xf]  ;;  %v128_v63 = vld [vmem:[%s6149_s2 + $0x58] sm:$0xf] }
  0x10   :  { %3694 = vmatprep.subr.bf16.mxu0 %v3819_v7  ;;  %v129_v0 = vld [vmem:[%s6149_s2 + $0x5c] sm:$0xf]  ;;  %v92_v1 = vld [vmem:[%s6148_s1 + $0x88] sm:$0xf]  ;;  %v93_v3 = vld [vmem:[%s6148_s1 + $0x8c] sm:$0xf]  ;;  %v158_v6 = vadd.bf16 %v110_v58, %v62_v55  ;;  %v176_v9 = vadd.bf16 %v128_v63, %v80_v60 }
  0x11   :  { %v140_v4 = vld [vmem:[%s6149_s2 + $0x88] sm:$0xf]  ;;  %v141_v5 = vld [vmem:[%s6149_s2 + $0x8c] sm:$0xf]  ;;  %v177_v10 = vadd.bf16 %v129_v0, %v81_v62  ;;  %v48_v11 = vld [vmem:[%s6147_s0 + $0x30] sm:$0xff] }
  0x12   :  { %v188_v13 = vadd.bf16 %v140_v4, %v92_v1  ;;  %v189_v14 = vadd.bf16 %v141_v5, %v93_v3  ;;  %v50_v15 = vld [vmem:[%s6147_s0 + $0x40] sm:$0xff]  ;;  %v51_v16 = vld [vmem:[%s6147_s0 + $0x48] sm:$0xff]  ;;  %v64_v19 = vld [vmem:[%s6148_s1 + $0x18] sm:$0xf] }
  0x13   :  { %3695 = vmatpush3.bf16.msra.mxu0 %v3819_v7  ;;  %v159_v7 = vadd.bf16 %v111_v59, %v63_v56  ;;  %v65_v20 = vld [vmem:[%s6148_s1 + $0x1c] sm:$0xf]  ;;  %v4469_v21 = vcombine.low %v176_v9, %v177_v10  ;;  %v112_v22 = vld [vmem:[%s6149_s2 + $0x18] sm:$0xf]  ;;  %v82_v24 = vld [vmem:[%s6148_s1 + $0x60] sm:$0xf]  ;;  %v217_v38 = vpack.c.bf16 %v51_v16, %v50_v15 }
  0x14   :  { %3696 = vmatprep.subr.bf16.mxu0 %v3820_v12  ;;  %3417 = vmatpush3.bf16.xpose.msra.mxu1 %v4404_v54  ;;  %v83_v25 = vld [vmem:[%s6148_s1 + $0x64] sm:$0xf]  ;;  %v130_v26 = vld [vmem:[%s6149_s2 + $0x60] sm:$0xf]  ;;  %v4489_v28 = vcombine.low %v188_v13, %v189_v14  ;;  %v94_v29 = vld [vmem:[%s6148_s1 + $0x90] sm:$0xf]  ;;  %v160_v35 = vadd.bf16 %v112_v22, %v64_v19 }
  0x15   :  { %3418 = vmatprep.subr.bf16.mxu1 %v4412_v57  ;;  %v4461_v17 = vcombine.low %v158_v6, %v159_v7  ;;  %v131_v27 = vld [vmem:[%s6149_s2 + $0x64] sm:$0xf]  ;;  %v95_v31 = vld [vmem:[%s6148_s1 + $0x94] sm:$0xf]  ;;  %v142_v32 = vld [vmem:[%s6149_s2 + $0x90] sm:$0xf]  ;;  %v178_v39 = vadd.bf16 %v130_v26, %v82_v24 }
  0x16   :  { %v143_v34 = vld [vmem:[%s6149_s2 + $0x94] sm:$0xf]  ;;  %v179_v40 = vadd.bf16 %v131_v27, %v83_v25  ;;  %v53_v42 = vld [vmem:[%s6147_s0 + $0x58] sm:$0xff]  ;;  %v190_v43 = vadd.bf16 %v142_v32, %v94_v29  ;;  %v54_v45 = vld [vmem:[%s6147_s0 + $0x60] sm:$0xff] }
  0x17   :  { %3697 = vmatpush3.bf16.msra.mxu0 %v3820_v12  ;;  %v49_v12 = vld [vmem:[%s6147_s0 + $0x38] sm:$0xff]  ;;  %v52_v41 = vld [vmem:[%s6147_s0 + $0x50] sm:$0xff]  ;;  %v191_v44 = vadd.bf16 %v143_v34, %v95_v31  ;;  %v55_v46 = vld [vmem:[%s6147_s0 + $0x68] sm:$0xff] }
  0x18   :  { %3698 = vmatprep.subr.bf16.mxu0 %v3821_v23  ;;  %v216_v30 = vpack.c.bf16 %v49_v12, %v48_v11  ;;  %v66_v48 = vld [vmem:[%s6148_s1 + $0x20] sm:$0xf]  ;;  %v67_v49 = vld [vmem:[%s6148_s1 + $0x24] sm:$0xf]  ;;  %v4527_v50 = vcombine.low %v178_v39, %v179_v40  ;;  %v84_v53 = vld [vmem:[%s6148_s1 + $0x68] sm:$0xf]  ;;  %v218_v62 = vpack.c.bf16 %v53_v42, %v52_v41  ;;  %v219_v4 = vpack.c.bf16 %v55_v46, %v54_v45 }
  0x19   :  { %v114_v51 = vld [vmem:[%s6149_s2 + $0x20] sm:$0xf]  ;;  %v115_v52 = vld [vmem:[%s6149_s2 + $0x24] sm:$0xf]  ;;  %v85_v55 = vld [vmem:[%s6148_s1 + $0x6c] sm:$0xf]  ;;  %v4547_v59 = vcombine.low %v190_v43, %v191_v44 }
  0x1a   :  { %v132_v56 = vld [vmem:[%s6149_s2 + $0x68] sm:$0xf]  ;;  %v133_v58 = vld [vmem:[%s6149_s2 + $0x6c] sm:$0xf]  ;;  %v96_v60 = vld [vmem:[%s6148_s1 + $0x98] sm:$0xf]  ;;  %v163_v3 = vadd.bf16 %v115_v52, %v67_v49 }
  0x1b   :  { %3699 = vmatpush3.bf16.msra.mxu0 %v3821_v23  ;;  %v113_v23 = vld [vmem:[%s6149_s2 + $0x1c] sm:$0xf]  ;;  %v144_v0 = vld [vmem:[%s6149_s2 + $0x98] sm:$0xf]  ;;  %v180_v5 = vadd.bf16 %v132_v56, %v84_v53  ;;  %v181_v6 = vadd.bf16 %v133_v58, %v85_v55  ;;  %v56_v7 = vld [vmem:[%s6147_s0 + $0x70] sm:$0xff] }
  0x1c   :  { %3700 = vmatprep.subr.bf16.mxu0 %v3822_v47  ;;  %3419 = vmatpush3.bf16.xpose.msra.mxu1 %v4461_v17  ;;  %v161_v36 = vadd.bf16 %v113_v23, %v65_v20  ;;  %v97_v63 = vld [vmem:[%s6148_s1 + $0x9c] sm:$0xf]  ;;  %v68_v12 = vld [vmem:[%s6148_s1 + $0x28] sm:$0xf]  ;;  %v69_v13 = vld [vmem:[%s6148_s1 + $0x2c] sm:$0xf] }
  0x1d   :  { %3420 = vmatprep.subr.bf16.mxu1 %v4469_v21  ;;  %v145_v1 = vld [vmem:[%s6149_s2 + $0x9c] sm:$0xf]  ;;  %v4579_v14 = vcombine.low %v180_v5, %v181_v6  ;;  %v116_v15 = vld [vmem:[%s6149_s2 + $0x28] sm:$0xf]  ;;  %v117_v16 = vld [vmem:[%s6149_s2 + $0x2c] sm:$0xf] }
  0x1e   :  { %v193_v9 = vadd.bf16 %v145_v1, %v97_v63  ;;  %v57_v10 = vld [vmem:[%s6147_s0 + $0x78] sm:$0xff]  ;;  %v86_v19 = vld [vmem:[%s6148_s1 + $0x70] sm:$0xf]  ;;  %v87_v20 = vld [vmem:[%s6148_s1 + $0x74] sm:$0xf]  ;;  %v164_v31 = vadd.bf16 %v116_v15, %v68_v12  ;;  %v165_v32 = vadd.bf16 %v117_v16, %v69_v13 }
  0x1f   :  { %3701 = vmatpush3.bf16.msra.mxu0 %v3822_v47  ;;  %v4519_v47 = vcombine.low %v160_v35, %v161_v36  ;;  %v134_v22 = vld [vmem:[%s6149_s2 + $0x70] sm:$0xf]  ;;  %v135_v23 = vld [vmem:[%s6149_s2 + $0x74] sm:$0xf]  ;;  %v98_v25 = vld [vmem:[%s6148_s1 + $0xa0] sm:$0xf]  ;;  %v220_v26 = vpack.c.bf16 %v57_v10, %v56_v7 }
  0x20   :  { %3718 = vmatprep.subr.bf16.mxu0 %v4423_v61  ;;  %v99_v27 = vld [vmem:[%s6148_s1 + $0xa4] sm:$0xf]  ;;  %v146_v29 = vld [vmem:[%s6149_s2 + $0xa0] sm:$0xf]  ;;  %v182_v34 = vadd.bf16 %v134_v22, %v86_v19  ;;  %v183_v35 = vadd.bf16 %v135_v23, %v87_v20  ;;  %v4617_v39 = vcombine.low %v164_v31, %v165_v32  ;;  %v70_v40 = vld [vmem:[%s6148_s1 + $0x30] sm:$0xf] }
  0x21   :  { %v194_v36 = vadd.bf16 %v146_v29, %v98_v25  ;;  %v71_v41 = vld [vmem:[%s6148_s1 + $0x34] sm:$0xf]  ;;  %v118_v43 = vld [vmem:[%s6149_s2 + $0x30] sm:$0xf]  ;;  %v88_v45 = vld [vmem:[%s6148_s1 + $0x78] sm:$0xf] }
  0x22   :  { %3703 = vmatmul.mubr.bf16.vlgmr.msra.gmra.mrb[0].mxu0 %v214_v2  ;;  %v162_v2 = vadd.bf16 %v114_v51, %v66_v48  ;;  %v4625_v42 = vcombine.low %v182_v34, %v183_v35  ;;  %v119_v44 = vld [vmem:[%s6149_s2 + $0x34] sm:$0xf]  ;;  %v89_v46 = vld [vmem:[%s6148_s1 + $0x7c] sm:$0xf]  ;;  %v136_v48 = vld [vmem:[%s6149_s2 + $0x78] sm:$0xf]  ;;  %v166_v58 = vadd.bf16 %v118_v43, %v70_v40 }
  0x23   :  { %3706 = vmatprep.mubr.bf16.mxu0 %v215_v8  ;;  %v192_v8 = vadd.bf16 %v144_v0, %v96_v60  ;;  %v137_v49 = vld [vmem:[%s6149_s2 + $0x7c] sm:$0xf]  ;;  %v100_v52 = vld [vmem:[%s6148_s1 + $0xa8] sm:$0xf]  ;;  %v101_v53 = vld [vmem:[%s6148_s1 + $0xac] sm:$0xf]  ;;  %v167_v60 = vadd.bf16 %v119_v44, %v71_v41 }
  0x24   :  { %3421 = vmatpush3.bf16.xpose.msra.mxu1 %v4519_v47  ;;  %v4571_v11 = vcombine.low %v162_v2, %v163_v3  ;;  %v148_v55 = vld [vmem:[%s6149_s2 + $0xa8] sm:$0xf]  ;;  %v149_v56 = vld [vmem:[%s6149_s2 + $0xac] sm:$0xf]  ;;  %v185_v63 = vadd.bf16 %v137_v49, %v89_v46  ;;  %v102_v5 = vld [vmem:[%s6148_s1 + $0xb0] sm:$0xf] }
  0x25   :  { %3422 = vmatprep.subr.bf16.mxu1 %v4527_v50  ;;  %v4599_v24 = vcombine.low %v192_v8, %v193_v9  ;;  %v196_v0 = vadd.bf16 %v148_v55, %v100_v52  ;;  %v197_v1 = vadd.bf16 %v149_v56, %v101_v53  ;;  %v4663_v2 = vcombine.low %v166_v58, %v167_v60  ;;  %v103_v6 = vld [vmem:[%s6148_s1 + $0xb4] sm:$0xf]  ;;  %v150_v7 = vld [vmem:[%s6149_s2 + $0xb0] sm:$0xf]  ;;  %v104_v13 = vld [vmem:[%s6148_s1 + $0xb8] sm:$0xf] }
  0x26   :  { %v151_v8 = vld [vmem:[%s6149_s2 + $0xb4] sm:$0xf]  ;;  %v198_v9 = vadd.bf16 %v150_v7, %v102_v5  ;;  %v105_v15 = vld [vmem:[%s6148_s1 + $0xbc] sm:$0xf]  ;;  %v152_v16 = vld [vmem:[%s6149_s2 + $0xb8] sm:$0xf] }
  0x27   :  { %v199_v10 = vadd.bf16 %v151_v8, %v103_v6  ;;  %v153_v19 = vld [vmem:[%s6149_s2 + $0xbc] sm:$0xf]  ;;  %v200_v20 = vadd.bf16 %v152_v16, %v104_v13  ;;  %v72_v25 = vld [vmem:[%s6148_s1 + $0x38] sm:$0xf] }
  0x28   :  { %3719 = vmatpush3.bf16.xpose.msra.mxu0 %v4423_v61  ;;  %v201_v22 = vadd.bf16 %v153_v19, %v105_v15  ;;  %v121_v29 = vld [vmem:[%s6149_s2 + $0x3c] sm:$0xf] }
  0x29   :  { %3720 = vmatprep.subr.bf16.mxu0 %v4489_v28  ;;  %v4685_v12 = vcombine.low %v198_v9, %v199_v10 }
  0x2a   :  { %3707 = vmatmul.mubr.bf16.gmra.mrb[4].mxu0 %v216_v30  ;;  %v147_v30 = vld [vmem:[%s6149_s2 + $0xa4] sm:$0xf]  ;;  %v4701_v23 = vcombine.low %v200_v20, %v201_v22 }
  0x2b   :  { %3710 = vmatprep.mubr.bf16.mxu0 %v217_v38  ;;  %v195_v38 = vadd.bf16 %v147_v30, %v99_v27  ;;  %v120_v27 = vld [vmem:[%s6149_s2 + $0x38] sm:$0xf] }
  0x2c   :  { %3423 = vmatpush3.bf16.xpose.msra.mxu1 %v4571_v11  ;;  %v168_v30 = vadd.bf16 %v120_v27, %v72_v25 }
  0x2d   :  { %3424 = vmatprep.subr.bf16.mxu1 %v4579_v14  ;;  %v4645_v51 = vcombine.low %v194_v36, %v195_v38 }
  0x30   :  { %3721 = vmatpush3.bf16.xpose.msra.mxu0 %v4489_v28 }
  0x31   :  { %3722 = vmatprep.subr.bf16.mxu0 %v4547_v59 }
  0x32   :  { %3711 = vmatmul.mubr.bf16.gmra.mrb[8].mxu0 %v218_v62  ;;  %v184_v62 = vadd.bf16 %v136_v48, %v88_v45 }
  0x33   :  { %3714 = vmatprep.mubr.bf16.mxu0 %v219_v4  ;;  %v4667_v4 = vcombine.low %v196_v0, %v197_v1 }
  0x34   :  { %3425 = vmatpush3.bf16.xpose.msra.mxu1 %v4617_v39  ;;  %v4665_v3 = vcombine.low %v184_v62, %v185_v63 }
  0x35   :  { %3426 = vmatprep.subr.bf16.mxu1 %v4625_v42 }
  0x38   :  { %3723 = vmatpush3.bf16.xpose.msra.mxu0 %v4547_v59 }
  0x39   :  { %3724 = vmatprep.subr.bf16.mxu0 %v4599_v24 }
  0x3a   :  { %3715 = vmatmul.mubr.bf16.gmra.mrb[12].mxu0 %v220_v26  ;;  %v73_v26 = vld [vmem:[%s6148_s1 + $0x3c] sm:$0xf] }
  0x3b   :  { %v169_v31 = vadd.bf16 %v121_v29, %v73_v26 }
  0x3c   :  { %3427 = vmatpush3.bf16.xpose.msra.mxu1 %v4663_v2 }
  0x3d   :  { %3428 = vmatprep.subr.bf16.mxu1 %v4665_v3  ;;  %v4719_v32 = vcombine.low %v168_v30, %v169_v31 }
  0x40   :  { %3725 = vmatpush3.bf16.xpose.msra.mxu0 %v4599_v24 }
  0x41   :  { %3726 = vmatprep.subr.bf16.mxu0 %v4645_v51 }
  0x44   :  { %3429 = vmatpush3.bf16.xpose.msra.mxu1 %v4719_v32 }
  0x45   :  { %3750 = vmatprep.subr.bf16.mxu1 %v4423_v61 }
  0x48   :  { %3727 = vmatpush3.bf16.xpose.msra.mxu0 %v4645_v51 }
  0x49   :  { %3728 = vmatprep.subr.bf16.mxu0 %v4667_v4 }
  0x50   :  { %3729 = vmatpush3.bf16.xpose.msra.mxu0 %v4667_v4 }
  0x51   :  { %3730 = vmatprep.subr.bf16.mxu0 %v4685_v12 }
  0x58   :  { %3731 = vmatpush3.bf16.xpose.msra.mxu0 %v4685_v12 }
  0x59   :  { %3732 = vmatprep.subr.bf16.mxu0 %v4701_v23 }
  0x60   :  { %3733 = vmatpush3.bf16.xpose.msra.mxu0 %v4701_v23 }
  0x61   :  { %3462 = vmatprep.subr.bf16.mxu0 %v4326_v18 }
  0xf5   :  { %v3704_v18 = vpop.f32.mrb[0].mxu0 }
  0xf6   :  { %v319_v34 = vpop.f32.mrb[1].mxu0 }
  0xf7   :  { %v3705_v35 = vpop.f32.mrb[2].mxu0 }
  0xf8   :  { %v383_v36 = vpack.c.bf16 %v3705_v35, %v3704_v18  ;;  %v322_v38 = vpop.f32.mrb[3].mxu0 }
  0xf9   :  { %v382_v40 = vpack.c.bf16 %v322_v38, %v319_v34 }
  0xfb   :  { %3430 = vmatprep.mubr.bf16.mxu1 %v382_v40  ;;  %3734 = vmatprep.mubr.bf16.mxu0 %v382_v40 }
  0xfc   :  { %3431 = vmatmul.mubr.bf16.vlgmr.msra.gmra.mrb[0].mxu1 %v382_v40  ;;  %3735 = vmatmul.mubr.bf16.vlgmr.msra.gmra.mrb[16].mxu0 %v383_v36 }
  0xfd   :  { %3432 = vmatprep.mubr.bf16.mxu1 %v383_v36  ;;  %v3708_v41 = vpop.f32.mrb[4].mxu0  ;;  %3751 = vmatpush3.bf16.msra.mxu1 %v4423_v61 }
  0xfe   :  { %v335_v43 = vpop.f32.mrb[5].mxu0  ;;  %3752 = vmatprep.subr.bf16.mxu1 %v4489_v28  ;;  %3463 = vmatpush3.bf16.msra.mxu0 %v4359_v33 }
  0xff   :  { %v3709_v44 = vpop.f32.mrb[6].mxu0  ;;  %3464 = vmatprep.subr.bf16.mxu0 %v4370_v37 }
 0x100   :  { %v385_v45 = vpack.c.bf16 %v3709_v44, %v3708_v41  ;;  %v338_v46 = vpop.f32.mrb[7].mxu0 }
 0x101   :  { %v384_v48 = vpack.c.bf16 %v338_v46, %v335_v43  ;;  %3753 = vmatpush3.bf16.msra.mxu1 %v4489_v28 }
 0x102   :  { %3754 = vmatprep.subr.bf16.mxu1 %v4547_v59  ;;  %3465 = vmatpush3.bf16.msra.mxu0 %v4404_v54 }
 0x103   :  { %3738 = vmatprep.mubr.bf16.mxu0 %v384_v48  ;;  %3466 = vmatprep.subr.bf16.mxu0 %v4412_v57 }
 0x104   :  { %3433 = vmatmul.mubr.bf16.gmra.mrb[4].mxu1 %v383_v36  ;;  %3739 = vmatmul.mubr.bf16.gmra.mrb[20].mxu0 %v385_v45 }
 0x105   :  { %3434 = vmatprep.mubr.bf16.mxu1 %v384_v48  ;;  %v3712_v61 = vpop.f32.mrb[8].mxu0  ;;  %3755 = vmatpush3.bf16.msra.mxu1 %v4547_v59 }
 0x106   :  { %v351_v33 = vpop.f32.mrb[9].mxu0  ;;  %3756 = vmatprep.subr.bf16.mxu1 %v4599_v24  ;;  %3467 = vmatpush3.bf16.msra.mxu0 %v4461_v17 }
 0x107   :  { %v3713_v37 = vpop.f32.mrb[10].mxu0  ;;  %3468 = vmatprep.subr.bf16.mxu0 %v4469_v21 }
 0x108   :  { %v387_v28 = vpack.c.bf16 %v3713_v37, %v3712_v61  ;;  %v354_v49 = vpop.f32.mrb[11].mxu0 }
 0x109   :  { %v386_v54 = vpack.c.bf16 %v354_v49, %v351_v33  ;;  %3757 = vmatpush3.bf16.msra.mxu1 %v4599_v24 }
 0x10a   :  { %3758 = vmatprep.subr.bf16.mxu1 %v4645_v51  ;;  %3469 = vmatpush3.bf16.msra.mxu0 %v4519_v47 }
 0x10b   :  { %3742 = vmatprep.mubr.bf16.mxu0 %v386_v54  ;;  %3470 = vmatprep.subr.bf16.mxu0 %v4527_v50 }
 0x10c   :  { %3435 = vmatmul.mubr.bf16.gmra.mrb[8].mxu1 %v384_v48  ;;  %3743 = vmatmul.mubr.bf16.gmra.mrb[24].mxu0 %v387_v28 }
 0x10d   :  { %3436 = vmatprep.mubr.bf16.mxu1 %v385_v45  ;;  %v3716_v57 = vpop.f32.mrb[12].mxu0  ;;  %3759 = vmatpush3.bf16.msra.mxu1 %v4645_v51 }
 0x10e   :  { %v367_v17 = vpop.f32.mrb[13].mxu0  ;;  %3471 = vmatpush3.bf16.msra.mxu0 %v4571_v11  ;;  %3760 = vmatprep.subr.bf16.mxu1 %v4667_v4 }
 0x10f   :  { %v3717_v21 = vpop.f32.mrb[14].mxu0  ;;  %3472 = vmatprep.subr.bf16.mxu0 %v4579_v14 }
 0x110   :  { %v389_v59 = vpack.c.bf16 %v3717_v21, %v3716_v57  ;;  %v370_v24 = vpop.f32.mrb[15].mxu0 }
 0x111   :  { %v388_v47 = vpack.c.bf16 %v370_v24, %v367_v17  ;;  %3761 = vmatpush3.bf16.msra.mxu1 %v4667_v4 }
 0x112   :  { %3473 = vmatpush3.bf16.msra.mxu0 %v4617_v39  ;;  %3762 = vmatprep.subr.bf16.mxu1 %v4685_v12 }
 0x113   :  { %3746 = vmatprep.mubr.bf16.mxu0 %v388_v47  ;;  %3474 = vmatprep.subr.bf16.mxu0 %v4625_v42 }
 0x114   :  { %3437 = vmatmul.mubr.bf16.gmra.mrb[12].mxu1 %v385_v45  ;;  %3747 = vmatmul.mubr.bf16.gmra.mrb[28].mxu0 %v389_v59 }
 0x115   :  { %3438 = vmatprep.mubr.bf16.mxu1 %v386_v54  ;;  %3763 = vmatpush3.bf16.msra.mxu1 %v4685_v12 }
 0x116   :  { %3475 = vmatpush3.bf16.msra.mxu0 %v4663_v2  ;;  %3764 = vmatprep.subr.bf16.mxu1 %v4701_v23 }
 0x117   :  { %3476 = vmatprep.subr.bf16.mxu0 %v4665_v3 }
 0x119   :  { %3765 = vmatpush3.bf16.msra.mxu1 %v4701_v23 }
 0x11a   :  { %3477 = vmatpush3.bf16.msra.mxu0 %v4719_v32 }
 0x11c   :  { %3439 = vmatmul.mubr.bf16.gmra.mrb[16].mxu1 %v386_v54 }
 0x11d   :  { %3440 = vmatprep.mubr.bf16.mxu1 %v387_v28 }
 0x124   :  { %3441 = vmatmul.mubr.bf16.gmra.mrb[20].mxu1 %v387_v28 }
 0x125   :  { %3442 = vmatprep.mubr.bf16.mxu1 %v388_v47 }
 0x12c   :  { %3443 = vmatmul.mubr.bf16.gmra.mrb[24].mxu1 %v388_v47 }
 0x12d   :  { %3444 = vmatprep.mubr.bf16.mxu1 %v389_v59 }
 0x134   :  { %3445 = vmatmul.mubr.bf16.gmra.mrb[28].mxu1 %v389_v59 }
 0x1cf   :  { %v4753_v50 = vpop.f32.mrb[0].mxu1  ;;  %v4755_v11 = vpop.f32.mrb[16].mxu0 }
 0x1d0   :  { %v4757_v14 = vpop.f32.mrb[1].mxu1  ;;  %v4759_v39 = vpop.f32.mrb[17].mxu0 }
 0x1d1   :  { %v744_v42 = vmax.f32 %v4753_v50, %v4757_v14  ;;  %v4763_v51 = vpop.f32.mrb[2].mxu1  ;;  %v4765_v52 = vpop.f32.mrb[18].mxu0 }
 0x1d2   :  { %v4767_v53 = vpop.f32.mrb[3].mxu1  ;;  %v4769_v55 = vpop.f32.mrb[19].mxu0 }
 0x1d3   :  { %v748_v56 = vmax.f32 %v4763_v51, %v4767_v53  ;;  %v745_v58 = vmax.f32 %v744_v42, %v4759_v39 }
 0x1d5   :  { %746 = vmax.xlane.f32.xlu0 %v745_v58  ;;  %v749_v60 = vmax.f32 %v748_v56, %v4769_v55 }
 0x1d7   :  { %v4775_v62 = vpop.f32.mrb[4].mxu1  ;;  %v4777_v63 = vpop.f32.mrb[20].mxu0 }
 0x1d8   :  { %v4779_v0 = vpop.f32.mrb[5].mxu1  ;;  %v4781_v1 = vpop.f32.mrb[21].mxu0 }
 0x1d9   :  { %v752_v2 = vmax.f32 %v4775_v62, %v4779_v0  ;;  %v4785_v3 = vpop.f32.mrb[6].mxu1  ;;  %750 = vmax.xlane.f32.xlu0 %v749_v60  ;;  %v4787_v4 = vpop.f32.mrb[22].mxu0 }
 0x1da   :  { %v4789_v5 = vpop.f32.mrb[7].mxu1  ;;  %v4791_v6 = vpop.f32.mrb[23].mxu0 }
 0x1db   :  { %v756_v7 = vmax.f32 %v4785_v3, %v4789_v5  ;;  %v753_v8 = vmax.f32 %v752_v2, %v4755_v11 }
 0x1dd   :  { %754 = vmax.xlane.f32.xlu1 %v753_v8  ;;  %v757_v9 = vmax.f32 %v756_v7, %v4765_v52 }
 0x1df   :  { %v4797_v10 = vpop.f32.mrb[8].mxu1  ;;  %v4799_v12 = vpop.f32.mrb[24].mxu0 }
 0x1e0   :  { %v4801_v13 = vpop.f32.mrb[9].mxu1  ;;  %v4803_v15 = vpop.f32.mrb[25].mxu0 }
 0x1e1   :  { %v760_v16 = vmax.f32 %v4797_v10, %v4801_v13  ;;  %v4807_v19 = vpop.f32.mrb[10].mxu1  ;;  %758 = vmax.xlane.f32.xlu1 %v757_v9  ;;  %v4809_v20 = vpop.f32.mrb[26].mxu0 }
 0x1e2   :  { %v4811_v22 = vpop.f32.mrb[11].mxu1  ;;  %v4813_v23 = vpop.f32.mrb[27].mxu0 }
 0x1e3   :  { %v764_v25 = vmax.f32 %v4807_v19, %v4811_v22  ;;  %v761_v26 = vmax.f32 %v760_v16, %v4781_v1 }
 0x1e5   :  { %762 = vmax.xlane.f32.xlu0 %v761_v26  ;;  %v765_v27 = vmax.f32 %v764_v25, %v4791_v6 }
 0x1e7   :  { %v4819_v29 = vpop.f32.mrb[12].mxu1  ;;  %766 = vmax.xlane.f32.xlu1 %v765_v27  ;;  %v4821_v30 = vpop.f32.mrb[28].mxu0 }
 0x1e8   :  { %v4823_v31 = vpop.f32.mrb[13].mxu1  ;;  %v4825_v32 = vpop.f32.mrb[29].mxu0 }
 0x1e9   :  { %v768_v18 = vmax.f32 %v4819_v29, %v4823_v31  ;;  %v4829_v34 = vpop.f32.mrb[14].mxu1  ;;  %v4831_v35 = vpop.f32.mrb[30].mxu0 }
 0x1ea   :  { %v4833_v36 = vpop.f32.mrb[15].mxu1  ;;  %v4835_v38 = vpop.f32.mrb[31].mxu0 }
 0x1eb   :  { %v772_v40 = vmax.f32 %v4829_v34, %v4833_v36  ;;  %v769_v41 = vmax.f32 %v768_v18, %v4777_v63 }
 0x1ed   :  { %770 = vmax.xlane.f32.xlu0 %v769_v41  ;;  %v773_v43 = vmax.f32 %v772_v40, %v4787_v4 }
 0x1ef   :  { %v4841_v44 = vpop.f32.mrb[16].mxu1  ;;  %774 = vmax.xlane.f32.xlu1 %v773_v43 }
 0x1f0   :  { %v4843_v45 = vpop.f32.mrb[17].mxu1 }
 0x1f1   :  { %v776_v46 = vmax.f32 %v4841_v44, %v4843_v45  ;;  %v4847_v48 = vpop.f32.mrb[18].mxu1 }
 0x1f2   :  { %v4849_v61 = vpop.f32.mrb[19].mxu1 }
 0x1f3   :  { %v780_v33 = vmax.f32 %v4847_v48, %v4849_v61  ;;  %v777_v37 = vmax.f32 %v776_v46, %v4803_v15 }
 0x1f5   :  { %778 = vmax.xlane.f32.xlu0 %v777_v37  ;;  %v781_v28 = vmax.f32 %v780_v33, %v4813_v23 }
 0x1f7   :  { %v4855_v49 = vpop.f32.mrb[20].mxu1  ;;  %782 = vmax.xlane.f32.xlu1 %v781_v28 }
 0x1f8   :  { %v4857_v54 = vpop.f32.mrb[21].mxu1 }
 0x1f9   :  { %v784_v57 = vmax.f32 %v4855_v49, %v4857_v54  ;;  %v4861_v17 = vpop.f32.mrb[22].mxu1 }
 0x1fa   :  { %v4863_v21 = vpop.f32.mrb[23].mxu1 }
 0x1fb   :  { %v788_v59 = vmax.f32 %v4861_v17, %v4863_v21  ;;  %v785_v24 = vmax.f32 %v784_v57, %v4799_v12 }
 0x1fd   :  { %786 = vmax.xlane.f32.xlu0 %v785_v24  ;;  %v789_v47 = vmax.f32 %v788_v59, %v4809_v20 }
 0x1ff   :  { %790 = vmax.xlane.f32.xlu1 %v789_v47  ;;  %v4869_v42 = vpop.f32.mrb[24].mxu1 }
 0x200   :  { %v4871_v56 = vpop.f32.mrb[25].mxu1 }
 0x201   :  { %v792_v58 = vmax.f32 %v4869_v42, %v4871_v56  ;;  %v4875_v60 = vpop.f32.mrb[26].mxu1 }
 0x202   :  { %v4877_v2 = vpop.f32.mrb[27].mxu1 }
 0x203   :  { %v796_v7 = vmax.f32 %v4875_v60, %v4877_v2  ;;  %v793_v8 = vmax.f32 %v792_v58, %v4825_v32 }
 0x205   :  { %794 = vmax.xlane.f32.xlu0 %v793_v8  ;;  %v797_v9 = vmax.f32 %v796_v7, %v4835_v38 }
 0x207   :  { %798 = vmax.xlane.f32.xlu1 %v797_v9  ;;  %v4883_v16 = vpop.f32.mrb[28].mxu1 }
 0x208   :  { %v4885_v25 = vpop.f32.mrb[29].mxu1 }
 0x209   :  { %v800_v26 = vmax.f32 %v4883_v16, %v4885_v25  ;;  %v4889_v27 = vpop.f32.mrb[30].mxu1 }
 0x20a   :  { %v4891_v18 = vpop.f32.mrb[31].mxu1 }
 0x20b   :  { %v804_v40 = vmax.f32 %v4889_v27, %v4891_v18  ;;  %v801_v41 = vmax.f32 %v800_v26, %v4821_v30 }
 0x20d   :  { %802 = vmax.xlane.f32.xlu0 %v801_v41  ;;  %v805_v43 = vmax.f32 %v804_v40, %v4831_v35 }
 0x20f   :  { %806 = vmax.xlane.f32.xlu1 %v805_v43 }
 0x262   :  { %v747_v46 = vpop.xlane.xlu0 %746 }
 0x263   :  { %v808_v33 = vsub.f32 %v4753_v50, %v747_v46  ;;  %v809_v37 = vsub.f32 %v4757_v14, %v747_v46  ;;  %v810_v28 = vsub.f32 %v4759_v39, %v747_v46 }
 0x265   :  { %v856_v57 = vmul.f32 1.442695, %v808_v33  ;;  %v858_v59 = vmul.f32 1.442695, %v809_v37  ;;  %v860_v24 = vmul.f32 1.442695, %v810_v28 }
 0x266   :  { %v751_v47 = vpop.xlane.xlu0 %750 }
 0x267   :  { %3911 = vpow2.f32 %v856_v57  ;;  %v811_v58 = vsub.f32 %v4763_v51, %v751_v47  ;;  %v812_v7 = vsub.f32 %v4767_v53, %v751_v47  ;;  %v813_v8 = vsub.f32 %v4769_v55, %v751_v47 }
 0x268   :  { %3913 = vpow2.f32 %v858_v59 }
 0x269   :  { %v862_v9 = vmul.f32 1.442695, %v811_v58  ;;  %v864_v26 = vmul.f32 1.442695, %v812_v7  ;;  %v866_v40 = vmul.f32 1.442695, %v813_v8  ;;  %3915 = vpow2.f32 %v860_v24 }
 0x26a   :  { %v755_v50 = vpop.xlane.xlu1 %754 }
 0x26b   :  { %3917 = vpow2.f32 %v862_v9  ;;  %v814_v14 = vsub.f32 %v4775_v62, %v755_v50  ;;  %v815_v39 = vsub.f32 %v4779_v0, %v755_v50  ;;  %v816_v41 = vsub.f32 %v4755_v11, %v755_v50 }
 0x26c   :  { %3919 = vpow2.f32 %v864_v26 }
 0x26d   :  { %3921 = vpow2.f32 %v866_v40  ;;  %v868_v51 = vmul.f32 1.442695, %v814_v14  ;;  %v870_v43 = vmul.f32 1.442695, %v815_v39  ;;  %v872_v53 = vmul.f32 1.442695, %v816_v41 }
 0x26e   :  { %v759_v46 = vpop.xlane.xlu1 %758 }
 0x26f   :  { %3923 = vpow2.f32 %v868_v51  ;;  %v817_v55 = vsub.f32 %v4785_v3, %v759_v46  ;;  %v818_v33 = vsub.f32 %v4789_v5, %v759_v46  ;;  %v819_v37 = vsub.f32 %v4765_v52, %v759_v46 }
 0x270   :  { %3925 = vpow2.f32 %v870_v43 }
 0x271   :  { %v3912_v28 = vpop.eup %3911  ;;  %v874_v62 = vmul.f32 1.442695, %v817_v55  ;;  %v876_v57 = vmul.f32 1.442695, %v818_v33  ;;  %v878_v0 = vmul.f32 1.442695, %v819_v37  ;;  %3927 = vpow2.f32 %v872_v53 }
 0x272   :  { %v3914_v59 = vpop.eup %3913  ;;  %v763_v11 = vpop.xlane.xlu0 %762 }
 0x273   :  { %3929 = vpow2.f32 %v874_v62  ;;  %v820_v24 = vsub.f32 %v4797_v10, %v763_v11  ;;  %v821_v47 = vsub.f32 %v4801_v13, %v763_v11  ;;  %v822_v58 = vsub.f32 %v4781_v1, %v763_v11  ;;  %v3916_v3 = vpop.eup %3915 }
 0x274   :  { %3931 = vpow2.f32 %v876_v57  ;;  %v767_v5 = vpop.xlane.xlu1 %766  ;;  %v952_v7 = vadd.f32 %v3914_v59, %v3912_v28 }
 0x275   :  { %v3918_v52 = vpop.eup %3917  ;;  %3933 = vpow2.f32 %v878_v0  ;;  %v880_v8 = vmul.f32 1.442695, %v820_v24  ;;  %v882_v9 = vmul.f32 1.442695, %v821_v47  ;;  %v884_v26 = vmul.f32 1.442695, %v822_v58 }
 0x276   :  { %v3920_v40 = vpop.eup %3919  ;;  %v823_v50 = vsub.f32 %v4807_v19, %v767_v5  ;;  %v824_v14 = vsub.f32 %v4811_v22, %v767_v5  ;;  %v825_v10 = vsub.f32 %v4791_v6, %v767_v5  ;;  %v953_v39 = vadd.f32 %v3916_v3, %v952_v7 }
 0x277   :  { %v3922_v13 = vpop.eup %3921  ;;  %3935 = vpow2.f32 %v880_v8  ;;  %v1017_v1 = vpack.c.bf16 %v3920_v40, %v3914_v59  ;;  %v1016_v41 = vpack.c.bf16 %v3918_v52, %v3912_v28  ;;  %v956_v51 = vadd.f32 %v3920_v40, %v3918_v52 }
 0x278   :  { %3937 = vpow2.f32 %v882_v9  ;;  %v886_v43 = vmul.f32 1.442695, %v823_v50  ;;  %v888_v53 = vmul.f32 1.442695, %v824_v14  ;;  %v890_v46 = vmul.f32 1.442695, %v825_v10  ;;  %954 = vadd.xlane.f32.xlu0 %v953_v39 }
 0x279   :  { %v3924_v55 = vpop.eup %3923  ;;  %3939 = vpow2.f32 %v884_v26  ;;  %1072 = vmatprep.mubr.bf16.mxu0 %v1017_v1  ;;  %v1018_v33 = vpack.c.bf16 %v3922_v13, %v3916_v3  ;;  %v957_v19 = vadd.f32 %v3922_v13, %v956_v51 }
 0x27a   :  { %v3926_v37 = vpop.eup %3925  ;;  %3941 = vpow2.f32 %v886_v43  ;;  %1073 = vmatmul.mubr.bf16.vlgmr.msra.gmra.mrb[32].mxu0 %v1016_v41  ;;  %v771_v6 = vpop.xlane.xlu0 %770 }
 0x27b   :  { %3943 = vpow2.f32 %v888_v53  ;;  %3766 = vmatprep.mubr.bf16.mxu1 %v1018_v33  ;;  %v826_v22 = vsub.f32 %v4819_v29, %v771_v6  ;;  %v827_v28 = vsub.f32 %v4823_v31, %v771_v6  ;;  %v828_v62 = vsub.f32 %v4777_v63, %v771_v6  ;;  %958 = vadd.xlane.f32.xlu1 %v957_v19  ;;  %v3928_v57 = vpop.eup %3927 }
 0x27c   :  { %3945 = vpow2.f32 %v890_v46  ;;  %v775_v0 = vpop.xlane.xlu1 %774  ;;  %v960_v59 = vadd.f32 %v3926_v37, %v3924_v55 }
 0x27d   :  { %v3930_v11 = vpop.eup %3929  ;;  %v892_v24 = vmul.f32 1.442695, %v826_v22  ;;  %v894_v47 = vmul.f32 1.442695, %v827_v28  ;;  %v896_v58 = vmul.f32 1.442695, %v828_v62  ;;  %v829_v3 = vsub.f32 %v4829_v34, %v775_v0 }
 0x27e   :  { %v3932_v5 = vpop.eup %3931  ;;  %v830_v7 = vsub.f32 %v4833_v36, %v775_v0  ;;  %v831_v29 = vsub.f32 %v4787_v4, %v775_v0  ;;  %v961_v52 = vadd.f32 %v3928_v57, %v960_v59  ;;  %v1019_v31 = vpack.c.bf16 %v3930_v11, %v3924_v55 }
 0x27f   :  { %v3934_v8 = vpop.eup %3933  ;;  %3947 = vpow2.f32 %v892_v24  ;;  %v898_v63 = vmul.f32 1.442695, %v829_v3  ;;  %v1020_v9 = vpack.c.bf16 %v3932_v5, %v3926_v37  ;;  %v964_v26 = vadd.f32 %v3932_v5, %v3930_v11 }
 0x280   :  { %3949 = vpow2.f32 %v894_v47  ;;  %v900_v40 = vmul.f32 1.442695, %v830_v7  ;;  %v902_v50 = vmul.f32 1.442695, %v831_v29  ;;  %962 = vadd.xlane.f32.xlu0 %v961_v52  ;;  %v1021_v14 = vpack.c.bf16 %v3934_v8, %v3928_v57 }
 0x281   :  { %v3936_v10 = vpop.eup %3935  ;;  %3951 = vpow2.f32 %v896_v58  ;;  %1080 = vmatprep.mubr.bf16.mxu0 %v1020_v9  ;;  %v965_v34 = vadd.f32 %v3934_v8, %v964_v26 }
 0x282   :  { %v3938_v39 = vpop.eup %3937  ;;  %3953 = vpow2.f32 %v898_v63  ;;  %3767 = vmatmul.mubr.bf16.vlgmr.msra.gmra.mrb[32].mxu1 %v1021_v14  ;;  %1081 = vmatmul.mubr.bf16.gmra.mrb[36].mxu0 %v1019_v31  ;;  %v779_v4 = vpop.xlane.xlu0 %778 }
 0x283   :  { %v3940_v36 = vpop.eup %3939  ;;  %3955 = vpow2.f32 %v900_v40  ;;  %v832_v13 = vsub.f32 %v4841_v44, %v779_v4  ;;  %v833_v1 = vsub.f32 %v4843_v45, %v779_v4  ;;  %v834_v41 = vsub.f32 %v4803_v15, %v779_v4  ;;  %966 = vadd.xlane.f32.xlu1 %v965_v34 }
 0x284   :  { %v3942_v51 = vpop.eup %3941  ;;  %3957 = vpow2.f32 %v902_v50  ;;  %v783_v43 = vpop.xlane.xlu1 %782  ;;  %v968_v53 = vadd.f32 %v3938_v39, %v3936_v10 }
 0x285   :  { %v3944_v46 = vpop.eup %3943  ;;  %v904_v55 = vmul.f32 1.442695, %v832_v13  ;;  %v906_v33 = vmul.f32 1.442695, %v833_v1  ;;  %v908_v19 = vmul.f32 1.442695, %v834_v41  ;;  %v835_v37 = vsub.f32 %v4847_v48, %v783_v43 }
 0x286   :  { %v3946_v6 = vpop.eup %3945  ;;  %v836_v22 = vsub.f32 %v4849_v61, %v783_v43  ;;  %v837_v44 = vsub.f32 %v4813_v23, %v783_v43  ;;  %v1023_v28 = vpack.c.bf16 %v3944_v46, %v3938_v39  ;;  %v969_v45 = vadd.f32 %v3940_v36, %v968_v53 }
 0x287   :  { %3959 = vpow2.f32 %v904_v55  ;;  %v910_v15 = vmul.f32 1.442695, %v835_v37  ;;  %v1024_v62 = vpack.c.bf16 %v3946_v6, %v3940_v36  ;;  %v972_v57 = vadd.f32 %v3944_v46, %v3942_v51 }
 0x288   :  { %3961 = vpow2.f32 %v906_v33  ;;  %v912_v0 = vmul.f32 1.442695, %v836_v22  ;;  %v914_v59 = vmul.f32 1.442695, %v837_v44  ;;  %1088 = vmatprep.mubr.bf16.mxu0 %v1023_v28  ;;  %970 = vadd.xlane.f32.xlu0 %v969_v45  ;;  %v1022_v11 = vpack.c.bf16 %v3942_v51, %v3936_v10 }
 0x289   :  { %v3948_v24 = vpop.eup %3947  ;;  %3963 = vpow2.f32 %v908_v19  ;;  %3770 = vmatprep.mubr.bf16.mxu1 %v1024_v62  ;;  %v973_v48 = vadd.f32 %v3946_v6, %v972_v57 }
 0x28a   :  { %v3950_v47 = vpop.eup %3949  ;;  %3965 = vpow2.f32 %v910_v15  ;;  %1089 = vmatmul.mubr.bf16.gmra.mrb[40].mxu0 %v1022_v11  ;;  %v787_v23 = vpop.xlane.xlu0 %786 }
 0x28b   :  { %v3952_v61 = vpop.eup %3951  ;;  %3967 = vpow2.f32 %v912_v0  ;;  %974 = vadd.xlane.f32.xlu1 %v973_v48  ;;  %v838_v58 = vsub.f32 %v4855_v49, %v787_v23  ;;  %v839_v3 = vsub.f32 %v4857_v54, %v787_v23  ;;  %v840_v5 = vsub.f32 %v4799_v12, %v787_v23 }
 0x28c   :  { %v3954_v7 = vpop.eup %3953  ;;  %3969 = vpow2.f32 %v914_v59  ;;  %v791_v29 = vpop.xlane.xlu1 %790  ;;  %v976_v52 = vadd.f32 %v3950_v47, %v3948_v24 }
 0x28d   :  { %v3956_v31 = vpop.eup %3955  ;;  %v916_v8 = vmul.f32 1.442695, %v838_v58  ;;  %v918_v63 = vmul.f32 1.442695, %v839_v3  ;;  %v920_v9 = vmul.f32 1.442695, %v840_v5  ;;  %v841_v26 = vsub.f32 %v4861_v17, %v791_v29 }
 0x28e   :  { %v3958_v40 = vpop.eup %3957  ;;  %v842_v50 = vsub.f32 %v4863_v21, %v791_v29  ;;  %v843_v14 = vsub.f32 %v4809_v20, %v791_v29  ;;  %v1026_v49 = vpack.c.bf16 %v3956_v31, %v3950_v47  ;;  %v977_v10 = vadd.f32 %v3952_v61, %v976_v52 }
 0x28f   :  { %3971 = vpow2.f32 %v916_v8  ;;  %v922_v54 = vmul.f32 1.442695, %v841_v26  ;;  %v1027_v12 = vpack.c.bf16 %v3958_v40, %v3952_v61  ;;  %v980_v34 = vadd.f32 %v3956_v31, %v3954_v7 }
 0x290   :  { %3973 = vpow2.f32 %v918_v63  ;;  %v924_v39 = vmul.f32 1.442695, %v842_v50  ;;  %v926_v4 = vmul.f32 1.442695, %v843_v14  ;;  %1096 = vmatprep.mubr.bf16.mxu0 %v1026_v49  ;;  %978 = vadd.xlane.f32.xlu0 %v977_v10  ;;  %v1025_v36 = vpack.c.bf16 %v3954_v7, %v3948_v24 }
 0x291   :  { %v3960_v13 = vpop.eup %3959  ;;  %3975 = vpow2.f32 %v920_v9  ;;  %3771 = vmatmul.mubr.bf16.gmra.mrb[36].mxu1 %v1027_v12  ;;  %v981_v17 = vadd.f32 %v3958_v40, %v980_v34 }
 0x292   :  { %v3962_v1 = vpop.eup %3961  ;;  %3977 = vpow2.f32 %v922_v54  ;;  %1097 = vmatmul.mubr.bf16.gmra.mrb[44].mxu0 %v1025_v36  ;;  %v795_v20 = vpop.xlane.xlu0 %794 }
 0x293   :  { %v3964_v21 = vpop.eup %3963  ;;  %3979 = vpow2.f32 %v924_v39  ;;  %982 = vadd.xlane.f32.xlu1 %v981_v17  ;;  %v844_v41 = vsub.f32 %v4869_v42, %v795_v20  ;;  %v845_v51 = vsub.f32 %v4871_v56, %v795_v20  ;;  %v846_v43 = vsub.f32 %v4825_v32, %v795_v20 }
 0x294   :  { %v3966_v53 = vpop.eup %3965  ;;  %3981 = vpow2.f32 %v926_v4  ;;  %v799_v46 = vpop.xlane.xlu1 %798  ;;  %v984_v55 = vadd.f32 %v3962_v1, %v3960_v13 }
 0x295   :  { %v3968_v33 = vpop.eup %3967  ;;  %v928_v19 = vmul.f32 1.442695, %v844_v41  ;;  %v930_v37 = vmul.f32 1.442695, %v845_v51  ;;  %v932_v6 = vmul.f32 1.442695, %v846_v43  ;;  %v847_v22 = vsub.f32 %v4875_v60, %v799_v46 }
 0x296   :  { %v3970_v44 = vpop.eup %3969  ;;  %v848_v28 = vsub.f32 %v4877_v2, %v799_v46  ;;  %v849_v45 = vsub.f32 %v4835_v38, %v799_v46  ;;  %v1029_v42 = vpack.c.bf16 %v3968_v33, %v3962_v1  ;;  %v985_v15 = vadd.f32 %v3964_v21, %v984_v55 }
 0x297   :  { %3983 = vpow2.f32 %v928_v19  ;;  %v934_v56 = vmul.f32 1.442695, %v847_v22  ;;  %v1030_v32 = vpack.c.bf16 %v3970_v44, %v3964_v21  ;;  %v988_v62 = vadd.f32 %v3968_v33, %v3966_v53 }
 0x298   :  { %3985 = vpow2.f32 %v930_v37  ;;  %v936_v57 = vmul.f32 1.442695, %v848_v28  ;;  %v938_v0 = vmul.f32 1.442695, %v849_v45  ;;  %1104 = vmatprep.mubr.bf16.mxu0 %v1029_v42  ;;  %986 = vadd.xlane.f32.xlu0 %v985_v15  ;;  %v1028_v59 = vpack.c.bf16 %v3966_v53, %v3960_v13  ;;  %v3823_v28 = vld [vmem:[%s6150_s5] sm:$0xff]   ;;  %v3824_v45 = vld [vmem:[%s6150_s5 + $0x8] sm:$0xff]  }
 0x299   :  { %v3972_v11 = vpop.eup %3971  ;;  %3987 = vpow2.f32 %v932_v6  ;;  %3774 = vmatprep.mubr.bf16.mxu1 %v1030_v32  ;;  %v989_v60 = vadd.f32 %v3970_v44, %v988_v62  ;;  %3782 = vmatprep.subr.bf16.mxu1 %v3823_v28  ;;  %v3825_v42 = vld [vmem:[%s6150_s5 + $0x10] sm:$0xff]   ;;  %v3826_v15 = vld [vmem:[%s6150_s5 + $0x18] sm:$0xff]   ;;  %v3828_v32 = vld [vmem:[%s6150_s5 + $0x28] sm:$0xff]  }
 0x29a   :  { %v3974_v24 = vpop.eup %3973  ;;  %3989 = vpow2.f32 %v934_v56  ;;  %1105 = vmatmul.mubr.bf16.gmra.mrb[48].mxu0 %v1028_v59  ;;  %v803_v38 = vpop.xlane.xlu0 %802  ;;  %3783 = vmatpush3.bf16.msra.mxu1 %v3823_v28  ;;  %v3827_v56 = vld [vmem:[%s6150_s5 + $0x20] sm:$0xff]   ;;  %v3829_v62 = vld [vmem:[%s6150_s5 + $0x30] sm:$0xff]  }
 0x29b   :  { %v3976_v2 = vpop.eup %3975  ;;  %3991 = vpow2.f32 %v936_v57  ;;  %990 = vadd.xlane.f32.xlu1 %v989_v60  ;;  %v850_v48 = vsub.f32 %v4883_v16, %v803_v38  ;;  %v851_v47 = vsub.f32 %v4885_v25, %v803_v38  ;;  %v852_v23 = vsub.f32 %v4821_v30, %v803_v38  ;;  %3784 = vmatprep.subr.bf16.mxu1 %v3824_v45  ;;  %v3830_v57 = vld [vmem:[%s6150_s5 + $0x38] sm:$0xff]  }
 0x29c   :  { %v3978_v61 = vpop.eup %3977  ;;  %3993 = vpow2.f32 %v938_v0  ;;  %v807_v58 = vpop.xlane.xlu1 %806  ;;  %v992_v3 = vadd.f32 %v3974_v24, %v3972_v11 }
 0x29d   :  { %v3980_v5 = vpop.eup %3979  ;;  %v940_v7 = vmul.f32 1.442695, %v850_v48  ;;  %v942_v29 = vmul.f32 1.442695, %v851_v47  ;;  %v944_v52 = vmul.f32 1.442695, %v852_v23  ;;  %v853_v31 = vsub.f32 %v4889_v27, %v807_v58 }
 0x29e   :  { %v3982_v8 = vpop.eup %3981  ;;  %v854_v63 = vsub.f32 %v4891_v18, %v807_v58  ;;  %v855_v9 = vsub.f32 %v4831_v35, %v807_v58  ;;  %v1032_v16 = vpack.c.bf16 %v3980_v5, %v3974_v24  ;;  %v993_v26 = vadd.f32 %v3976_v2, %v992_v3  ;;  %3785 = vmatpush3.bf16.msra.mxu1 %v3824_v45 }
 0x29f   :  { %3995 = vpow2.f32 %v940_v7  ;;  %v946_v25 = vmul.f32 1.442695, %v853_v31  ;;  %v1033_v30 = vpack.c.bf16 %v3982_v8, %v3976_v2  ;;  %v996_v40 = vadd.f32 %v3980_v5, %v3978_v61  ;;  %3786 = vmatprep.subr.bf16.mxu1 %v3825_v42 }
 0x2a0   :  { %3997 = vpow2.f32 %v942_v29  ;;  %v948_v50 = vmul.f32 1.442695, %v854_v63  ;;  %v950_v14 = vmul.f32 1.442695, %v855_v9  ;;  %1112 = vmatprep.mubr.bf16.mxu0 %v1032_v16  ;;  %994 = vadd.xlane.f32.xlu0 %v993_v26  ;;  %v1031_v49 = vpack.c.bf16 %v3978_v61, %v3972_v11 }
 0x2a1   :  { %v3984_v10 = vpop.eup %3983  ;;  %3999 = vpow2.f32 %v944_v52  ;;  %3775 = vmatmul.mubr.bf16.gmra.mrb[40].mxu1 %v1033_v30  ;;  %v997_v27 = vadd.f32 %v3982_v8, %v996_v40 }
 0x2a2   :  { %v3986_v54 = vpop.eup %3985  ;;  %4001 = vpow2.f32 %v946_v25  ;;  %1113 = vmatmul.mubr.bf16.gmra.mrb[52].mxu0 %v1031_v49  ;;  %3787 = vmatpush3.bf16.msra.mxu1 %v3825_v42 }
 0x2a3   :  { %v3988_v35 = vpop.eup %3987  ;;  %4003 = vpow2.f32 %v948_v50  ;;  %998 = vadd.xlane.f32.xlu1 %v997_v27  ;;  %v1000_v18 = vadd.f32 %v3986_v54, %v3984_v10  ;;  %3788 = vmatprep.subr.bf16.mxu1 %v3826_v15 }
 0x2a4   :  { %v3990_v12 = vpop.eup %3989  ;;  %4005 = vpow2.f32 %v950_v14 }
 0x2a5   :  { %v3992_v34 = vpop.eup %3991  ;;  %v1001_v39 = vadd.f32 %v3988_v35, %v1000_v18  ;;  %v1034_v4 = vpack.c.bf16 %v3990_v12, %v3984_v10 }
 0x2a6   :  { %v3994_v36 = vpop.eup %3993  ;;  %v1035_v13 = vpack.c.bf16 %v3992_v34, %v3986_v54  ;;  %v1004_v17 = vadd.f32 %v3992_v34, %v3990_v12  ;;  %3789 = vmatpush3.bf16.msra.mxu1 %v3826_v15 }
 0x2a7   :  { %v1036_v1 = vpack.c.bf16 %v3994_v36, %v3988_v35  ;;  %1002 = vadd.xlane.f32.xlu0 %v1001_v39  ;;  %3790 = vmatprep.subr.bf16.mxu1 %v3827_v56 }
 0x2a8   :  { %1120 = vmatprep.mubr.bf16.mxu0 %v1035_v13  ;;  %v1005_v20 = vadd.f32 %v3994_v36, %v1004_v17 }
 0x2a9   :  { %v3996_v21 = vpop.eup %3995  ;;  %3778 = vmatprep.mubr.bf16.mxu1 %v1036_v1 }
 0x2aa   :  { %v3998_v41 = vpop.eup %3997  ;;  %1006 = vadd.xlane.f32.xlu1 %v1005_v20  ;;  %1121 = vmatmul.mubr.bf16.gmra.mrb[56].mxu0 %v1034_v4 }
 0x2ab   :  { %v4000_v51 = vpop.eup %3999  ;;  %v1008_v43 = vadd.f32 %v3998_v41, %v3996_v21  ;;  %3791 = vmatpush3.bf16.msra.mxu1 %v3827_v56 }
 0x2ac   :  { %v4002_v53 = vpop.eup %4001  ;;  %3792 = vmatprep.subr.bf16.mxu1 %v3828_v32 }
 0x2ad   :  { %v4004_v46 = vpop.eup %4003  ;;  %v1009_v55 = vadd.f32 %v4000_v51, %v1008_v43  ;;  %v1037_v33 = vpack.c.bf16 %v4002_v53, %v3996_v21 }
 0x2ae   :  { %v4006_v19 = vpop.eup %4005  ;;  %v1038_v37 = vpack.c.bf16 %v4004_v46, %v3998_v41  ;;  %v1012_v6 = vadd.f32 %v4004_v46, %v4002_v53 }
 0x2af   :  { %1010 = vadd.xlane.f32.xlu0 %v1009_v55  ;;  %v1039_v22 = vpack.c.bf16 %v4006_v19, %v4000_v51  ;;  %3793 = vmatpush3.bf16.msra.mxu1 %v3828_v32 }
 0x2b0   :  { %1128 = vmatprep.mubr.bf16.mxu0 %v1038_v37  ;;  %v1013_v44 = vadd.f32 %v4006_v19, %v1012_v6  ;;  %3794 = vmatprep.subr.bf16.mxu1 %v3829_v62 }
 0x2b1   :  { %3779 = vmatmul.mubr.bf16.gmra.mrb[44].mxu1 %v1039_v22 }
 0x2b2   :  { %1014 = vadd.xlane.f32.xlu1 %v1013_v44  ;;  %1129 = vmatmul.mubr.bf16.gmra.mrb[60].mxu0 %v1037_v33 }
 0x2b3   :  { %3795 = vmatpush3.bf16.msra.mxu1 %v3829_v62 }
 0x2b4   :  { %3796 = vmatprep.subr.bf16.mxu1 %v3830_v57 }
 0x2b7   :  { %3797 = vmatpush3.bf16.msra.mxu1 %v3830_v57 }
 0x34d   :  { %v3478_v0 = vpop.f32.mrb[32].mxu0 }
 0x34e   :  { %v3479_v59 = vpop.f32.mrb[33].mxu0 }
 0x34f   :  { %v3480_v11 = vadd.f32 %v3479_v59, %v3478_v0  ;;  %v3481_v60 = vpop.f32.mrb[34].mxu0 }
 0x350   :  { %v3482_v24 = vpop.f32.mrb[35].mxu0 }
 0x351   :  { %v3483_v38 = vadd.f32 %v3482_v24, %v3481_v60 }
 0x355   :  { %v3768_v2 = vpop.f32.mrb[32].mxu1  ;;  %v3484_v48 = vpop.f32.mrb[36].mxu0 }
 0x356   :  { %v1171_v47 = vpop.f32.mrb[33].mxu1  ;;  %v3485_v23 = vpop.f32.mrb[37].mxu0 }
 0x357   :  { %v1172_v61 = vadd.f32 %v3480_v11, %v1171_v47  ;;  %v3486_v58 = vadd.f32 %v3485_v23, %v3484_v48  ;;  %v3769_v3 = vpop.f32.mrb[34].mxu1  ;;  %v3487_v5 = vpop.f32.mrb[38].mxu0 }
 0x358   :  { %v1174_v7 = vpop.f32.mrb[35].mxu1  ;;  %v3488_v29 = vpop.f32.mrb[39].mxu0 }
 0x359   :  { %v1180_v52 = vadd.f32 %v3768_v2, %v3486_v58  ;;  %v1175_v31 = vadd.f32 %v3483_v38, %v1174_v7  ;;  %v3489_v8 = vadd.f32 %v3488_v29, %v3487_v5 }
 0x35b   :  { %v1234_v63 = vpack.c.bf16 %v1175_v31, %v1172_v61  ;;  %v1183_v9 = vadd.f32 %v3769_v3, %v3489_v8 }
 0x35d   :  { %v1235_v16 = vpack.c.bf16 %v1183_v9, %v1180_v52  ;;  %3798 = vmatprep.mubr.bf16.mxu1 %v1234_v63  ;;  %v3490_v26 = vpop.f32.mrb[40].mxu0 }
 0x35e   :  { %v3491_v25 = vpop.f32.mrb[41].mxu0 }
 0x35f   :  { %v3492_v30 = vadd.f32 %v3491_v25, %v3490_v26  ;;  %v3493_v40 = vpop.f32.mrb[42].mxu0  ;;  %3799 = vmatmul.mubr.bf16.vlgmr.msra.gmra.mrb[48].mxu1 %v1235_v16 }
 0x360   :  { %v3494_v50 = vpop.f32.mrb[43].mxu0 }
 0x361   :  { %v3495_v14 = vadd.f32 %v3494_v50, %v3493_v40  ;;  %v3833_v40 = vld [vmem:[%s6151_s6 + $0x4] ss:$8 sps:$4 sm:$0xff]   ;;  %v3836_v50 = vld [vmem:[%s6151_s6 + $0x14] ss:$8 sps:$4 sm:$0xff]  }
 0x362   :  { %1815 = vmatprep.subr.bf16.mxu0 %v3833_v40 }
 0x364   :  { %v3772_v49 = vpop.f32.mrb[36].mxu1 }
 0x365   :  { %v1187_v10 = vpop.f32.mrb[37].mxu1  ;;  %v3496_v27 = vpop.f32.mrb[44].mxu0 }
 0x366   :  { %v1188_v54 = vadd.f32 %v3492_v30, %v1187_v10  ;;  %v3773_v35 = vpop.f32.mrb[38].mxu1  ;;  %v3497_v18 = vpop.f32.mrb[45].mxu0  ;;  %v3831_v30 = vld [vmem:[%s6151_s6] ss:$8 sps:$4 sm:$0xff]  }
 0x367   :  { %v1190_v12 = vpop.f32.mrb[39].mxu1  ;;  %v3498_v34 = vadd.f32 %v3497_v18, %v3496_v27  ;;  %v3499_v39 = vpop.f32.mrb[46].mxu0  ;;  %1816 = vmatpush1.bf16.msra.mxu0 %v3831_v30  ;;  %v3837_v10 = vld [vmem:[%s6151_s6 + $0x20] ss:$8 sps:$4 sm:$0xff]   ;;  %v3842_v27 = vld [vmem:[%s6151_s6 + $0x34] ss:$8 sps:$4 sm:$0xff]  }
 0x368   :  { %v1191_v4 = vadd.f32 %v3495_v14, %v1190_v12  ;;  %v3500_v36 = vpop.f32.mrb[47].mxu0  ;;  %v3834_v14 = vld [vmem:[%s6151_s6 + $0x10] ss:$8 sps:$4 sm:$0xff]   ;;  %1817 = vmatprep.subr.bf16.mxu0 %v3836_v50  ;;  %v3843_v18 = vld [vmem:[%s6151_s6 + $0x40] ss:$8 sps:$4 sm:$0xff]   ;;  %v955_v12 = vpop.xlane.xlu0 %954 }
 0x369   :  { %v1196_v13 = vadd.f32 %v3772_v49, %v3498_v34  ;;  %v3501_v17 = vadd.f32 %v3500_v36, %v3499_v39  ;;  %v3839_v49 = vld [vmem:[%s6151_s6 + $0x24] ss:$8 sps:$4 sm:$0xff]   ;;  %v959_v34 = vpop.xlane.xlu1 %958  ;;  %4007 = vrcp.f32 %v955_v12  ;;  %v4205_v30 = vld [vmem:[%s6147_s0 + $0x30] sm:$0xff]  ;;  %v4206_v50 = vld [vmem:[%s6147_s0 + $0x38] sm:$0xff] }
 0x36a   :  { %v1236_v1 = vpack.c.bf16 %v1191_v4, %v1188_v54  ;;  %v3840_v54 = vld [vmem:[%s6151_s6 + $0x30] ss:$8 sps:$4 sm:$0xff]   ;;  %4009 = vrcp.f32 %v959_v34 }
 0x36b   :  { %v1199_v20 = vadd.f32 %v3773_v35, %v3501_v17  ;;  %1818 = vmatpush1.bf16.msra.mxu0 %v3834_v14  ;;  %v3845_v35 = vld [vmem:[%s6151_s6 + $0x44] ss:$8 sps:$4 sm:$0xff]  }
 0x36c   :  { %3802 = vmatprep.mubr.bf16.mxu1 %v1236_v1  ;;  %1819 = vmatprep.subr.bf16.mxu0 %v3839_v49  ;;  %v963_v39 = vpop.xlane.xlu0 %962 }
 0x36d   :  { %v3502_v21 = vpop.f32.mrb[48].mxu0  ;;  %v1237_v41 = vpack.c.bf16 %v1199_v20, %v1196_v13  ;;  %v967_v4 = vpop.xlane.xlu1 %966  ;;  %4011 = vrcp.f32 %v963_v39 }
 0x36e   :  { %v3503_v51 = vpop.f32.mrb[49].mxu0  ;;  %4013 = vrcp.f32 %v967_v4 }
 0x36f   :  { %v3504_v43 = vadd.f32 %v3503_v51, %v3502_v21  ;;  %v3505_v53 = vpop.f32.mrb[50].mxu0  ;;  %3803 = vmatmul.mubr.bf16.gmra.mrb[52].mxu1 %v1237_v41  ;;  %1820 = vmatpush1.bf16.msra.mxu0 %v3837_v10 }
 0x370   :  { %v3506_v46 = vpop.f32.mrb[51].mxu0  ;;  %1821 = vmatprep.subr.bf16.mxu0 %v3842_v27  ;;  %v971_v51 = vpop.xlane.xlu0 %970 }
 0x371   :  { %v3507_v55 = vadd.f32 %v3506_v46, %v3505_v53  ;;  %4015 = vrcp.f32 %v971_v51 }
 0x373   :  { %1822 = vmatpush1.bf16.msra.mxu0 %v3840_v54  ;;  %v4008_v13 = vpop.eup %4007 }
 0x374   :  { %v3776_v33 = vpop.f32.mrb[40].mxu1  ;;  %1823 = vmatprep.subr.bf16.mxu0 %v3845_v35  ;;  %v4010_v21 = vpop.eup %4009 }
 0x375   :  { %v1203_v19 = vpop.f32.mrb[41].mxu1  ;;  %v3508_v37 = vpop.f32.mrb[52].mxu0 }
 0x376   :  { %v1204_v6 = vadd.f32 %v3504_v43, %v1203_v19  ;;  %v3777_v22 = vpop.f32.mrb[42].mxu1  ;;  %v3509_v44 = vpop.f32.mrb[53].mxu0  ;;  %v4199_v43 = vld [vmem:[%s6147_s0] sm:$0xff] }
 0x377   :  { %v1206_v28 = vpop.f32.mrb[43].mxu1  ;;  %v3510_v45 = vadd.f32 %v3509_v44, %v3508_v37  ;;  %v3511_v42 = vpop.f32.mrb[54].mxu0  ;;  %1824 = vmatpush1.bf16.msra.mxu0 %v3843_v18 }
 0x378   :  { %v1207_v15 = vadd.f32 %v3507_v55, %v1206_v28  ;;  %v3512_v56 = vpop.f32.mrb[55].mxu0  ;;  %v975_v55 = vpop.xlane.xlu1 %974 }
 0x379   :  { %v1212_v32 = vadd.f32 %v3776_v33, %v3510_v45  ;;  %v3513_v62 = vadd.f32 %v3512_v56, %v3511_v42  ;;  %v4200_v33 = vld [vmem:[%s6147_s0 + $0x8] sm:$0xff]  ;;  %v4012_v37 = vpop.eup %4011  ;;  %4017 = vrcp.f32 %v975_v55  ;;  %v979_v28 = vpop.xlane.xlu0 %978  ;;  %v4201_v56 = vld [vmem:[%s6147_s0 + $0x10] sm:$0xff] }
 0x37a   :  { %v1238_v57 = vpack.c.bf16 %v1207_v15, %v1204_v6  ;;  %v4014_v44 = vpop.eup %4013  ;;  %4019 = vrcp.f32 %v979_v28  ;;  %v3851_v28 = vld [vmem:[%s6151_s6 + $0x64] ss:$8 sps:$4 sm:$0xff]  }
 0x37b   :  { %v1215_v0 = vadd.f32 %v3777_v22, %v3513_v62  ;;  %v4202_v62 = vld [vmem:[%s6147_s0 + $0x18] sm:$0xff] }
 0x37c   :  { %3806 = vmatprep.mubr.bf16.mxu1 %v1238_v57  ;;  %v983_v15 = vpop.xlane.xlu1 %982 }
 0x37d   :  { %v3514_v59 = vpop.f32.mrb[56].mxu0  ;;  %v1239_v11 = vpack.c.bf16 %v1215_v0, %v1212_v32  ;;  %4021 = vrcp.f32 %v983_v15 }
 0x37e   :  { %v3515_v60 = vpop.f32.mrb[57].mxu0 }
 0x37f   :  { %v3516_v24 = vadd.f32 %v3515_v60, %v3514_v59  ;;  %v3517_v38 = vpop.f32.mrb[58].mxu0  ;;  %3807 = vmatmul.mubr.bf16.gmra.mrb[56].mxu1 %v1239_v11  ;;  %v4016_v11 = vpop.eup %4015 }
 0x380   :  { %v3518_v2 = vpop.f32.mrb[59].mxu0 }
 0x381   :  { %v3519_v48 = vadd.f32 %v3518_v2, %v3517_v38 }
 0x384   :  { %v3780_v47 = vpop.f32.mrb[44].mxu1 }
 0x385   :  { %v1219_v23 = vpop.f32.mrb[45].mxu1  ;;  %v3520_v61 = vpop.f32.mrb[60].mxu0 }
 0x386   :  { %v1220_v58 = vadd.f32 %v3516_v24, %v1219_v23  ;;  %v3781_v3 = vpop.f32.mrb[46].mxu1  ;;  %v3521_v5 = vpop.f32.mrb[61].mxu0 }
 0x387   :  { %v1222_v7 = vpop.f32.mrb[47].mxu1  ;;  %v3522_v29 = vadd.f32 %v3521_v5, %v3520_v61  ;;  %v3523_v52 = vpop.f32.mrb[62].mxu0  ;;  %v4203_v61 = vld [vmem:[%s6147_s0 + $0x20] sm:$0xff] }
 0x388   :  { %v1223_v31 = vadd.f32 %v3519_v48, %v1222_v7  ;;  %v3524_v8 = vpop.f32.mrb[63].mxu0  ;;  %v4018_v48 = vpop.eup %4017  ;;  %v4204_v7 = vld [vmem:[%s6147_s0 + $0x28] sm:$0xff] }
 0x389   :  { %v1228_v63 = vadd.f32 %v3780_v47, %v3522_v29  ;;  %v3525_v9 = vadd.f32 %v3524_v8, %v3523_v52  ;;  %v987_v23 = vpop.xlane.xlu0 %986  ;;  %v991_v5 = vpop.xlane.xlu1 %990 }
 0x38a   :  { %v1240_v16 = vpack.c.bf16 %v1223_v31, %v1220_v58  ;;  %v4020_v52 = vpop.eup %4019  ;;  %4023 = vrcp.f32 %v987_v23 }
 0x38b   :  { %v1231_v26 = vadd.f32 %v3781_v3, %v3525_v9  ;;  %4025 = vrcp.f32 %v991_v5 }
 0x38c   :  { %3810 = vmatprep.mubr.bf16.mxu1 %v1240_v16 }
 0x38d   :  { %v1241_v25 = vpack.c.bf16 %v1231_v26, %v1228_v63  ;;  %v4022_v63 = vpop.eup %4021  ;;  %v995_v9 = vpop.xlane.xlu0 %994 }
 0x38e   :  { %4027 = vrcp.f32 %v995_v9 }
 0x38f   :  { %3811 = vmatmul.mubr.bf16.gmra.mrb[60].mxu1 %v1241_v25  ;;  %v999_v25 = vpop.xlane.xlu1 %998 }
 0x390   :  { %4029 = vrcp.f32 %v999_v25 }
 0x391   :  { %v1003_v4 = vpop.xlane.xlu0 %1002 }
 0x392   :  { %4031 = vrcp.f32 %v1003_v4  ;;  %v3859_v4 = vld [vmem:[%s6152_s7 + $0x50] sm:$0xff]  }
 0x394   :  { %v4024_v27 = vpop.eup %4023 }
 0x395   :  { %v4026_v34 = vpop.eup %4025 }
 0x432   :  { %v3800_v36 = vpop.f32.mrb[48].mxu1 }
 0x433   :  { %v1340_v17 = vpop.f32.mrb[49].mxu1  ;;  %v1421_v6 = vmul.f32 %v4012_v37, %v3800_v36  ;;  %v4207_v36 = vld [vmem:[%s6147_s0 + $0x40] sm:$0xff]  ;;  %v1011_v37 = vpop.xlane.xlu0 %1010 }
 0x434   :  { %v1419_v1 = vmul.f32 %v4008_v13, %v1340_v17  ;;  %v3801_v20 = vpop.f32.mrb[50].mxu1 }
 0x435   :  { %v1343_v41 = vpop.f32.mrb[51].mxu1  ;;  %v1422_v45 = vmul.f32 %v4014_v44, %v3801_v20  ;;  %v5018_v32 = vadd.f32 %v4201_v56, %v1421_v6  ;;  %v4208_v20 = vld [vmem:[%s6147_s0 + $0x48] sm:$0xff]  ;;  %v4210_v56 = vld [vmem:[%s6147_s0 + $0x58] sm:$0xff] }
 0x436   :  { %v5002_v53 = vadd.f32 %v4199_v43, %v1419_v1  ;;  %v1420_v46 = vmul.f32 %v4010_v21, %v1343_v41  ;;  %v1007_v1 = vpop.xlane.xlu1 %1006  ;;  %v4028_v41 = vpop.eup %4027  ;;  %v3849_v44 = vld [vmem:[%s6151_s6 + $0x60] ss:$8 sps:$4 sm:$0xff]  }
 0x437   :  { %v5023_v57 = vadd.f32 %v4202_v62, %v1422_v45  ;;  %v1502_v59 = vmul.f32 %v5018_v32, %v5018_v32  ;;  %v4030_v55 = vpop.eup %4029  ;;  %4033 = vrcp.f32 %v1007_v1  ;;  %v3862_v1 = vld [vmem:[%s6152_s7 + $0x18] sm:$0xff]  }
 0x438   :  { %v5007_v19 = vadd.f32 %v4200_v33, %v1420_v46  ;;  %1451 = vadd.xlane.f32.xlu0 %v5002_v53  ;;  %v1500_v22 = vmul.f32 %v5002_v53, %v5002_v53  ;;  %v3848_v46 = vld [vmem:[%s6151_s6 + $0x54] ss:$8 sps:$4 sm:$0xff]   ;;  %v3846_v33 = vld [vmem:[%s6151_s6 + $0x50] ss:$8 sps:$4 sm:$0xff]   ;;  %4035 = vrcp.f32 %v1011_v37 }
 0x439   :  { %v1503_v2 = vmul.f32 %v5023_v57, %v5023_v57  ;;  %1825 = vmatprep.subr.bf16.mxu0 %v3848_v46 }
 0x43a   :  { %1453 = vadd.xlane.f32.xlu1 %v5007_v19  ;;  %v1501_v42 = vmul.f32 %v5007_v19, %v5007_v19  ;;  %1826 = vmatpush1.bf16.msra.mxu0 %v3846_v33  ;;  %v1015_v45 = vpop.xlane.xlu1 %1014 }
 0x43b   :  { %1827 = vmatprep.subr.bf16.mxu0 %v3851_v28  ;;  %4037 = vrcp.f32 %v1015_v45 }
 0x43c   :  { %1516 = vadd.xlane.f32.xlu0 %v1500_v22 }
 0x43e   :  { %1518 = vadd.xlane.f32.xlu1 %v1501_v42  ;;  %v4209_v42 = vld [vmem:[%s6147_s0 + $0x50] sm:$0xff]  ;;  %1828 = vmatpush1.bf16.msra.mxu0 %v3849_v44 }
 0x440   :  { %1455 = vadd.xlane.f32.xlu0 %v5018_v32 }
 0x442   :  { %v3804_v0 = vpop.f32.mrb[52].mxu1  ;;  %1457 = vadd.xlane.f32.xlu1 %v5023_v57 }
 0x443   :  { %v1356_v60 = vpop.f32.mrb[53].mxu1  ;;  %v1425_v31 = vmul.f32 %v4020_v52, %v3804_v0  ;;  %v4215_v52 = vmov 0  }
 0x444   :  { %v1423_v24 = vmul.f32 %v4016_v11, %v1356_v60  ;;  %1520 = vadd.xlane.f32.xlu0 %v1502_v59  ;;  %v3805_v38 = vpop.f32.mrb[54].mxu1  ;;  %v3852_v11 = vld [vmem:[%s6151_s6 + $0x70] ss:$8 sps:$4 sm:$0xff]   ;;  %v3854_v60 = vld [vmem:[%s6151_s6 + $0x74] ss:$8 sps:$4 sm:$0xff]   ;;  %1847 = vmatprep.mubr.bf16.mxu0 %v4215_v52 }
 0x445   :  { %v1359_v47 = vpop.f32.mrb[55].mxu1  ;;  %v1426_v16 = vmul.f32 %v4022_v63, %v3805_v38  ;;  %v5050_v40 = vadd.f32 %v4205_v30, %v1425_v31  ;;  %1829 = vmatprep.subr.bf16.mxu0 %v3854_v60  ;;  %v4212_v31 = vld [vmem:[%s6147_s0 + $0x68] sm:$0xff] }
 0x446   :  { %v5034_v58 = vadd.f32 %v4203_v61, %v1423_v24  ;;  %v1424_v3 = vmul.f32 %v4018_v48, %v1359_v47  ;;  %1522 = vadd.xlane.f32.xlu1 %v1503_v2  ;;  %v4032_v24 = vpop.eup %4031  ;;  %1830 = vmatpush1.bf16.msra.mxu0 %v3852_v11 }
 0x447   :  { %v5055_v14 = vadd.f32 %v4206_v50, %v1426_v16  ;;  %v1506_v10 = vmul.f32 %v5050_v40, %v5050_v40  ;;  %v4034_v23 = vpop.eup %4033  ;;  %v4213_v50 = vld [vmem:[%s6147_s0 + $0x70] sm:$0xff] }
 0x448   :  { %v5039_v29 = vadd.f32 %v4204_v7, %v1424_v3  ;;  %1459 = vadd.xlane.f32.xlu0 %v5034_v58  ;;  %v1504_v8 = vmul.f32 %v5034_v58, %v5034_v58  ;;  %v4211_v3 = vld [vmem:[%s6147_s0 + $0x60] sm:$0xff]  ;;  %v4036_v63 = vpop.eup %4035 }
 0x449   :  { %v1507_v12 = vmul.f32 %v5055_v14, %v5055_v14 }
 0x44a   :  { %1461 = vadd.xlane.f32.xlu1 %v5039_v29  ;;  %v1505_v26 = vmul.f32 %v5039_v29, %v5039_v29 }
 0x44c   :  { %1524 = vadd.xlane.f32.xlu0 %v1504_v8 }
 0x44e   :  { %1526 = vadd.xlane.f32.xlu1 %v1505_v26  ;;  %v4038_v26 = vpop.eup %4037 }
 0x450   :  { %1463 = vadd.xlane.f32.xlu0 %v5050_v40 }
 0x452   :  { %v3808_v49 = vpop.f32.mrb[56].mxu1  ;;  %1465 = vadd.xlane.f32.xlu1 %v5055_v14 }
 0x453   :  { %v1372_v54 = vpop.f32.mrb[57].mxu1  ;;  %v1429_v51 = vmul.f32 %v4028_v41, %v3808_v49  ;;  %v3864_v41 = vld [vmem:[%s6152_s7 + $0x20] sm:$0xff]  }
 0x454   :  { %v1427_v35 = vmul.f32 %v4024_v27, %v1372_v54  ;;  %1528 = vadd.xlane.f32.xlu0 %v1506_v10  ;;  %v3809_v18 = vpop.f32.mrb[58].mxu1  ;;  %v4214_v10 = vld [vmem:[%s6147_s0 + $0x78] sm:$0xff] }
 0x455   :  { %v1375_v39 = vpop.f32.mrb[59].mxu1  ;;  %v1430_v6 = vmul.f32 %v4030_v55, %v3809_v18  ;;  %v5094_v15 = vadd.f32 %v4209_v42, %v1429_v51  ;;  %v3855_v18 = vld [vmem:[%s6152_s7 + $0x40] sm:$0xff]   ;;  %v3865_v51 = vld [vmem:[%s6152_s7 + $0x68] sm:$0xff]  }
 0x456   :  { %v5066_v13 = vadd.f32 %v4207_v36, %v1427_v35  ;;  %v1428_v17 = vmul.f32 %v4026_v34, %v1375_v39  ;;  %1530 = vadd.xlane.f32.xlu1 %v1507_v12  ;;  %v3856_v12 = vld [vmem:[%s6152_s7] sm:$0xff]   ;;  %3558 = vmatprep.subr.bf16.mxu1 %v3855_v18  ;;  %v3857_v34 = vld [vmem:[%s6152_s7 + $0x48] sm:$0xff]   ;;  %v3860_v36 = vld [vmem:[%s6152_s7 + $0x10] sm:$0xff]  }
 0x457   :  { %v5099_v62 = vadd.f32 %v4210_v56, %v1430_v6  ;;  %v1510_v59 = vmul.f32 %v5094_v15, %v5094_v15  ;;  %3559 = vmatpush3.bf16.msra.mxu1 %v3856_v12  ;;  %v3858_v39 = vld [vmem:[%s6152_s7 + $0x8] sm:$0xff]  }
 0x458   :  { %v5071_v21 = vadd.f32 %v4208_v20, %v1428_v17  ;;  %1467 = vadd.xlane.f32.xlu0 %v5066_v13  ;;  %v1508_v43 = vmul.f32 %v5066_v13, %v5066_v13  ;;  %3560 = vmatprep.subr.bf16.mxu1 %v3857_v34  ;;  %v3861_v17 = vld [vmem:[%s6152_s7 + $0x58] sm:$0xff]   ;;  %v3863_v20 = vld [vmem:[%s6152_s7 + $0x60] sm:$0xff]  }
 0x459   :  { %v1511_v47 = vmul.f32 %v5099_v62, %v5099_v62  ;;  %v5196_v34 = vld [vmem:[%s6153_s10] ss:$0 sm:$0xff] }
 0x45a   :  { %1469 = vadd.xlane.f32.xlu1 %v5071_v21  ;;  %v1509_v22 = vmul.f32 %v5071_v21, %v5071_v21 }
 0x45b   :  { %3561 = vmatpush3.bf16.msra.mxu1 %v3858_v39 }
 0x45c   :  { %1532 = vadd.xlane.f32.xlu0 %v1508_v43  ;;  %3562 = vmatprep.subr.bf16.mxu1 %v3859_v4  ;;  %v3866_v43 = vld [vmem:[%s6152_s7 + $0x28] sm:$0xff]  }
 0x45e   :  { %1534 = vadd.xlane.f32.xlu1 %v1509_v22 }
 0x45f   :  { %3563 = vmatpush3.bf16.msra.mxu1 %v3860_v36 }
 0x460   :  { %1471 = vadd.xlane.f32.xlu0 %v5094_v15  ;;  %3564 = vmatprep.subr.bf16.mxu1 %v3861_v17 }
 0x462   :  { %v3812_v0 = vpop.f32.mrb[60].mxu1  ;;  %1473 = vadd.xlane.f32.xlu1 %v5099_v62 }
 0x463   :  { %v1388_v38 = vpop.f32.mrb[61].mxu1  ;;  %v1433_v9 = vmul.f32 %v4036_v63, %v3812_v0  ;;  %3565 = vmatpush3.bf16.msra.mxu1 %v3862_v1 }
 0x464   :  { %v1431_v2 = vmul.f32 %v4032_v24, %v1388_v38  ;;  %1536 = vadd.xlane.f32.xlu0 %v1510_v59  ;;  %v3813_v48 = vpop.f32.mrb[62].mxu1  ;;  %3566 = vmatprep.subr.bf16.mxu1 %v3863_v20 }
 0x465   :  { %v1391_v61 = vpop.f32.mrb[63].mxu1  ;;  %v1434_v25 = vmul.f32 %v4038_v26, %v3813_v48  ;;  %v5133_v49 = vadd.f32 %v4213_v50, %v1433_v9 }
 0x466   :  { %v5116_v5 = vadd.f32 %v4211_v3, %v1431_v2  ;;  %v1432_v7 = vmul.f32 %v4034_v23, %v1391_v61  ;;  %1538 = vadd.xlane.f32.xlu1 %v1511_v47 }
 0x467   :  { %v5138_v27 = vadd.f32 %v4214_v10, %v1434_v25  ;;  %v1514_v54 = vmul.f32 %v5133_v49, %v5133_v49  ;;  %3567 = vmatpush3.bf16.msra.mxu1 %v3864_v41 }
 0x468   :  { %v5122_v8 = vadd.f32 %v4212_v31, %v1432_v7  ;;  %1475 = vadd.xlane.f32.xlu0 %v5116_v5  ;;  %v1512_v16 = vmul.f32 %v5116_v5, %v5116_v5  ;;  %3568 = vmatprep.subr.bf16.mxu1 %v3865_v51 }
 0x469   :  { %v1515_v35 = vmul.f32 %v5138_v27, %v5138_v27 }
 0x46a   :  { %1477 = vadd.xlane.f32.xlu1 %v5122_v8  ;;  %v1513_v30 = vmul.f32 %v5122_v8, %v5122_v8 }
 0x46b   :  { %3569 = vmatpush3.bf16.msra.mxu1 %v3866_v43 }
 0x46c   :  { %1540 = vadd.xlane.f32.xlu0 %v1512_v16 }
 0x46e   :  { %1542 = vadd.xlane.f32.xlu1 %v1513_v30 }
 0x470   :  { %1479 = vadd.xlane.f32.xlu0 %v5133_v49 }
 0x472   :  { %1481 = vadd.xlane.f32.xlu1 %v5138_v27 }
 0x474   :  { %1544 = vadd.xlane.f32.xlu0 %v1514_v54 }
 0x476   :  { %1546 = vadd.xlane.f32.xlu1 %v1515_v35 }
 0x4c5   :  { %v1452_v46 = vpop.xlane.xlu0 %1451 }
 0x4c6   :  { %v1484_v55 = vmul.f32 0.0078125, %v1452_v46 }
 0x4c7   :  { %v1454_v33 = vpop.xlane.xlu1 %1453 }
 0x4c8   :  { %v1485_v37 = vmul.f32 0.0078125, %v1454_v33  ;;  %v1564_v22 = vmul.f32 %v1484_v55, %v1484_v55  ;;  %v1596_v50 = vsub.f32 %v5002_v53, %v1484_v55 }
 0x4c9   :  { %v1517_v6 = vpop.xlane.xlu0 %1516 }
 0x4ca   :  { %v1548_v44 = vmul.f32 0.0078125, %v1517_v6  ;;  %v1565_v45 = vmul.f32 %v1485_v37, %v1485_v37  ;;  %v1597_v39 = vsub.f32 %v5007_v19, %v1485_v37  ;;  %v5207_v19 = vld [vmem:[%s6153_s10 + $0x1] ss:$0 sm:$0xff] }
 0x4cb   :  { %v1519_v28 = vpop.xlane.xlu1 %1518 }
 0x4cc   :  { %v1580_v42 = vsub.f32 %v1548_v44, %v1564_v22  ;;  %v1549_v56 = vmul.f32 0.0078125, %v1519_v28 }
 0x4cd   :  { %v1456_v0 = vpop.xlane.xlu0 %1455 }
 0x4ce   :  { %v1612_v59 = vadd.f32 1e-05, %v1580_v42  ;;  %v1581_v11 = vsub.f32 %v1549_v56, %v1565_v45  ;;  %v1486_v60 = vmul.f32 0.0078125, %v1456_v0 }
 0x4cf   :  { %v1458_v24 = vpop.xlane.xlu1 %1457 }
 0x4d0   :  { %4039 = vrsqrt.f32 %v1612_v59  ;;  %v1613_v38 = vadd.f32 1e-05, %v1581_v11  ;;  %v5182_v2 = vmul.f32 0.0078125, %v1458_v24  ;;  %v1566_v47 = vmul.f32 %v1486_v60, %v1486_v60 }
 0x4d1   :  { %v1521_v48 = vpop.xlane.xlu0 %1520  ;;  %v1598_v44 = vsub.f32 %v5018_v32, %v1486_v60 }
 0x4d2   :  { %4041 = vrsqrt.f32 %v1613_v38  ;;  %v1550_v23 = vmul.f32 0.0078125, %v1521_v48  ;;  %v1567_v3 = vmul.f32 %v5182_v2, %v5182_v2  ;;  %v1599_v24 = vsub.f32 %v5023_v57, %v5182_v2 }
 0x4d3   :  { %v1523_v61 = vpop.xlane.xlu1 %1522 }
 0x4d4   :  { %v1582_v7 = vsub.f32 %v1550_v23, %v1566_v47  ;;  %v1551_v31 = vmul.f32 0.0078125, %v1523_v61 }
 0x4d5   :  { %v1460_v63 = vpop.xlane.xlu0 %1459 }
 0x4d6   :  { %v1614_v9 = vadd.f32 1e-05, %v1582_v7  ;;  %v1583_v16 = vsub.f32 %v1551_v31, %v1567_v3  ;;  %v5186_v26 = vmul.f32 0.0078125, %v1460_v63 }
 0x4d7   :  { %v1462_v25 = vpop.xlane.xlu1 %1461 }
 0x4d8   :  { %4043 = vrsqrt.f32 %v1614_v9  ;;  %v1615_v30 = vadd.f32 1e-05, %v1583_v16  ;;  %v5189_v10 = vmul.f32 0.0078125, %v1462_v25  ;;  %v1568_v18 = vmul.f32 %v5186_v26, %v5186_v26 }
 0x4d9   :  { %v1525_v54 = vpop.xlane.xlu0 %1524 }
 0x4da   :  { %v4040_v35 = vpop.eup %4039  ;;  %4045 = vrsqrt.f32 %v1615_v30  ;;  %v1552_v12 = vmul.f32 0.0078125, %v1525_v54  ;;  %v1569_v53 = vmul.f32 %v5189_v10, %v5189_v10  ;;  %v1600_v30 = vsub.f32 %v5034_v58, %v5186_v26 }
 0x4db   :  { %v1644_v4 = vmul.f32 %v4040_v35, %v1596_v50  ;;  %v1527_v36 = vpop.xlane.xlu1 %1526 }
 0x4dc   :  { %v4042_v17 = vpop.eup %4041  ;;  %v1584_v1 = vsub.f32 %v1552_v12, %v1568_v18  ;;  %v1553_v20 = vmul.f32 0.0078125, %v1527_v36  ;;  %v1601_v36 = vsub.f32 %v5039_v29, %v5189_v10 }
 0x4dd   :  { %v1645_v41 = vmul.f32 %v4042_v17, %v1597_v39  ;;  %v1464_v51 = vpop.xlane.xlu0 %1463  ;;  %v1664_v43 = vmul.f32 %v5196_v34, %v1644_v4 }
 0x4de   :  { %v1616_v46 = vadd.f32 1e-05, %v1584_v1  ;;  %v1585_v55 = vsub.f32 %v1553_v20, %v1569_v53  ;;  %v5202_v33 = vmul.f32 0.0078125, %v1464_v51 }
 0x4df   :  { %v1466_v37 = vpop.xlane.xlu1 %1465  ;;  %v1665_v6 = vmul.f32 %v5196_v34, %v1645_v41  ;;  %v5214_v42 = vadd.f32 %v5207_v19, %v1664_v43 }
 0x4e0   :  { %4047 = vrsqrt.f32 %v1616_v46  ;;  %v1617_v22 = vadd.f32 1e-05, %v1585_v55  ;;  %v5211_v28 = vmul.f32 0.0078125, %v1466_v37  ;;  %v1570_v59 = vmul.f32 %v5202_v33, %v5202_v33 }
 0x4e1   :  { %v1529_v45 = vpop.xlane.xlu0 %1528  ;;  %v5217_v56 = vadd.f32 %v5207_v19, %v1665_v6 }
 0x4e2   :  { %v4044_v0 = vpop.eup %4043  ;;  %4049 = vrsqrt.f32 %v1617_v22  ;;  %v1554_v11 = vmul.f32 0.0078125, %v1529_v45  ;;  %v1571_v47 = vmul.f32 %v5211_v28, %v5211_v28 }
 0x4e3   :  { %v1531_v38 = vpop.xlane.xlu1 %1530  ;;  %v1700_v32 = vpack.c.bf16 %v5217_v56, %v5214_v42  ;;  %v1646_v60 = vmul.f32 %v4044_v0, %v1598_v44  ;;  %v1602_v44 = vsub.f32 %v5050_v40, %v5202_v33 }
 0x4e4   :  { %v4046_v48 = vpop.eup %4045  ;;  %v1586_v23 = vsub.f32 %v1554_v11, %v1570_v59  ;;  %v1555_v61 = vmul.f32 0.0078125, %v1531_v38 }
 0x4e5   :  { %v1468_v3 = vpop.xlane.xlu0 %1467  ;;  %1848 = vmatmul.mubr.bf16.vlgmr.msra.gmra.mrb[64].mxu0 %v1700_v32  ;;  %v1647_v7 = vmul.f32 %v4046_v48, %v1599_v24  ;;  %v1666_v31 = vmul.f32 %v5196_v34, %v1646_v60  ;;  %v1603_v60 = vsub.f32 %v5055_v14, %v5211_v28 }
 0x4e6   :  { %v1618_v63 = vadd.f32 1e-05, %v1586_v23  ;;  %v1587_v9 = vsub.f32 %v1555_v61, %v1571_v47  ;;  %v5228_v16 = vmul.f32 0.0078125, %v1468_v3  ;;  %1857 = vmatprep.mubr.bf16.mxu0 %v4215_v52 }
 0x4e7   :  { %v1470_v57 = vpop.xlane.xlu1 %1469  ;;  %v1667_v2 = vmul.f32 %v5196_v34, %v1647_v7  ;;  %v5237_v35 = vadd.f32 %v5207_v19, %v1666_v31 }
 0x4e8   :  { %4051 = vrsqrt.f32 %v1618_v63  ;;  %v1619_v25 = vadd.f32 1e-05, %v1587_v9  ;;  %v5234_v50 = vmul.f32 0.0078125, %v1470_v57  ;;  %v1572_v39 = vmul.f32 %v5228_v16, %v5228_v16 }
 0x4e9   :  { %v1533_v54 = vpop.xlane.xlu0 %1532  ;;  %v5240_v18 = vadd.f32 %v5207_v19, %v1667_v2 }
 0x4ea   :  { %v4048_v12 = vpop.eup %4047  ;;  %4053 = vrsqrt.f32 %v1619_v25  ;;  %v1556_v4 = vmul.f32 0.0078125, %v1533_v54  ;;  %v1573_v1 = vmul.f32 %v5234_v50, %v5234_v50 }
 0x4eb   :  { %v1535_v17 = vpop.xlane.xlu1 %1534  ;;  %v1701_v58 = vpack.c.bf16 %v5240_v18, %v5237_v35  ;;  %v1648_v26 = vmul.f32 %v4048_v12, %v1600_v30  ;;  %v1604_v30 = vsub.f32 %v5066_v13, %v5228_v16 }
 0x4ec   :  { %v4050_v53 = vpop.eup %4049  ;;  %v1588_v20 = vsub.f32 %v1556_v4, %v1572_v39  ;;  %v1557_v41 = vmul.f32 0.0078125, %v1535_v17 }
 0x4ed   :  { %v1472_v51 = vpop.xlane.xlu0 %1471  ;;  %1858 = vmatmul.mubr.bf16.gmra.mrb[68].mxu0 %v1701_v58  ;;  %v1649_v43 = vmul.f32 %v4050_v53, %v1601_v36  ;;  %v1668_v46 = vmul.f32 %v5196_v34, %v1648_v26  ;;  %v1605_v26 = vsub.f32 %v5071_v21, %v5234_v50 }
 0x4ee   :  { %v1620_v55 = vadd.f32 1e-05, %v1588_v20  ;;  %v1589_v37 = vsub.f32 %v1557_v41, %v1573_v1  ;;  %v5251_v6 = vmul.f32 0.0078125, %v1472_v51  ;;  %1867 = vmatprep.mubr.bf16.mxu0 %v4215_v52 }
 0x4ef   :  { %v1474_v29 = vpop.xlane.xlu1 %1473  ;;  %v1669_v10 = vmul.f32 %v5196_v34, %v1649_v43  ;;  %v5260_v59 = vadd.f32 %v5207_v19, %v1668_v46 }
 0x4f0   :  { %4055 = vrsqrt.f32 %v1620_v55  ;;  %v1621_v22 = vadd.f32 1e-05, %v1589_v37  ;;  %v5257_v45 = vmul.f32 0.0078125, %v1474_v29  ;;  %v1574_v38 = vmul.f32 %v5251_v6, %v5251_v6 }
 0x4f1   :  { %v1537_v0 = vpop.xlane.xlu0 %1536  ;;  %v5263_v11 = vadd.f32 %v5207_v19, %v1669_v10 }
 0x4f2   :  { %v4052_v24 = vpop.eup %4051  ;;  %4057 = vrsqrt.f32 %v1621_v22  ;;  %v1558_v32 = vmul.f32 0.0078125, %v1537_v0  ;;  %v1575_v23 = vmul.f32 %v5257_v45, %v5257_v45 }
 0x4f3   :  { %v1539_v48 = vpop.xlane.xlu1 %1538  ;;  %v1702_v40 = vpack.c.bf16 %v5263_v11, %v5260_v59  ;;  %v1650_v33 = vmul.f32 %v4052_v24, %v1602_v44  ;;  %v1606_v44 = vsub.f32 %v5094_v15, %v5251_v6 }
 0x4f4   :  { %v4054_v47 = vpop.eup %4053  ;;  %v1590_v61 = vsub.f32 %v1558_v32, %v1574_v38  ;;  %v1559_v3 = vmul.f32 0.0078125, %v1539_v48 }
 0x4f5   :  { %v1476_v7 = vpop.xlane.xlu0 %1475  ;;  %1868 = vmatmul.mubr.bf16.gmra.mrb[72].mxu0 %v1702_v40  ;;  %v1651_v31 = vmul.f32 %v4054_v47, %v1603_v60  ;;  %v1670_v63 = vmul.f32 %v5196_v34, %v1650_v33  ;;  %v1607_v33 = vsub.f32 %v5099_v62, %v5257_v45 }
 0x4f6   :  { %v1622_v9 = vadd.f32 1e-05, %v1590_v61  ;;  %v1591_v57 = vsub.f32 %v1559_v3, %v1575_v23  ;;  %v5274_v2 = vmul.f32 0.0078125, %v1476_v7  ;;  %1877 = vmatprep.mubr.bf16.mxu0 %v4215_v52 }
 0x4f7   :  { %v1478_v14 = vpop.xlane.xlu1 %1477  ;;  %v1671_v28 = vmul.f32 %v5196_v34, %v1651_v31  ;;  %v5283_v39 = vadd.f32 %v5207_v19, %v1670_v63 }
 0x4f8   :  { %4059 = vrsqrt.f32 %v1622_v9  ;;  %v1623_v25 = vadd.f32 1e-05, %v1591_v57  ;;  %v5280_v54 = vmul.f32 0.0078125, %v1478_v14  ;;  %v1576_v17 = vmul.f32 %v5274_v2, %v5274_v2 }
 0x4f9   :  { %v1541_v12 = vpop.xlane.xlu0 %1540  ;;  %v5286_v4 = vadd.f32 %v5207_v19, %v1671_v28  ;;  %v1608_v45 = vsub.f32 %v5116_v5, %v5274_v2 }
 0x4fa   :  { %v4056_v36 = vpop.eup %4055  ;;  %4061 = vrsqrt.f32 %v1623_v25  ;;  %v1560_v58 = vmul.f32 0.0078125, %v1541_v12  ;;  %v1577_v20 = vmul.f32 %v5280_v54, %v5280_v54  ;;  %v1609_v12 = vsub.f32 %v5122_v8, %v5280_v54 }
 0x4fb   :  { %v1543_v53 = vpop.xlane.xlu1 %1542  ;;  %v1703_v13 = vpack.c.bf16 %v5286_v4, %v5283_v39  ;;  %v1652_v16 = vmul.f32 %v4056_v36, %v1604_v30 }
 0x4fc   :  { %v4058_v1 = vpop.eup %4057  ;;  %v1592_v41 = vsub.f32 %v1560_v58, %v1576_v17  ;;  %v1561_v51 = vmul.f32 0.0078125, %v1543_v53 }
 0x4fd   :  { %v1480_v43 = vpop.xlane.xlu0 %1479  ;;  %1878 = vmatmul.mubr.bf16.gmra.mrb[76].mxu0 %v1703_v13  ;;  %v1653_v46 = vmul.f32 %v4058_v1, %v1605_v26  ;;  %v1672_v55 = vmul.f32 %v5196_v34, %v1652_v16 }
 0x4fe   :  { %v1624_v37 = vadd.f32 1e-05, %v1592_v41  ;;  %v1593_v29 = vsub.f32 %v1561_v51, %v1577_v20  ;;  %v1498_v10 = vmul.f32 0.0078125, %v1480_v43  ;;  %1887 = vmatprep.mubr.bf16.mxu0 %v4215_v52 }
 0x4ff   :  { %v1482_v21 = vpop.xlane.xlu1 %1481  ;;  %v1673_v50 = vmul.f32 %v5196_v34, %v1653_v46  ;;  %v5302_v38 = vadd.f32 %v5207_v19, %v1672_v55 }
 0x500   :  { %4063 = vrsqrt.f32 %v1624_v37  ;;  %v1625_v22 = vadd.f32 1e-05, %v1593_v29  ;;  %v1499_v0 = vmul.f32 0.0078125, %v1482_v21  ;;  %v1578_v48 = vmul.f32 %v1498_v10, %v1498_v10  ;;  %v3867_v37 = vld [vmem:[%s6152_s7 + $0x70] sm:$0xff]   ;;  %v3870_v29 = vld [vmem:[%s6152_s7 + $0x38] sm:$0xff]  }
 0x501   :  { %v1545_v24 = vpop.xlane.xlu0 %1544  ;;  %v5305_v32 = vadd.f32 %v5207_v19, %v1673_v50  ;;  %v1610_v53 = vsub.f32 %v5133_v49, %v1498_v10  ;;  %3570 = vmatprep.subr.bf16.mxu1 %v3867_v37  ;;  %v1725_v10 = vlaneseq }
 0x502   :  { %v4060_v60 = vpop.eup %4059  ;;  %4065 = vrsqrt.f32 %v1625_v22  ;;  %v1562_v40 = vmul.f32 0.0078125, %v1545_v24  ;;  %v1579_v61 = vmul.f32 %v1499_v0, %v1499_v0  ;;  %v1611_v16 = vsub.f32 %v5138_v27, %v1499_v0  ;;  %v210_v22 = vld [vmem:[%s6154_s11] ss:$2 sm:$0x3] }
 0x503   :  { %v1547_v47 = vpop.xlane.xlu1 %1546  ;;  %v1704_v23 = vpack.c.bf16 %v5305_v32, %v5302_v38  ;;  %v1654_v15 = vmul.f32 %v4060_v60, %v1606_v44  ;;  %v5364_v21 = vshrl.u32 %v1725_v10, 7 }
 0x504   :  { %v4062_v6 = vpop.eup %4061  ;;  %v1594_v3 = vsub.f32 %v1562_v40, %v1578_v48  ;;  %v1563_v7 = vmul.f32 0.0078125, %v1547_v47 }
 0x505   :  { %1888 = vmatmul.mubr.bf16.gmra.mrb[80].mxu0 %v1704_v23  ;;  %v1655_v31 = vmul.f32 %v4062_v6, %v1607_v33  ;;  %v1674_v63 = vmul.f32 %v5196_v34, %v1654_v15  ;;  %v1727_v50 = vsub.s32 0, %v5364_v21  ;;  %v1731_v44 = vsub.s32 1, %v5364_v21 }
 0x506   :  { %v1626_v9 = vadd.f32 1e-05, %v1594_v3  ;;  %v1595_v57 = vsub.f32 %v1563_v7, %v1579_v61  ;;  %1897 = vmatprep.mubr.bf16.mxu0 %v4215_v52 }
 0x507   :  { %v1675_v14 = vmul.f32 %v5196_v34, %v1655_v31  ;;  %v5317_v28 = vadd.f32 %v5207_v19, %v1674_v63  ;;  %v5373_v0 = vrot.slane %v210_v22, %v1727_v50  ;;  %v5377_v24 = vrot.slane %v210_v22, %v1731_v44 }
 0x508   :  { %4067 = vrsqrt.f32 %v1626_v9  ;;  %v1627_v62 = vadd.f32 1e-05, %v1595_v57 }
 0x509   :  { %v5320_v25 = vadd.f32 %v5207_v19, %v1675_v14 }
 0x50a   :  { %v4064_v30 = vpop.eup %4063  ;;  %4069 = vrsqrt.f32 %v1627_v62 }
 0x50b   :  { %v1705_v36 = vpack.c.bf16 %v5320_v25, %v5317_v28  ;;  %v1656_v17 = vmul.f32 %v4064_v30, %v1608_v45 }
 0x50c   :  { %v4066_v58 = vpop.eup %4065 }
 0x50d   :  { %1898 = vmatmul.mubr.bf16.gmra.mrb[84].mxu0 %v1705_v36  ;;  %v1657_v26 = vmul.f32 %v4066_v58, %v1609_v12  ;;  %v1676_v5 = vmul.f32 %v5196_v34, %v1656_v17 }
 0x50e   :  { %1907 = vmatprep.mubr.bf16.mxu0 %v4215_v52 }
 0x50f   :  { %v1677_v2 = vmul.f32 %v5196_v34, %v1657_v26  ;;  %v5331_v13 = vadd.f32 %v5207_v19, %v1676_v5 }
 0x511   :  { %v5334_v8 = vadd.f32 %v5207_v19, %v1677_v2 }
 0x512   :  { %v4068_v54 = vpop.eup %4067 }
 0x513   :  { %v1706_v1 = vpack.c.bf16 %v5334_v8, %v5331_v13  ;;  %v1658_v20 = vmul.f32 %v4068_v54, %v1610_v53 }
 0x514   :  { %v4070_v41 = vpop.eup %4069 }
 0x515   :  { %1908 = vmatmul.mubr.bf16.gmra.mrb[88].mxu0 %v1706_v1  ;;  %v1659_v51 = vmul.f32 %v4070_v41, %v1611_v16  ;;  %v1678_v43 = vmul.f32 %v5196_v34, %v1658_v20 }
 0x516   :  { %1917 = vmatprep.mubr.bf16.mxu0 %v4215_v52 }
 0x517   :  { %v1679_v49 = vmul.f32 %v5196_v34, %v1659_v51  ;;  %v5343_v46 = vadd.f32 %v5207_v19, %v1678_v43  ;;  %v3868_v34 = vld [vmem:[%s6152_s7 + $0x30] sm:$0xff]  }
 0x518   :  { %3571 = vmatpush3.bf16.msra.mxu1 %v3868_v34 }
 0x519   :  { %v5346_v55 = vadd.f32 %v5207_v19, %v1679_v49  ;;  %v3869_v19 = vld [vmem:[%s6152_s7 + $0x78] sm:$0xff]  }
 0x51a   :  { %3572 = vmatprep.subr.bf16.mxu1 %v3869_v19 }
 0x51b   :  { %v1707_v27 = vpack.c.bf16 %v5346_v55, %v5343_v46 }
 0x51c   :  { %3573 = vmatpush3.bf16.msra.mxu1 %v3870_v29 }
 0x51d   :  { %1918 = vmatmul.mubr.bf16.gmra.mrb[92].mxu0 %v1707_v27 }
 0x51e   :  { %2632 = vmatprep.mubr.bf16.mxu0 %v4215_v52 }
 0x5b8   :  { %v1849_v60 = vpop.f32.mrb[64].mxu0 }
 0x5b9   :  { %v1850_v48 = vadd.f32 %v1849_v60, %v5373_v0  ;;  %v1851_v40 = vpop.f32.mrb[65].mxu0 }
 0x5ba   :  { %v1852_v33 = vadd.f32 %v1851_v40, %v5377_v24  ;;  %v1853_v47 = vpop.f32.mrb[66].mxu0 }
 0x5bb   :  { %v1854_v23 = vadd.f32 %v1853_v47, %v5373_v0  ;;  %v1855_v15 = vpop.f32.mrb[67].mxu0  ;;  %v1928_v61 = vmax.f32 %v1850_v48, 0.0 }
 0x5bc   :  { %v1856_v6 = vadd.f32 %v1855_v15, %v5377_v24  ;;  %v1929_v7 = vmax.f32 %v1852_v33, 0.0 }
 0x5bd   :  { %v1930_v3 = vmax.f32 %v1854_v23, 0.0 }
 0x5be   :  { %v1931_v31 = vmax.f32 %v1856_v6, 0.0 }
 0x5bf   :  { %v1960_v63 = vpack.c.bf16 %v1930_v3, %v1928_v61 }
 0x5c0   :  { %v1961_v9 = vpack.c.bf16 %v1931_v31, %v1929_v7  ;;  %v1859_v57 = vpop.f32.mrb[68].mxu0 }
 0x5c1   :  { %v1860_v14 = vadd.f32 %v1859_v57, %v5373_v0  ;;  %v1861_v62 = vpop.f32.mrb[69].mxu0 }
 0x5c2   :  { %v1862_v45 = vadd.f32 %v1861_v62, %v5377_v24  ;;  %v1863_v30 = vpop.f32.mrb[70].mxu0  ;;  %2136 = vmatprep.mubr.bf16.mxu1 %v1961_v9 }
 0x5c3   :  { %v1864_v12 = vadd.f32 %v1863_v30, %v5373_v0  ;;  %v1865_v36 = vpop.f32.mrb[71].mxu0  ;;  %2137 = vmatmul.mubr.bf16.vlgmr.msra.gmra.mrb[64].mxu1 %v1960_v63  ;;  %v1932_v58 = vmax.f32 %v1860_v14, 0.0 }
 0x5c4   :  { %v1866_v17 = vadd.f32 %v1865_v36, %v5377_v24  ;;  %v1933_v5 = vmax.f32 %v1862_v45, 0.0 }
 0x5c5   :  { %v1934_v26 = vmax.f32 %v1864_v12, 0.0 }
 0x5c6   :  { %v1935_v2 = vmax.f32 %v1866_v17, 0.0 }
 0x5c7   :  { %v1962_v53 = vpack.c.bf16 %v1934_v26, %v1932_v58 }
 0x5c8   :  { %v1963_v54 = vpack.c.bf16 %v1935_v2, %v1933_v5  ;;  %v1869_v16 = vpop.f32.mrb[72].mxu0 }
 0x5c9   :  { %v1870_v1 = vadd.f32 %v1869_v16, %v5373_v0  ;;  %v1871_v20 = vpop.f32.mrb[73].mxu0 }
 0x5ca   :  { %v1872_v41 = vadd.f32 %v1871_v20, %v5377_v24  ;;  %v1873_v51 = vpop.f32.mrb[74].mxu0  ;;  %2144 = vmatprep.mubr.bf16.mxu1 %v1963_v54 }
 0x5cb   :  { %v1874_v43 = vadd.f32 %v1873_v51, %v5373_v0  ;;  %v1875_v49 = vpop.f32.mrb[75].mxu0  ;;  %2145 = vmatmul.mubr.bf16.gmra.mrb[68].mxu1 %v1962_v53  ;;  %v1936_v37 = vmax.f32 %v1870_v1, 0.0 }
 0x5cc   :  { %v1876_v27 = vadd.f32 %v1875_v49, %v5377_v24  ;;  %v1937_v19 = vmax.f32 %v1872_v41, 0.0 }
 0x5cd   :  { %v1938_v34 = vmax.f32 %v1874_v43, 0.0 }
 0x5ce   :  { %v1939_v29 = vmax.f32 %v1876_v27, 0.0 }
 0x5cf   :  { %v1964_v22 = vpack.c.bf16 %v1938_v34, %v1936_v37 }
 0x5d0   :  { %v1965_v60 = vpack.c.bf16 %v1939_v29, %v1937_v19  ;;  %v1879_v48 = vpop.f32.mrb[76].mxu0 }
 0x5d1   :  { %v1880_v40 = vadd.f32 %v1879_v48, %v5373_v0  ;;  %v1881_v33 = vpop.f32.mrb[77].mxu0 }
 0x5d2   :  { %v1882_v47 = vadd.f32 %v1881_v33, %v5377_v24  ;;  %v1883_v23 = vpop.f32.mrb[78].mxu0  ;;  %2152 = vmatprep.mubr.bf16.mxu1 %v1965_v60 }
 0x5d3   :  { %v1884_v15 = vadd.f32 %v1883_v23, %v5373_v0  ;;  %v1885_v6 = vpop.f32.mrb[79].mxu0  ;;  %2153 = vmatmul.mubr.bf16.gmra.mrb[72].mxu1 %v1964_v22  ;;  %v1940_v3 = vmax.f32 %v1880_v40, 0.0 }
 0x5d4   :  { %v1886_v61 = vadd.f32 %v1885_v6, %v5377_v24  ;;  %v1941_v31 = vmax.f32 %v1882_v47, 0.0 }
 0x5d5   :  { %v1942_v7 = vmax.f32 %v1884_v15, 0.0 }
 0x5d6   :  { %v1943_v63 = vmax.f32 %v1886_v61, 0.0 }
 0x5d7   :  { %v1966_v9 = vpack.c.bf16 %v1942_v7, %v1940_v3 }
 0x5d8   :  { %v1967_v57 = vpack.c.bf16 %v1943_v63, %v1941_v31  ;;  %v1889_v14 = vpop.f32.mrb[80].mxu0 }
 0x5d9   :  { %v1890_v62 = vadd.f32 %v1889_v14, %v5373_v0  ;;  %v1891_v45 = vpop.f32.mrb[81].mxu0 }
 0x5da   :  { %v1892_v30 = vadd.f32 %v1891_v45, %v5377_v24  ;;  %v1893_v12 = vpop.f32.mrb[82].mxu0  ;;  %2160 = vmatprep.mubr.bf16.mxu1 %v1967_v57 }
 0x5db   :  { %v1894_v36 = vadd.f32 %v1893_v12, %v5373_v0  ;;  %v1895_v17 = vpop.f32.mrb[83].mxu0  ;;  %2161 = vmatmul.mubr.bf16.gmra.mrb[76].mxu1 %v1966_v9  ;;  %v1944_v26 = vmax.f32 %v1890_v62, 0.0 }
 0x5dc   :  { %v1896_v58 = vadd.f32 %v1895_v17, %v5377_v24  ;;  %v1945_v2 = vmax.f32 %v1892_v30, 0.0 }
 0x5dd   :  { %v1946_v5 = vmax.f32 %v1894_v36, 0.0 }
 0x5de   :  { %v1947_v53 = vmax.f32 %v1896_v58, 0.0 }
 0x5df   :  { %v1968_v54 = vpack.c.bf16 %v1946_v5, %v1944_v26 }
 0x5e0   :  { %v1969_v16 = vpack.c.bf16 %v1947_v53, %v1945_v2  ;;  %v1899_v1 = vpop.f32.mrb[84].mxu0 }
 0x5e1   :  { %v1900_v20 = vadd.f32 %v1899_v1, %v5373_v0  ;;  %v1901_v41 = vpop.f32.mrb[85].mxu0 }
 0x5e2   :  { %v1902_v51 = vadd.f32 %v1901_v41, %v5377_v24  ;;  %v1903_v43 = vpop.f32.mrb[86].mxu0  ;;  %2168 = vmatprep.mubr.bf16.mxu1 %v1969_v16  ;;  %v3874_v41 = vld [vmem:[%s6155_s8 + $0x10] ss:$8 sps:$4 sm:$0xff]  }
 0x5e3   :  { %v1904_v49 = vadd.f32 %v1903_v43, %v5373_v0  ;;  %v1905_v27 = vpop.f32.mrb[87].mxu0  ;;  %2169 = vmatmul.mubr.bf16.gmra.mrb[80].mxu1 %v1968_v54  ;;  %v1948_v34 = vmax.f32 %v1900_v20, 0.0  ;;  %v3871_v20 = vld [vmem:[%s6155_s8] ss:$8 sps:$4 sm:$0xff]  }
 0x5e4   :  { %v1906_v37 = vadd.f32 %v1905_v27, %v5377_v24  ;;  %v1949_v29 = vmax.f32 %v1902_v51, 0.0  ;;  %v3879_v51 = vld [vmem:[%s6155_s8 + $0x24] ss:$8 sps:$4 sm:$0xff]   ;;  %v3877_v43 = vld [vmem:[%s6155_s8 + $0x20] ss:$8 sps:$4 sm:$0xff]  }
 0x5e5   :  { %v1950_v19 = vmax.f32 %v1904_v49, 0.0  ;;  %v3882_v49 = vld [vmem:[%s6155_s8 + $0x34] ss:$8 sps:$4 sm:$0xff]   ;;  %v3880_v27 = vld [vmem:[%s6155_s8 + $0x30] ss:$8 sps:$4 sm:$0xff]  }
 0x5e6   :  { %v1951_v22 = vmax.f32 %v1906_v37, 0.0  ;;  %v3885_v37 = vld [vmem:[%s6155_s8 + $0x44] ss:$8 sps:$4 sm:$0xff]  }
 0x5e7   :  { %v1970_v60 = vpack.c.bf16 %v1950_v19, %v1948_v34  ;;  %v3883_v34 = vld [vmem:[%s6155_s8 + $0x40] ss:$8 sps:$4 sm:$0xff]  }
 0x5e8   :  { %v1971_v48 = vpack.c.bf16 %v1951_v22, %v1949_v29  ;;  %v1909_v40 = vpop.f32.mrb[88].mxu0 }
 0x5e9   :  { %v1910_v33 = vadd.f32 %v1909_v40, %v5373_v0  ;;  %v1911_v47 = vpop.f32.mrb[89].mxu0  ;;  %v5444_v40 = vld [vmem:[%s6153_s10 + $0x4] ss:$0 sm:$0xff] }
 0x5ea   :  { %v1912_v23 = vadd.f32 %v1911_v47, %v5377_v24  ;;  %v1913_v15 = vpop.f32.mrb[90].mxu0  ;;  %2176 = vmatprep.mubr.bf16.mxu1 %v1971_v48 }
 0x5eb   :  { %v1914_v6 = vadd.f32 %v1913_v15, %v5373_v0  ;;  %v1915_v61 = vpop.f32.mrb[91].mxu0  ;;  %2177 = vmatmul.mubr.bf16.gmra.mrb[84].mxu1 %v1970_v60  ;;  %v1952_v7 = vmax.f32 %v1910_v33, 0.0 }
 0x5ec   :  { %v1916_v3 = vadd.f32 %v1915_v61, %v5377_v24  ;;  %v1953_v63 = vmax.f32 %v1912_v23, 0.0 }
 0x5ed   :  { %v1954_v31 = vmax.f32 %v1914_v6, 0.0 }
 0x5ee   :  { %v1955_v9 = vmax.f32 %v1916_v3, 0.0 }
 0x5ef   :  { %v1972_v57 = vpack.c.bf16 %v1954_v31, %v1952_v7 }
 0x5f0   :  { %v1973_v14 = vpack.c.bf16 %v1955_v9, %v1953_v63  ;;  %v1919_v62 = vpop.f32.mrb[92].mxu0 }
 0x5f1   :  { %v1920_v45 = vadd.f32 %v1919_v62, %v5373_v0  ;;  %v1921_v30 = vpop.f32.mrb[93].mxu0 }
 0x5f2   :  { %v1922_v12 = vadd.f32 %v1921_v30, %v5377_v24  ;;  %v1923_v36 = vpop.f32.mrb[94].mxu0  ;;  %2184 = vmatprep.mubr.bf16.mxu1 %v1973_v14 }
 0x5f3   :  { %v1924_v17 = vadd.f32 %v1923_v36, %v5373_v0  ;;  %v1925_v58 = vpop.f32.mrb[95].mxu0  ;;  %2185 = vmatmul.mubr.bf16.gmra.mrb[88].mxu1 %v1972_v57  ;;  %v1956_v5 = vmax.f32 %v1920_v45, 0.0  ;;  %v3873_v0 = vld [vmem:[%s6155_s8 + $0x4] ss:$8 sps:$4 sm:$0xff]  }
 0x5f4   :  { %v1926_v26 = vadd.f32 %v1925_v58, %v5377_v24  ;;  %v1957_v53 = vmax.f32 %v1922_v12, 0.0  ;;  %v3876_v24 = vld [vmem:[%s6155_s8 + $0x14] ss:$8 sps:$4 sm:$0xff]   ;;  %2600 = vmatprep.subr.bf16.mxu0 %v3873_v0 }
 0x5f5   :  { %v1958_v2 = vmax.f32 %v1924_v17, 0.0  ;;  %2601 = vmatpush1.bf16.msra.mxu0 %v3871_v20 }
 0x5f6   :  { %v1959_v54 = vmax.f32 %v1926_v26, 0.0  ;;  %2602 = vmatprep.subr.bf16.mxu0 %v3876_v24 }
 0x5f7   :  { %v1974_v16 = vpack.c.bf16 %v1958_v2, %v1956_v5 }
 0x5f8   :  { %v1975_v1 = vpack.c.bf16 %v1959_v54, %v1957_v53 }
 0x5f9   :  { %2603 = vmatpush1.bf16.msra.mxu0 %v3874_v41 }
 0x5fa   :  { %2192 = vmatprep.mubr.bf16.mxu1 %v1975_v1  ;;  %2604 = vmatprep.subr.bf16.mxu0 %v3879_v51 }
 0x5fb   :  { %2193 = vmatmul.mubr.bf16.gmra.mrb[92].mxu1 %v1974_v16 }
 0x5fd   :  { %2605 = vmatpush1.bf16.msra.mxu0 %v3877_v43 }
 0x5fe   :  { %2606 = vmatprep.subr.bf16.mxu0 %v3882_v49 }
 0x601   :  { %2607 = vmatpush1.bf16.msra.mxu0 %v3880_v27 }
 0x602   :  { %2608 = vmatprep.subr.bf16.mxu0 %v3885_v37 }
 0x605   :  { %2609 = vmatpush1.bf16.msra.mxu0 %v3883_v34 }
 0x696   :  { %v3574_v19 = vpop.f32.mrb[64].mxu1 }
 0x697   :  { %v3575_v29 = vpop.f32.mrb[65].mxu1 }
 0x698   :  { %v3576_v22 = vadd.f32 %v3575_v29, %v3574_v19  ;;  %v3577_v60 = vpop.f32.mrb[66].mxu1 }
 0x699   :  { %v3578_v48 = vpop.f32.mrb[67].mxu1 }
 0x69a   :  { %v2201_v33 = vadd.f32 %v3576_v22, %v5214_v42  ;;  %v3579_v47 = vadd.f32 %v3578_v48, %v3577_v60 }
 0x69c   :  { %v2202_v23 = vadd.f32 %v3579_v47, %v5217_v56  ;;  %v5449_v15 = vadd.f32 %v5444_v40, %v2201_v33 }
 0x69e   :  { %2237 = vadd.xlane.f32.xlu0 %v5449_v15  ;;  %v3580_v6 = vpop.f32.mrb[68].mxu1  ;;  %v5453_v61 = vadd.f32 %v5444_v40, %v2202_v23  ;;  %v2285_v42 = vmul.f32 %v5449_v15, %v5449_v15 }
 0x69f   :  { %v3581_v3 = vpop.f32.mrb[69].mxu1 }
 0x6a0   :  { %v3582_v7 = vadd.f32 %v3581_v3, %v3580_v6  ;;  %2239 = vadd.xlane.f32.xlu1 %v5453_v61  ;;  %v3583_v31 = vpop.f32.mrb[70].mxu1  ;;  %v2286_v57 = vmul.f32 %v5453_v61, %v5453_v61 }
 0x6a1   :  { %v3584_v63 = vpop.f32.mrb[71].mxu1 }
 0x6a2   :  { %v2203_v56 = vadd.f32 %v3582_v7, %v5237_v35  ;;  %v3585_v9 = vadd.f32 %v3584_v63, %v3583_v31  ;;  %2301 = vadd.xlane.f32.xlu0 %v2285_v42  ;;  %v3886_v63 = vld [vmem:[%s6155_s8 + $0x50] ss:$8 sps:$4 sm:$0xff]  }
 0x6a4   :  { %v2204_v14 = vadd.f32 %v3585_v9, %v5240_v18  ;;  %2303 = vadd.xlane.f32.xlu1 %v2286_v57  ;;  %v5463_v62 = vadd.f32 %v5444_v40, %v2203_v56 }
 0x6a6   :  { %2241 = vadd.xlane.f32.xlu0 %v5463_v62  ;;  %v3586_v45 = vpop.f32.mrb[72].mxu1  ;;  %v5467_v30 = vadd.f32 %v5444_v40, %v2204_v14  ;;  %v2287_v17 = vmul.f32 %v5463_v62, %v5463_v62  ;;  %v3889_v14 = vld [vmem:[%s6155_s8 + $0x60] ss:$8 sps:$4 sm:$0xff]  }
 0x6a7   :  { %v3587_v12 = vpop.f32.mrb[73].mxu1 }
 0x6a8   :  { %v3588_v36 = vadd.f32 %v3587_v12, %v3586_v45  ;;  %2243 = vadd.xlane.f32.xlu1 %v5467_v30  ;;  %v3589_v35 = vpop.f32.mrb[74].mxu1  ;;  %v2288_v5 = vmul.f32 %v5467_v30, %v5467_v30  ;;  %v3891_v45 = vld [vmem:[%s6155_s8 + $0x64] ss:$8 sps:$4 sm:$0xff]  }
 0x6a9   :  { %v3590_v58 = vpop.f32.mrb[75].mxu1 }
 0x6aa   :  { %v2205_v18 = vadd.f32 %v3588_v36, %v5260_v59  ;;  %v3591_v26 = vadd.f32 %v3590_v58, %v3589_v35  ;;  %2305 = vadd.xlane.f32.xlu0 %v2287_v17 }
 0x6ac   :  { %v2206_v2 = vadd.f32 %v3591_v26, %v5263_v11  ;;  %2307 = vadd.xlane.f32.xlu1 %v2288_v5  ;;  %v5477_v53 = vadd.f32 %v5444_v40, %v2205_v18  ;;  %v3892_v26 = vld [vmem:[%s6155_s8 + $0x70] ss:$8 sps:$4 sm:$0xff]   ;;  %v3894_v5 = vld [vmem:[%s6155_s8 + $0x74] ss:$8 sps:$4 sm:$0xff]  }
 0x6ae   :  { %2245 = vadd.xlane.f32.xlu0 %v5477_v53  ;;  %v3592_v54 = vpop.f32.mrb[76].mxu1  ;;  %v5481_v16 = vadd.f32 %v5444_v40, %v2206_v2  ;;  %v2289_v0 = vmul.f32 %v5477_v53, %v5477_v53 }
 0x6af   :  { %v3593_v1 = vpop.f32.mrb[77].mxu1 }
 0x6b0   :  { %v3594_v20 = vadd.f32 %v3593_v1, %v3592_v54  ;;  %2247 = vadd.xlane.f32.xlu1 %v5481_v16  ;;  %v3595_v59 = vpop.f32.mrb[78].mxu1  ;;  %v2290_v51 = vmul.f32 %v5481_v16, %v5481_v16 }
 0x6b1   :  { %v3596_v24 = vpop.f32.mrb[79].mxu1 }
 0x6b2   :  { %v2207_v11 = vadd.f32 %v3594_v20, %v5283_v39  ;;  %v3597_v41 = vadd.f32 %v3596_v24, %v3595_v59  ;;  %2309 = vadd.xlane.f32.xlu0 %v2289_v0 }
 0x6b4   :  { %v2208_v43 = vadd.f32 %v3597_v41, %v5286_v4  ;;  %2311 = vadd.xlane.f32.xlu1 %v2290_v51  ;;  %v5491_v49 = vadd.f32 %v5444_v40, %v2207_v11 }
 0x6b6   :  { %2249 = vadd.xlane.f32.xlu0 %v5491_v49  ;;  %v3598_v27 = vpop.f32.mrb[80].mxu1  ;;  %v5495_v37 = vadd.f32 %v5444_v40, %v2208_v43  ;;  %v2291_v29 = vmul.f32 %v5491_v49, %v5491_v49 }
 0x6b7   :  { %v3599_v34 = vpop.f32.mrb[81].mxu1 }
 0x6b8   :  { %v3600_v19 = vadd.f32 %v3599_v34, %v3598_v27  ;;  %2251 = vadd.xlane.f32.xlu1 %v5495_v37  ;;  %v3601_v39 = vpop.f32.mrb[82].mxu1  ;;  %v2292_v48 = vmul.f32 %v5495_v37, %v5495_v37 }
 0x6b9   :  { %v3602_v22 = vpop.f32.mrb[83].mxu1 }
 0x6ba   :  { %v2209_v4 = vadd.f32 %v3600_v19, %v5302_v38  ;;  %v3603_v60 = vadd.f32 %v3602_v22, %v3601_v39  ;;  %2313 = vadd.xlane.f32.xlu0 %v2291_v29 }
 0x6bc   :  { %v2210_v33 = vadd.f32 %v3603_v60, %v5305_v32  ;;  %2315 = vadd.xlane.f32.xlu1 %v2292_v48  ;;  %v5505_v47 = vadd.f32 %v5444_v40, %v2209_v4  ;;  %v3888_v32 = vld [vmem:[%s6155_s8 + $0x54] ss:$8 sps:$4 sm:$0xff]   ;;  %v3896_v60 = vld [vmem:[%s6156_s9] sm:$0xff]   ;;  %v3898_v48 = vld [vmem:[%s6156_s9 + $0x8] sm:$0xff]  }
 0x6bd   :  { %2610 = vmatprep.subr.bf16.mxu0 %v3888_v32  ;;  %v3905_v32 = vld [vmem:[%s6156_s9 + $0x68] sm:$0xff]  }
 0x6be   :  { %2253 = vadd.xlane.f32.xlu0 %v5505_v47  ;;  %v3604_v23 = vpop.f32.mrb[84].mxu1  ;;  %v5509_v6 = vadd.f32 %v5444_v40, %v2210_v33  ;;  %v2293_v31 = vmul.f32 %v5505_v47, %v5505_v47  ;;  %2611 = vmatpush1.bf16.msra.mxu0 %v3886_v63  ;;  %v3899_v33 = vld [vmem:[%s6156_s9 + $0x50] sm:$0xff]  }
 0x6bf   :  { %v3605_v3 = vpop.f32.mrb[85].mxu1  ;;  %2612 = vmatprep.subr.bf16.mxu0 %v3891_v45  ;;  %v3907_v63 = vld [vmem:[%s6156_s9 + $0x70] sm:$0xff]  }
 0x6c0   :  { %v3606_v7 = vadd.f32 %v3605_v3, %v3604_v23  ;;  %2255 = vadd.xlane.f32.xlu1 %v5509_v6  ;;  %v3607_v38 = vpop.f32.mrb[86].mxu1  ;;  %v2294_v57 = vmul.f32 %v5509_v6, %v5509_v6  ;;  %v3900_v23 = vld [vmem:[%s6156_s9 + $0x10] sm:$0xff]   ;;  %v3901_v3 = vld [vmem:[%s6156_s9 + $0x58] sm:$0xff]  }
 0x6c1   :  { %v3608_v42 = vpop.f32.mrb[87].mxu1 }
 0x6c2   :  { %v2211_v56 = vadd.f32 %v3606_v7, %v5317_v28  ;;  %v3609_v9 = vadd.f32 %v3608_v42, %v3607_v38  ;;  %2317 = vadd.xlane.f32.xlu0 %v2293_v31  ;;  %2613 = vmatpush1.bf16.msra.mxu0 %v3889_v14  ;;  %v3902_v7 = vld [vmem:[%s6156_s9 + $0x18] sm:$0xff]   ;;  %v3903_v38 = vld [vmem:[%s6156_s9 + $0x60] sm:$0xff]   ;;  %v3906_v42 = vld [vmem:[%s6156_s9 + $0x28] sm:$0xff]  }
 0x6c3   :  { %2614 = vmatprep.subr.bf16.mxu0 %v3894_v5  ;;  %v3904_v31 = vld [vmem:[%s6156_s9 + $0x20] sm:$0xff]  }
 0x6c4   :  { %v2212_v12 = vadd.f32 %v3609_v9, %v5320_v25  ;;  %2319 = vadd.xlane.f32.xlu1 %v2294_v57  ;;  %v5531_v28 = vadd.f32 %v5444_v40, %v2211_v56  ;;  %v3908_v56 = vld [vmem:[%s6156_s9 + $0x30] sm:$0xff]  }
 0x6c6   :  { %2257 = vadd.xlane.f32.xlu0 %v5531_v28  ;;  %v3610_v36 = vpop.f32.mrb[88].mxu1  ;;  %v5535_v35 = vadd.f32 %v5444_v40, %v2212_v12  ;;  %v2295_v25 = vmul.f32 %v5531_v28, %v5531_v28  ;;  %2615 = vmatpush1.bf16.msra.mxu0 %v3892_v26 }
 0x6c7   :  { %v3611_v17 = vpop.f32.mrb[89].mxu1 }
 0x6c8   :  { %v3612_v58 = vadd.f32 %v3611_v17, %v3610_v36  ;;  %2259 = vadd.xlane.f32.xlu1 %v5535_v35  ;;  %v3613_v18 = vpop.f32.mrb[90].mxu1  ;;  %v2296_v20 = vmul.f32 %v5535_v35, %v5535_v35 }
 0x6c9   :  { %v3614_v2 = vpop.f32.mrb[91].mxu1 }
 0x6ca   :  { %v2213_v54 = vadd.f32 %v3612_v58, %v5331_v13  ;;  %v3615_v1 = vadd.f32 %v3614_v2, %v3613_v18  ;;  %2321 = vadd.xlane.f32.xlu0 %v2295_v25 }
 0x6cc   :  { %v2214_v59 = vadd.f32 %v3615_v1, %v5334_v8  ;;  %2323 = vadd.xlane.f32.xlu1 %v2296_v20  ;;  %v5551_v0 = vadd.f32 %v5444_v40, %v2213_v54 }
 0x6ce   :  { %2261 = vadd.xlane.f32.xlu0 %v5551_v0  ;;  %v3616_v24 = vpop.f32.mrb[92].mxu1  ;;  %v5555_v11 = vadd.f32 %v5444_v40, %v2214_v59  ;;  %v2297_v43 = vmul.f32 %v5551_v0, %v5551_v0 }
 0x6cf   :  { %v3617_v13 = vpop.f32.mrb[93].mxu1 }
 0x6d0   :  { %v3618_v41 = vadd.f32 %v3617_v13, %v3616_v24  ;;  %2263 = vadd.xlane.f32.xlu1 %v5555_v11  ;;  %v3619_v51 = vpop.f32.mrb[94].mxu1  ;;  %v2298_v19 = vmul.f32 %v5555_v11, %v5555_v11 }
 0x6d1   :  { %v3620_v27 = vpop.f32.mrb[95].mxu1 }
 0x6d2   :  { %v2215_v8 = vadd.f32 %v3618_v41, %v5343_v46  ;;  %v3621_v34 = vadd.f32 %v3620_v27, %v3619_v51  ;;  %2325 = vadd.xlane.f32.xlu0 %v2297_v43 }
 0x6d4   :  { %v2216_v39 = vadd.f32 %v3621_v34, %v5346_v55  ;;  %2327 = vadd.xlane.f32.xlu1 %v2298_v19  ;;  %v5565_v29 = vadd.f32 %v5444_v40, %v2215_v8  ;;  %v3895_v55 = vld [vmem:[%s6156_s9 + $0x40] sm:$0xff]  }
 0x6d5   :  { %3622 = vmatprep.subr.bf16.mxu1 %v3895_v55 }
 0x6d6   :  { %2265 = vadd.xlane.f32.xlu0 %v5565_v29  ;;  %v5569_v22 = vadd.f32 %v5444_v40, %v2216_v39  ;;  %v2299_v46 = vmul.f32 %v5565_v29, %v5565_v29  ;;  %v3897_v40 = vld [vmem:[%s6156_s9 + $0x48] sm:$0xff]   ;;  %3623 = vmatpush3.bf16.msra.mxu1 %v3896_v60 }
 0x6d7   :  { %3624 = vmatprep.subr.bf16.mxu1 %v3897_v40 }
 0x6d8   :  { %2267 = vadd.xlane.f32.xlu1 %v5569_v22  ;;  %v2300_v4 = vmul.f32 %v5569_v22, %v5569_v22 }
 0x6da   :  { %2329 = vadd.xlane.f32.xlu0 %v2299_v46  ;;  %3625 = vmatpush3.bf16.msra.mxu1 %v3898_v48 }
 0x6db   :  { %3626 = vmatprep.subr.bf16.mxu1 %v3899_v33 }
 0x6dc   :  { %2331 = vadd.xlane.f32.xlu1 %v2300_v4 }
 0x6de   :  { %3627 = vmatpush3.bf16.msra.mxu1 %v3900_v23 }
 0x6df   :  { %3628 = vmatprep.subr.bf16.mxu1 %v3901_v3 }
 0x6e2   :  { %3629 = vmatpush3.bf16.msra.mxu1 %v3902_v7 }
 0x6e3   :  { %3630 = vmatprep.subr.bf16.mxu1 %v3903_v38  ;;  %v5628_v38 = vld [vmem:[%s6153_s10 + $0x2] ss:$0 sm:$0xff] }
 0x6e6   :  { %3631 = vmatpush3.bf16.msra.mxu1 %v3904_v31 }
 0x6e7   :  { %3632 = vmatprep.subr.bf16.mxu1 %v3905_v32 }
 0x6ea   :  { %3633 = vmatpush3.bf16.msra.mxu1 %v3906_v42 }
 0x6eb   :  { %3634 = vmatprep.subr.bf16.mxu1 %v3907_v63 }
 0x6ee   :  { %3635 = vmatpush3.bf16.msra.mxu1 %v3908_v56 }
 0x72b   :  { %v2238_v9 = vpop.xlane.xlu0 %2237 }
 0x72c   :  { %v2269_v57 = vmul.f32 0.0078125, %v2238_v9 }
 0x72d   :  { %v2240_v14 = vpop.xlane.xlu1 %2239 }
 0x72e   :  { %v2270_v45 = vmul.f32 0.0078125, %v2240_v14  ;;  %v2349_v36 = vmul.f32 %v2269_v57, %v2269_v57  ;;  %v2381_v40 = vsub.f32 %v5449_v15, %v2269_v57 }
 0x72f   :  { %v2302_v12 = vpop.xlane.xlu0 %2301 }
 0x730   :  { %v2333_v17 = vmul.f32 0.0078125, %v2302_v12  ;;  %v2350_v18 = vmul.f32 %v2270_v45, %v2270_v45  ;;  %v2382_v31 = vsub.f32 %v5453_v61, %v2270_v45  ;;  %v5639_v61 = vld [vmem:[%s6153_s10 + $0x3] ss:$0 sm:$0xff] }
 0x731   :  { %v2304_v58 = vpop.xlane.xlu1 %2303 }
 0x732   :  { %v2365_v25 = vsub.f32 %v2333_v17, %v2349_v36  ;;  %v2334_v26 = vmul.f32 0.0078125, %v2304_v58 }
 0x733   :  { %v2242_v5 = vpop.xlane.xlu0 %2241 }
 0x734   :  { %v2397_v2 = vadd.f32 1e-05, %v2365_v25  ;;  %v2366_v54 = vsub.f32 %v2334_v26, %v2350_v18  ;;  %v2271_v1 = vmul.f32 0.0078125, %v2242_v5 }
 0x735   :  { %v2244_v20 = vpop.xlane.xlu1 %2243 }
 0x736   :  { %4071 = vrsqrt.f32 %v2397_v2  ;;  %v2398_v59 = vadd.f32 1e-05, %v2366_v54  ;;  %v2272_v24 = vmul.f32 0.0078125, %v2244_v20  ;;  %v2351_v41 = vmul.f32 %v2271_v1, %v2271_v1 }
 0x737   :  { %v2306_v13 = vpop.xlane.xlu0 %2305  ;;  %v2383_v26 = vsub.f32 %v5463_v62, %v2271_v1 }
 0x738   :  { %4073 = vrsqrt.f32 %v2398_v59  ;;  %v2335_v51 = vmul.f32 0.0078125, %v2306_v13  ;;  %v2352_v27 = vmul.f32 %v2272_v24, %v2272_v24 }
 0x739   :  { %v2308_v43 = vpop.xlane.xlu1 %2307 }
 0x73a   :  { %v2367_v8 = vsub.f32 %v2335_v51, %v2351_v41  ;;  %v2336_v34 = vmul.f32 0.0078125, %v2308_v43  ;;  %v2384_v51 = vsub.f32 %v5467_v30, %v2272_v24 }
 0x73b   :  { %v2246_v19 = vpop.xlane.xlu0 %2245 }
 0x73c   :  { %v2399_v39 = vadd.f32 1e-05, %v2367_v8  ;;  %v2368_v46 = vsub.f32 %v2336_v34, %v2352_v27  ;;  %v5618_v4 = vmul.f32 0.0078125, %v2246_v19 }
 0x73d   :  { %v2248_v55 = vpop.xlane.xlu1 %2247 }
 0x73e   :  { %4075 = vrsqrt.f32 %v2399_v39  ;;  %v2400_v60 = vadd.f32 1e-05, %v2368_v46  ;;  %v5621_v48 = vmul.f32 0.0078125, %v2248_v55  ;;  %v2353_v3 = vmul.f32 %v5618_v4, %v5618_v4 }
 0x73f   :  { %v2310_v33 = vpop.xlane.xlu0 %2309 }
 0x740   :  { %v4072_v23 = vpop.eup %4071  ;;  %4077 = vrsqrt.f32 %v2400_v60  ;;  %v2337_v7 = vmul.f32 0.0078125, %v2310_v33  ;;  %v2354_v15 = vmul.f32 %v5621_v48, %v5621_v48 }
 0x741   :  { %v2429_v32 = vmul.f32 %v4072_v23, %v2381_v40  ;;  %v2312_v42 = vpop.xlane.xlu1 %2311 }
 0x742   :  { %v4074_v63 = vpop.eup %4073  ;;  %v2369_v56 = vsub.f32 %v2337_v7, %v2353_v3  ;;  %v2338_v9 = vmul.f32 0.0078125, %v2312_v42  ;;  %v2385_v3 = vsub.f32 %v5477_v53, %v5618_v4 }
 0x743   :  { %v2430_v57 = vmul.f32 %v4074_v63, %v2382_v31  ;;  %v2250_v14 = vpop.xlane.xlu0 %2249  ;;  %v2449_v12 = vmul.f32 %v5628_v38, %v2429_v32 }
 0x744   :  { %v2401_v36 = vadd.f32 1e-05, %v2369_v56  ;;  %v2370_v17 = vsub.f32 %v2338_v9, %v2354_v15  ;;  %v5634_v58 = vmul.f32 0.0078125, %v2250_v14  ;;  %v2386_v9 = vsub.f32 %v5481_v16, %v5621_v48 }
 0x745   :  { %v2252_v45 = vpop.xlane.xlu1 %2251  ;;  %v2450_v18 = vmul.f32 %v5628_v38, %v2430_v57  ;;  %v2469_v54 = vadd.f32 %v5639_v61, %v2449_v12 }
 0x746   :  { %4079 = vrsqrt.f32 %v2401_v36  ;;  %v2402_v25 = vadd.f32 1e-05, %v2370_v17  ;;  %v5643_v5 = vmul.f32 0.0078125, %v2252_v45  ;;  %v2355_v13 = vmul.f32 %v5634_v58, %v5634_v58 }
 0x747   :  { %v2314_v2 = vpop.xlane.xlu0 %2313  ;;  %v2470_v20 = vadd.f32 %v5639_v61, %v2450_v18 }
 0x748   :  { %v4076_v59 = vpop.eup %4075  ;;  %4081 = vrsqrt.f32 %v2402_v25  ;;  %v2339_v41 = vmul.f32 0.0078125, %v2314_v2  ;;  %v2356_v62 = vmul.f32 %v5643_v5, %v5643_v5 }
 0x749   :  { %v2316_v43 = vpop.xlane.xlu1 %2315  ;;  %v2485_v27 = vpack.c.bf16 %v2470_v20, %v2469_v54  ;;  %v2431_v8 = vmul.f32 %v4076_v59, %v2383_v26  ;;  %v2387_v59 = vsub.f32 %v5491_v49, %v5634_v58 }
 0x74a   :  { %v4078_v34 = vpop.eup %4077  ;;  %v2371_v1 = vsub.f32 %v2339_v41, %v2355_v13  ;;  %v2340_v19 = vmul.f32 0.0078125, %v2316_v43 }
 0x74b   :  { %v2254_v39 = vpop.xlane.xlu0 %2253  ;;  %2633 = vmatmul.mubr.bf16.vlgmr.msra.gmra.mrb[96].mxu0 %v2485_v27  ;;  %v2432_v46 = vmul.f32 %v4078_v34, %v2384_v51  ;;  %v2451_v55 = vmul.f32 %v5628_v38, %v2431_v8 }
 0x74c   :  { %v2403_v60 = vadd.f32 1e-05, %v2371_v1  ;;  %v2372_v40 = vsub.f32 %v2340_v19, %v2356_v62  ;;  %v5653_v33 = vmul.f32 0.0078125, %v2254_v39  ;;  %2642 = vmatprep.mubr.bf16.mxu0 %v4215_v52  ;;  %v2388_v62 = vsub.f32 %v5495_v37, %v5643_v5 }
 0x74d   :  { %v2256_v30 = vpop.xlane.xlu1 %2255  ;;  %v2452_v24 = vmul.f32 %v5628_v38, %v2432_v46  ;;  %v2471_v32 = vadd.f32 %v5639_v61, %v2451_v55 }
 0x74e   :  { %4083 = vrsqrt.f32 %v2403_v60  ;;  %v2404_v23 = vadd.f32 1e-05, %v2372_v40  ;;  %v5659_v7 = vmul.f32 0.0078125, %v2256_v30  ;;  %v2357_v15 = vmul.f32 %v5653_v33, %v5653_v33 }
 0x74f   :  { %v2318_v31 = vpop.xlane.xlu0 %2317  ;;  %v2472_v42 = vadd.f32 %v5639_v61, %v2452_v24 }
 0x750   :  { %v4080_v63 = vpop.eup %4079  ;;  %4085 = vrsqrt.f32 %v2404_v23  ;;  %v2341_v56 = vmul.f32 0.0078125, %v2318_v31  ;;  %v2358_v4 = vmul.f32 %v5659_v7, %v5659_v7 }
 0x751   :  { %v2320_v57 = vpop.xlane.xlu1 %2319  ;;  %v2486_v14 = vpack.c.bf16 %v2472_v42, %v2471_v32  ;;  %v2433_v12 = vmul.f32 %v4080_v63, %v2385_v3  ;;  %v2389_v32 = vsub.f32 %v5505_v47, %v5653_v33 }
 0x752   :  { %v4082_v53 = vpop.eup %4081  ;;  %v2373_v36 = vsub.f32 %v2341_v56, %v2357_v15  ;;  %v2342_v17 = vmul.f32 0.0078125, %v2320_v57 }
 0x753   :  { %v2258_v45 = vpop.xlane.xlu0 %2257  ;;  %2643 = vmatmul.mubr.bf16.gmra.mrb[100].mxu0 %v2486_v14  ;;  %v2434_v18 = vmul.f32 %v4082_v53, %v2386_v9  ;;  %v2453_v25 = vmul.f32 %v5628_v38, %v2433_v12  ;;  %v2390_v12 = vsub.f32 %v5509_v6, %v5659_v7 }
 0x754   :  { %v2405_v26 = vadd.f32 1e-05, %v2373_v36  ;;  %v2374_v2 = vsub.f32 %v2342_v17, %v2358_v4  ;;  %v5670_v54 = vmul.f32 0.0078125, %v2258_v45  ;;  %2652 = vmatprep.mubr.bf16.mxu0 %v4215_v52 }
 0x755   :  { %v2260_v16 = vpop.xlane.xlu1 %2259  ;;  %v2454_v48 = vmul.f32 %v5628_v38, %v2434_v18  ;;  %v2473_v51 = vadd.f32 %v5639_v61, %v2453_v25 }
 0x756   :  { %4087 = vrsqrt.f32 %v2405_v26  ;;  %v2406_v20 = vadd.f32 1e-05, %v2374_v2  ;;  %v5676_v13 = vmul.f32 0.0078125, %v2260_v16  ;;  %v2359_v8 = vmul.f32 %v5670_v54, %v5670_v54 }
 0x757   :  { %v2322_v41 = vpop.xlane.xlu0 %2321  ;;  %v2474_v43 = vadd.f32 %v5639_v61, %v2454_v48 }
 0x758   :  { %v4084_v27 = vpop.eup %4083  ;;  %4089 = vrsqrt.f32 %v2406_v20  ;;  %v2343_v34 = vmul.f32 0.0078125, %v2322_v41  ;;  %v2360_v58 = vmul.f32 %v5676_v13, %v5676_v13 }
 0x759   :  { %v2324_v1 = vpop.xlane.xlu1 %2323  ;;  %v2487_v19 = vpack.c.bf16 %v2474_v43, %v2473_v51  ;;  %v2435_v39 = vmul.f32 %v4084_v27, %v2387_v59  ;;  %v2391_v59 = vsub.f32 %v5531_v28, %v5670_v54 }
 0x75a   :  { %v4086_v49 = vpop.eup %4085  ;;  %v2375_v46 = vsub.f32 %v2343_v34, %v2359_v8  ;;  %v2344_v55 = vmul.f32 0.0078125, %v2324_v1  ;;  %v2392_v1 = vsub.f32 %v5535_v35, %v5676_v13 }
 0x75b   :  { %v2262_v60 = vpop.xlane.xlu0 %2261  ;;  %2653 = vmatmul.mubr.bf16.gmra.mrb[104].mxu0 %v2487_v19  ;;  %v2436_v40 = vmul.f32 %v4086_v49, %v2388_v62  ;;  %v2455_v30 = vmul.f32 %v5628_v38, %v2435_v39 }
 0x75c   :  { %v2407_v24 = vadd.f32 1e-05, %v2375_v46  ;;  %v2376_v23 = vsub.f32 %v2344_v55, %v2360_v58  ;;  %v5687_v3 = vmul.f32 0.0078125, %v2262_v60  ;;  %2662 = vmatprep.mubr.bf16.mxu0 %v4215_v52 }
 0x75d   :  { %v2264_v37 = vpop.xlane.xlu1 %2263  ;;  %v2456_v5 = vmul.f32 %v5628_v38, %v2436_v40  ;;  %v2475_v15 = vadd.f32 %v5639_v61, %v2455_v30 }
 0x75e   :  { %4091 = vrsqrt.f32 %v2407_v24  ;;  %v2408_v31 = vadd.f32 1e-05, %v2376_v23  ;;  %v5693_v42 = vmul.f32 0.0078125, %v2264_v37  ;;  %v2361_v57 = vmul.f32 %v5687_v3, %v5687_v3 }
 0x75f   :  { %v2326_v63 = vpop.xlane.xlu0 %2325  ;;  %v2476_v56 = vadd.f32 %v5639_v61, %v2456_v5  ;;  %v2393_v35 = vsub.f32 %v5551_v0, %v5687_v3 }
 0x760   :  { %v4088_v9 = vpop.eup %4087  ;;  %4093 = vrsqrt.f32 %v2408_v31  ;;  %v2345_v14 = vmul.f32 0.0078125, %v2326_v63  ;;  %v2362_v33 = vmul.f32 %v5693_v42, %v5693_v42  ;;  %v2394_v31 = vsub.f32 %v5555_v11, %v5693_v42 }
 0x761   :  { %v2328_v53 = vpop.xlane.xlu1 %2327  ;;  %v2488_v4 = vpack.c.bf16 %v2476_v56, %v2475_v15  ;;  %v2437_v36 = vmul.f32 %v4088_v9, %v2389_v32 }
 0x762   :  { %v4090_v47 = vpop.eup %4089  ;;  %v2377_v17 = vsub.f32 %v2345_v14, %v2361_v57  ;;  %v2346_v45 = vmul.f32 0.0078125, %v2328_v53 }
 0x763   :  { %v2266_v18 = vpop.xlane.xlu0 %2265  ;;  %2663 = vmatmul.mubr.bf16.gmra.mrb[108].mxu0 %v2488_v4  ;;  %v2438_v25 = vmul.f32 %v4090_v47, %v2390_v12  ;;  %v2457_v26 = vmul.f32 %v5628_v38, %v2437_v36 }
 0x764   :  { %v2409_v2 = vadd.f32 1e-05, %v2377_v17  ;;  %v2378_v16 = vsub.f32 %v2346_v45, %v2362_v33  ;;  %v2283_v48 = vmul.f32 0.0078125, %v2266_v18  ;;  %2672 = vmatprep.mubr.bf16.mxu0 %v4215_v52  ;;  %v3910_v18 = vld [vmem:[%s6156_s9 + $0x38] sm:$0xff]  }
 0x765   :  { %v2268_v6 = vpop.xlane.xlu1 %2267  ;;  %v2458_v7 = vmul.f32 %v5628_v38, %v2438_v25  ;;  %v2477_v43 = vadd.f32 %v5639_v61, %v2457_v26 }
 0x766   :  { %4095 = vrsqrt.f32 %v2409_v2  ;;  %v2410_v20 = vadd.f32 1e-05, %v2378_v16  ;;  %v2284_v41 = vmul.f32 0.0078125, %v2268_v6  ;;  %v2363_v34 = vmul.f32 %v2283_v48, %v2283_v48 }
 0x767   :  { %v2330_v51 = vpop.xlane.xlu0 %2329  ;;  %v2478_v27 = vadd.f32 %v5639_v61, %v2458_v7  ;;  %v2395_v3 = vsub.f32 %v5565_v29, %v2283_v48 }
 0x768   :  { %v4092_v8 = vpop.eup %4091  ;;  %4097 = vrsqrt.f32 %v2410_v20  ;;  %v2347_v62 = vmul.f32 0.0078125, %v2330_v51  ;;  %v2364_v46 = vmul.f32 %v2284_v41, %v2284_v41  ;;  %v2396_v11 = vsub.f32 %v5569_v22, %v2284_v41  ;;  %v3909_v22 = vld [vmem:[%s6156_s9 + $0x78] sm:$0xff]  }
 0x769   :  { %v2332_v19 = vpop.xlane.xlu1 %2331  ;;  %v2489_v39 = vpack.c.bf16 %v2478_v27, %v2477_v43  ;;  %v2439_v49 = vmul.f32 %v4092_v8, %v2391_v59  ;;  %3636 = vmatprep.subr.bf16.mxu1 %v3909_v22 }
 0x76a   :  { %v4094_v58 = vpop.eup %4093  ;;  %v2379_v55 = vsub.f32 %v2347_v62, %v2363_v34  ;;  %v2348_v28 = vmul.f32 0.0078125, %v2332_v19  ;;  %3637 = vmatpush3.bf16.msra.mxu1 %v3910_v18 }
 0x76b   :  { %2673 = vmatmul.mubr.bf16.gmra.mrb[112].mxu0 %v2489_v39  ;;  %v2440_v54 = vmul.f32 %v4094_v58, %v2392_v1  ;;  %v2459_v60 = vmul.f32 %v5628_v38, %v2439_v49 }
 0x76c   :  { %v2411_v40 = vadd.f32 1e-05, %v2379_v55  ;;  %v2380_v30 = vsub.f32 %v2348_v28, %v2364_v46  ;;  %2682 = vmatprep.mubr.bf16.mxu0 %v4215_v52 }
 0x76d   :  { %v2460_v24 = vmul.f32 %v5628_v38, %v2440_v54  ;;  %v2479_v13 = vadd.f32 %v5639_v61, %v2459_v60 }
 0x76e   :  { %4099 = vrsqrt.f32 %v2411_v40  ;;  %v2412_v23 = vadd.f32 1e-05, %v2380_v30 }
 0x76f   :  { %v2480_v37 = vadd.f32 %v5639_v61, %v2460_v24 }
 0x770   :  { %v4096_v5 = vpop.eup %4095  ;;  %4101 = vrsqrt.f32 %v2412_v23 }
 0x771   :  { %v2490_v32 = vpack.c.bf16 %v2480_v37, %v2479_v13  ;;  %v2441_v63 = vmul.f32 %v4096_v5, %v2393_v35 }
 0x772   :  { %v4098_v15 = vpop.eup %4097 }
 0x773   :  { %2683 = vmatmul.mubr.bf16.gmra.mrb[116].mxu0 %v2490_v32  ;;  %v2442_v56 = vmul.f32 %v4098_v15, %v2394_v31  ;;  %v2461_v9 = vmul.f32 %v5628_v38, %v2441_v63 }
 0x774   :  { %2692 = vmatprep.mubr.bf16.mxu0 %v4215_v52 }
 0x775   :  { %v2462_v0 = vmul.f32 %v5628_v38, %v2442_v56  ;;  %v2481_v57 = vadd.f32 %v5639_v61, %v2461_v9 }
 0x777   :  { %v2482_v14 = vadd.f32 %v5639_v61, %v2462_v0 }
 0x778   :  { %v4100_v12 = vpop.eup %4099 }
 0x779   :  { %v2491_v42 = vpack.c.bf16 %v2482_v14, %v2481_v57  ;;  %v2443_v53 = vmul.f32 %v4100_v12, %v2395_v3 }
 0x77a   :  { %v4102_v4 = vpop.eup %4101 }
 0x77b   :  { %2693 = vmatmul.mubr.bf16.gmra.mrb[120].mxu0 %v2491_v42  ;;  %v2444_v36 = vmul.f32 %v4102_v4, %v2396_v11  ;;  %v2463_v47 = vmul.f32 %v5628_v38, %v2443_v53 }
 0x77c   :  { %2702 = vmatprep.mubr.bf16.mxu0 %v4215_v52  ;;  %v3269_v52 = vld [vmem:[%s6154_s11 + $0x1] ss:$2 sm:$0x3] }
 0x77d   :  { %v2464_v33 = vmul.f32 %v5628_v38, %v2444_v36  ;;  %v2483_v29 = vadd.f32 %v5639_v61, %v2463_v47  ;;  %v5744_v38 = vrot.slane %v3269_v52, %v1727_v50 }
 0x77f   :  { %v2484_v17 = vadd.f32 %v5639_v61, %v2464_v33  ;;  %v5748_v61 = vrot.slane %v3269_v52, %v1731_v44 }
 0x781   :  { %v2492_v45 = vpack.c.bf16 %v2484_v17, %v2483_v29 }
 0x783   :  { %2703 = vmatmul.mubr.bf16.gmra.mrb[124].mxu0 %v2492_v45 }
 0x81e   :  { %v2634_v25 = vpop.f32.mrb[96].mxu0 }
 0x81f   :  { %v2635_v26 = vadd.f32 %v2634_v25, %v5744_v38  ;;  %v2636_v2 = vpop.f32.mrb[97].mxu0 }
 0x820   :  { %v2637_v16 = vadd.f32 %v2636_v2, %v5748_v61  ;;  %v2638_v48 = vpop.f32.mrb[98].mxu0 }
 0x821   :  { %v2639_v6 = vadd.f32 %v2638_v48, %v5744_v38  ;;  %v2640_v7 = vpop.f32.mrb[99].mxu0  ;;  %v2713_v59 = vmax.f32 %v2635_v26, 0.0 }
 0x822   :  { %v2641_v20 = vadd.f32 %v2640_v7, %v5748_v61  ;;  %v2714_v50 = vmax.f32 %v2637_v16, 0.0 }
 0x823   :  { %v2715_v41 = vmax.f32 %v2639_v6, 0.0 }
 0x824   :  { %v2716_v51 = vmax.f32 %v2641_v20, 0.0 }
 0x825   :  { %v2745_v43 = vpack.c.bf16 %v2715_v41, %v2713_v59 }
 0x826   :  { %v2746_v21 = vpack.c.bf16 %v2716_v51, %v2714_v50  ;;  %v2644_v44 = vpop.f32.mrb[100].mxu0 }
 0x827   :  { %v2645_v27 = vadd.f32 %v2644_v44, %v5744_v38  ;;  %v2646_v8 = vpop.f32.mrb[101].mxu0 }
 0x828   :  { %v2647_v34 = vadd.f32 %v2646_v8, %v5748_v61  ;;  %v2648_v62 = vpop.f32.mrb[102].mxu0  ;;  %2925 = vmatprep.mubr.bf16.mxu1 %v2746_v21 }
 0x829   :  { %v2649_v1 = vadd.f32 %v2648_v62, %v5744_v38  ;;  %v2650_v19 = vpop.f32.mrb[103].mxu0  ;;  %2926 = vmatmul.mubr.bf16.vlgmr.msra.gmra.mrb[96].mxu1 %v2745_v43  ;;  %v2717_v49 = vmax.f32 %v2645_v27, 0.0 }
 0x82a   :  { %v2651_v39 = vadd.f32 %v2650_v19, %v5748_v61  ;;  %v2718_v46 = vmax.f32 %v2647_v34, 0.0 }
 0x82b   :  { %v2719_v58 = vmax.f32 %v2649_v1, 0.0 }
 0x82c   :  { %v2720_v55 = vmax.f32 %v2651_v39, 0.0 }
 0x82d   :  { %v2747_v28 = vpack.c.bf16 %v2719_v58, %v2717_v49 }
 0x82e   :  { %v2748_v54 = vpack.c.bf16 %v2720_v55, %v2718_v46  ;;  %v2654_v60 = vpop.f32.mrb[104].mxu0 }
 0x82f   :  { %v2655_v40 = vadd.f32 %v2654_v60, %v5744_v38  ;;  %v2656_v30 = vpop.f32.mrb[105].mxu0 }
 0x830   :  { %v2657_v24 = vadd.f32 %v2656_v30, %v5748_v61  ;;  %v2658_v23 = vpop.f32.mrb[106].mxu0  ;;  %2933 = vmatprep.mubr.bf16.mxu1 %v2748_v54 }
 0x831   :  { %v2659_v35 = vadd.f32 %v2658_v23, %v5744_v38  ;;  %v2660_v13 = vpop.f32.mrb[107].mxu0  ;;  %2934 = vmatmul.mubr.bf16.gmra.mrb[100].mxu1 %v2747_v28  ;;  %v2721_v5 = vmax.f32 %v2655_v40, 0.0 }
 0x832   :  { %v2661_v37 = vadd.f32 %v2660_v13, %v5748_v61  ;;  %v2722_v32 = vmax.f32 %v2657_v24, 0.0 }
 0x833   :  { %v2723_v31 = vmax.f32 %v2659_v35, 0.0 }
 0x834   :  { %v2724_v63 = vmax.f32 %v2661_v37, 0.0 }
 0x835   :  { %v2749_v15 = vpack.c.bf16 %v2723_v31, %v2721_v5 }
 0x836   :  { %v2750_v56 = vpack.c.bf16 %v2724_v63, %v2722_v32  ;;  %v2664_v9 = vpop.f32.mrb[108].mxu0 }
 0x837   :  { %v2665_v0 = vadd.f32 %v2664_v9, %v5744_v38  ;;  %v2666_v3 = vpop.f32.mrb[109].mxu0 }
 0x838   :  { %v2667_v57 = vadd.f32 %v2666_v3, %v5748_v61  ;;  %v2668_v14 = vpop.f32.mrb[110].mxu0  ;;  %2941 = vmatprep.mubr.bf16.mxu1 %v2750_v56 }
 0x839   :  { %v2669_v12 = vadd.f32 %v2668_v14, %v5744_v38  ;;  %v2670_v11 = vpop.f32.mrb[111].mxu0  ;;  %2942 = vmatmul.mubr.bf16.gmra.mrb[104].mxu1 %v2749_v15  ;;  %v2725_v53 = vmax.f32 %v2665_v0, 0.0 }
 0x83a   :  { %v2671_v42 = vadd.f32 %v2670_v11, %v5748_v61  ;;  %v2726_v36 = vmax.f32 %v2667_v57, 0.0 }
 0x83b   :  { %v2727_v4 = vmax.f32 %v2669_v12, 0.0 }
 0x83c   :  { %v2728_v47 = vmax.f32 %v2671_v42, 0.0 }
 0x83d   :  { %v2751_v33 = vpack.c.bf16 %v2727_v4, %v2725_v53 }
 0x83e   :  { %v2752_v29 = vpack.c.bf16 %v2728_v47, %v2726_v36  ;;  %v2674_v17 = vpop.f32.mrb[112].mxu0  ;;  %v5785_v36 = vld [vmem:[%s6153_s10 + $0x5] ss:$0 sm:$0xff] }
 0x83f   :  { %v2675_v45 = vadd.f32 %v2674_v17, %v5744_v38  ;;  %v2676_v22 = vpop.f32.mrb[113].mxu0 }
 0x840   :  { %v2677_v18 = vadd.f32 %v2676_v22, %v5748_v61  ;;  %v2678_v52 = vpop.f32.mrb[114].mxu0  ;;  %2949 = vmatprep.mubr.bf16.mxu1 %v2752_v29  ;;  %v2993_v22 = vld [vmem:[%s6157_s3 + $0x8] sm:$0xff] }
 0x841   :  { %v2679_v25 = vadd.f32 %v2678_v52, %v5744_v38  ;;  %v2680_v26 = vpop.f32.mrb[115].mxu0  ;;  %2950 = vmatmul.mubr.bf16.gmra.mrb[108].mxu1 %v2751_v33  ;;  %v2729_v16 = vmax.f32 %v2675_v45, 0.0 }
 0x842   :  { %v2681_v2 = vadd.f32 %v2680_v26, %v5748_v61  ;;  %v2730_v6 = vmax.f32 %v2677_v18, 0.0 }
 0x843   :  { %v2731_v48 = vmax.f32 %v2679_v25, 0.0 }
 0x844   :  { %v2732_v7 = vmax.f32 %v2681_v2, 0.0 }
 0x845   :  { %v2753_v20 = vpack.c.bf16 %v2731_v48, %v2729_v16 }
 0x846   :  { %v2754_v59 = vpack.c.bf16 %v2732_v7, %v2730_v6  ;;  %v2684_v41 = vpop.f32.mrb[116].mxu0 }
 0x847   :  { %v2685_v50 = vadd.f32 %v2684_v41, %v5744_v38  ;;  %v2686_v51 = vpop.f32.mrb[117].mxu0 }
 0x848   :  { %v2687_v43 = vadd.f32 %v2686_v51, %v5748_v61  ;;  %v2688_v21 = vpop.f32.mrb[118].mxu0  ;;  %2957 = vmatprep.mubr.bf16.mxu1 %v2754_v59  ;;  %v2995_v51 = vld [vmem:[%s6157_s3 + $0x18] sm:$0xff] }
 0x849   :  { %v2689_v44 = vadd.f32 %v2688_v21, %v5744_v38  ;;  %v2690_v27 = vpop.f32.mrb[119].mxu0  ;;  %2958 = vmatmul.mubr.bf16.gmra.mrb[112].mxu1 %v2753_v20  ;;  %v2733_v34 = vmax.f32 %v2685_v50, 0.0  ;;  %v2994_v20 = vld [vmem:[%s6157_s3 + $0x10] sm:$0xff] }
 0x84a   :  { %v2691_v8 = vadd.f32 %v2690_v27, %v5748_v61  ;;  %v2734_v1 = vmax.f32 %v2687_v43, 0.0 }
 0x84b   :  { %v2735_v62 = vmax.f32 %v2689_v44, 0.0 }
 0x84c   :  { %v2736_v19 = vmax.f32 %v2691_v8, 0.0 }
 0x84d   :  { %v2755_v39 = vpack.c.bf16 %v2735_v62, %v2733_v34 }
 0x84e   :  { %v2756_v49 = vpack.c.bf16 %v2736_v19, %v2734_v1  ;;  %v2694_v58 = vpop.f32.mrb[120].mxu0 }
 0x84f   :  { %v2695_v46 = vadd.f32 %v2694_v58, %v5744_v38  ;;  %v2696_v55 = vpop.f32.mrb[121].mxu0 }
 0x850   :  { %v2697_v28 = vadd.f32 %v2696_v55, %v5748_v61  ;;  %v2698_v54 = vpop.f32.mrb[122].mxu0  ;;  %2965 = vmatprep.mubr.bf16.mxu1 %v2756_v49 }
 0x851   :  { %v2699_v60 = vadd.f32 %v2698_v54, %v5744_v38  ;;  %v2700_v40 = vpop.f32.mrb[123].mxu0  ;;  %2966 = vmatmul.mubr.bf16.gmra.mrb[116].mxu1 %v2755_v39  ;;  %v2737_v24 = vmax.f32 %v2695_v46, 0.0  ;;  %v2996_v39 = vld [vmem:[%s6157_s3 + $0x20] sm:$0xff]  ;;  %v2997_v54 = vld [vmem:[%s6157_s3 + $0x28] sm:$0xff] }
 0x852   :  { %v2701_v30 = vadd.f32 %v2700_v40, %v5748_v61  ;;  %v2738_v35 = vmax.f32 %v2697_v28, 0.0 }
 0x853   :  { %v2739_v23 = vmax.f32 %v2699_v60, 0.0 }
 0x854   :  { %v2740_v13 = vmax.f32 %v2701_v30, 0.0 }
 0x855   :  { %v2757_v37 = vpack.c.bf16 %v2739_v23, %v2737_v24 }
 0x856   :  { %v2758_v5 = vpack.c.bf16 %v2740_v13, %v2738_v35  ;;  %v2704_v31 = vpop.f32.mrb[124].mxu0 }
 0x857   :  { %v2705_v32 = vadd.f32 %v2704_v31, %v5744_v38  ;;  %v2706_v63 = vpop.f32.mrb[125].mxu0 }
 0x858   :  { %v2707_v15 = vadd.f32 %v2706_v63, %v5748_v61  ;;  %v2708_v56 = vpop.f32.mrb[126].mxu0  ;;  %2973 = vmatprep.mubr.bf16.mxu1 %v2758_v5  ;;  %v5831_v5 = vand.u32 127, %v1725_v10 }
 0x859   :  { %v2709_v9 = vadd.f32 %v2708_v56, %v5744_v38  ;;  %v2710_v0 = vpop.f32.mrb[127].mxu0  ;;  %2974 = vmatmul.mubr.bf16.gmra.mrb[120].mxu1 %v2757_v37  ;;  %v2741_v57 = vmax.f32 %v2705_v32, 0.0 }
 0x85a   :  { %v2711_v3 = vadd.f32 %v2710_v0, %v5748_v61  ;;  %v2742_v12 = vmax.f32 %v2707_v15, 0.0  ;;  %v2992_v61 = vld [vmem:[%s6157_s3] sm:$0xff]  ;;  %vm3160_vm0 = vcmp.eq.s32.totalorder %v5831_v5, 12  ;;  %vm3161_vm1 = vcmp.eq.s32.totalorder %v5831_v5, 13 }
 0x85b   :  { %v2743_v14 = vmax.f32 %v2709_v9, 0.0  ;;  %v2998_v9 = vld [vmem:[%s6157_s3 + $0x30] sm:$0xff]  ;;  %vm5860_vm2 = vmor %vm3160_vm0, %vm3161_vm1  ;;  %vm3163_vm3 = vcmp.eq.s32.totalorder %v5831_v5, 15  ;;  %vm3165_vm4 = vcmp.ge.s32.totalorder %v5831_v5, 16  ;;  %vm3166_vm5 = vcmp.lt.s32.totalorder %v5831_v5, 20 }
 0x85c   :  { %v2744_v11 = vmax.f32 %v2711_v3, 0.0  ;;  %vm5874_vm6 = vmor %vm5860_vm2, %vm3163_vm3  ;;  %vm3232_vm8 = vcmp.ge.s32.totalorder %v5831_v5, 20 }
 0x85d   :  { %v2759_v42 = vpack.c.bf16 %v2743_v14, %v2741_v57  ;;  %vm5887_vm7 = vmand %vm3165_vm4, %vm3166_vm5 }
 0x85e   :  { %v2760_v53 = vpack.c.bf16 %v2744_v11, %v2742_v12  ;;  %v2999_v12 = vld [vmem:[%s6157_s3 + $0x38] sm:$0xff] }
 0x860   :  { %2981 = vmatprep.mubr.bf16.mxu1 %v2760_v53 }
 0x861   :  { %2982 = vmatmul.mubr.bf16.gmra.mrb[124].mxu1 %v2759_v42 }
 0x8fc   :  { %v3638_v4 = vpop.f32.mrb[96].mxu1 }
 0x8fd   :  { %v3639_v47 = vpop.f32.mrb[97].mxu1 }
 0x8fe   :  { %v3640_v38 = vadd.f32 %v3639_v47, %v3638_v4  ;;  %v3641_v33 = vpop.f32.mrb[98].mxu1  ;;  %v5852_v4 = vld [vmem:[%s6153_s10 + $0x6] ss:$0 sm:$0xff] }
 0x8ff   :  { %v3642_v29 = vpop.f32.mrb[99].mxu1 }
 0x900   :  { %v5791_v17 = vadd.f32 %v3640_v38, %v5785_v36  ;;  %v3643_v45 = vadd.f32 %v3642_v29, %v3641_v33  ;;  %v5858_v33 = vld [vmem:[%s6153_s10 + $0x7] ss:$0 sm:$0xff] }
 0x902   :  { %v3008_v18 = vadd.f32 %v2992_v61, %v5791_v17  ;;  %v5798_v52 = vadd.f32 %v3643_v45, %v5785_v36  ;;  %v3168_v24 = vmul.f32 1.442695, %v5791_v17 }
 0x904   :  { %v3380_v25 = vmul.f32 -1.442695, %v3008_v18  ;;  %v3009_v26 = vadd.f32 %v2993_v22, %v5798_v52  ;;  %v3644_v2 = vpop.f32.mrb[100].mxu1  ;;  %v3170_v31 = vmul.f32 1.442695, %v5798_v52 }
 0x905   :  { %v3645_v16 = vpop.f32.mrb[101].mxu1 }
 0x906   :  { %4103 = vpow2.f32 %v3380_v25  ;;  %v3381_v48 = vmul.f32 -1.442695, %v3009_v26  ;;  %v3646_v6 = vadd.f32 %v3645_v16, %v3644_v2  ;;  %v3647_v7 = vpop.f32.mrb[102].mxu1 }
 0x907   :  { %v3648_v59 = vpop.f32.mrb[103].mxu1 }
 0x908   :  { %4105 = vpow2.f32 %v3381_v48  ;;  %v5805_v41 = vadd.f32 %v3646_v6, %v5785_v36  ;;  %v3649_v50 = vadd.f32 %v3648_v59, %v3647_v7 }
 0x90a   :  { %v3010_v43 = vadd.f32 %v2994_v20, %v5805_v41  ;;  %v5812_v21 = vadd.f32 %v3649_v50, %v5785_v36  ;;  %v3172_v47 = vmul.f32 1.442695, %v5805_v41  ;;  %v3000_v50 = vld [vmem:[%s6157_s3 + $0x40] sm:$0xff] }
 0x90c   :  { %v3382_v44 = vmul.f32 -1.442695, %v3010_v43  ;;  %v3011_v27 = vadd.f32 %v2995_v51, %v5812_v21  ;;  %v3650_v8 = vpop.f32.mrb[104].mxu1  ;;  %v3174_v25 = vmul.f32 1.442695, %v5812_v21 }
 0x90d   :  { %v3651_v34 = vpop.f32.mrb[105].mxu1 }
 0x90e   :  { %4107 = vpow2.f32 %v3382_v44  ;;  %v3383_v62 = vmul.f32 -1.442695, %v3011_v27  ;;  %v3652_v1 = vadd.f32 %v3651_v34, %v3650_v8  ;;  %v3653_v19 = vpop.f32.mrb[106].mxu1 }
 0x90f   :  { %v3654_v49 = vpop.f32.mrb[107].mxu1 }
 0x910   :  { %v4104_v58 = vpop.eup %4103  ;;  %4109 = vpow2.f32 %v3383_v62  ;;  %v5819_v46 = vadd.f32 %v3652_v1, %v5785_v36  ;;  %v3655_v55 = vadd.f32 %v3654_v49, %v3653_v19 }
 0x911   :  { %v3072_v28 = vadd.f32 1.0, %v4104_v58 }
 0x912   :  { %v4106_v60 = vpop.eup %4105  ;;  %v3012_v40 = vadd.f32 %v2996_v39, %v5819_v46  ;;  %v5826_v30 = vadd.f32 %v3655_v55, %v5785_v36  ;;  %v3176_v59 = vmul.f32 1.442695, %v5819_v46 }
 0x913   :  { %4111 = vrcp.f32 %v3072_v28  ;;  %v3073_v23 = vadd.f32 1.0, %v4106_v60 }
 0x914   :  { %v3384_v35 = vmul.f32 -1.442695, %v3012_v40  ;;  %v3013_v13 = vadd.f32 %v2997_v54, %v5826_v30  ;;  %v3656_v37 = vpop.f32.mrb[108].mxu1  ;;  %v3178_v55 = vmul.f32 1.442695, %v5826_v30  ;;  %v3001_v54 = vld [vmem:[%s6157_s3 + $0x48] sm:$0xff] }
 0x915   :  { %4113 = vrcp.f32 %v3073_v23  ;;  %v3657_v32 = vpop.f32.mrb[109].mxu1 }
 0x916   :  { %4115 = vpow2.f32 %v3384_v35  ;;  %v3385_v63 = vmul.f32 -1.442695, %v3013_v13  ;;  %v3658_v15 = vadd.f32 %v3657_v32, %v3656_v37  ;;  %v3659_v56 = vpop.f32.mrb[110].mxu1 }
 0x917   :  { %4117 = vpow2.f32 %v3168_v24  ;;  %v3660_v0 = vpop.f32.mrb[111].mxu1 }
 0x918   :  { %v4108_v3 = vpop.eup %4107  ;;  %4119 = vpow2.f32 %v3385_v63  ;;  %v5838_v57 = vadd.f32 %v3658_v15, %v5785_v36  ;;  %v3661_v10 = vadd.f32 %v3660_v0, %v3659_v56 }
 0x919   :  { %4121 = vpow2.f32 %v3170_v31  ;;  %v3074_v14 = vadd.f32 1.0, %v4108_v3 }
 0x91a   :  { %v4110_v11 = vpop.eup %4109  ;;  %v3014_v42 = vadd.f32 %v2998_v9, %v5838_v57  ;;  %v5847_v53 = vadd.f32 %v3661_v10, %v5785_v36 }
 0x91b   :  { %4123 = vrcp.f32 %v3074_v14  ;;  %v3075_v38 = vadd.f32 1.0, %v4110_v11 }
 0x91c   :  { %v3386_v29 = vmul.f32 -1.442695, %v3014_v42  ;;  %v3015_v45 = vadd.f32 %v2999_v12, %v5847_v53  ;;  %v3662_v22 = vpop.f32.mrb[112].mxu1  ;;  %v3002_v12 = vld [vmem:[%s6157_s3 + $0x50] sm:$0xff] }
 0x91d   :  { %v4112_v18 = vpop.eup %4111  ;;  %4125 = vrcp.f32 %v3075_v38  ;;  %v3663_v26 = vpop.f32.mrb[113].mxu1 }
 0x91e   :  { %v3124_v2 = vmul.f32 %v4112_v18, %v5852_v4  ;;  %4127 = vpow2.f32 %v3386_v29  ;;  %v3387_v16 = vmul.f32 -1.442695, %v3015_v45  ;;  %v3664_v48 = vadd.f32 %v3663_v26, %v3662_v22  ;;  %v3665_v6 = vpop.f32.mrb[114].mxu1 }
 0x91f   :  { %v4114_v7 = vpop.eup %4113  ;;  %4129 = vpow2.f32 %v3172_v47  ;;  %v3666_v51 = vpop.f32.mrb[115].mxu1 }
 0x920   :  { %v4116_v43 = vpop.eup %4115  ;;  %v3144_v44 = vadd.f32 %v5858_v33, %v3124_v2  ;;  %v3125_v8 = vmul.f32 %v4114_v7, %v5852_v4  ;;  %4131 = vpow2.f32 %v3387_v16  ;;  %v5893_v34 = vadd.f32 %v3664_v48, %v5785_v36  ;;  %v3003_v48 = vld [vmem:[%s6157_s3 + $0x58] sm:$0xff] }
 0x921   :  { %v4118_v62 = vpop.eup %4117  ;;  %4133 = vpow2.f32 %v3174_v25  ;;  %v3076_v1 = vadd.f32 1.0, %v4116_v43  ;;  %v3667_v19 = vadd.f32 %v3666_v51, %v3665_v6  ;;  %v3182_v2 = vmul.f32 1.442695, %v5847_v53 }
 0x922   :  { %v4120_v39 = vpop.eup %4119  ;;  %v3200_v49 = vsel %vm5874_vm6, %v4118_v62, %v3144_v44  ;;  %v3145_v58 = vadd.f32 %v5858_v33, %v3125_v8  ;;  %v3016_v28 = vadd.f32 %v3000_v50, %v5893_v34 }
 0x923   :  { %v4122_v60 = vpop.eup %4121  ;;  %v3216_v40 = vsel %vm5887_vm7, %v5791_v17, %v3200_v49  ;;  %4135 = vrcp.f32 %v3076_v1  ;;  %v3077_v24 = vadd.f32 1.0, %v4120_v39  ;;  %v5908_v23 = vadd.f32 %v3667_v19, %v5785_v36 }
 0x924   :  { %v3233_v35 = vsel %vm3232_vm8, 0.0, %v3216_v40  ;;  %v3201_v13 = vsel %vm5874_vm6, %v4122_v60, %v3145_v58  ;;  %4137 = vpow2.f32 %v3176_v59  ;;  %v3388_v37 = vmul.f32 -1.442695, %v3016_v28  ;;  %v3668_v31 = vpop.f32.mrb[116].mxu1  ;;  %v3004_v60 = vld [vmem:[%s6157_s3 + $0x60] sm:$0xff] }
 0x925   :  { %v4124_v32 = vpop.eup %4123  ;;  %3249 = vst [vmem:[%s6158_s12] sm:$0xff] %v3233_v35  ;;  %v3217_v17 = vsel %vm5887_vm7, %v5798_v52, %v3201_v13  ;;  %4139 = vrcp.f32 %v3077_v24  ;;  %v3017_v63 = vadd.f32 %v3001_v54, %v5908_v23  ;;  %v3669_v15 = vpop.f32.mrb[117].mxu1  ;;  %v3180_v52 = vmul.f32 1.442695, %v5838_v57 }
 0x926   :  { %v3234_v56 = vsel %vm3232_vm8, 0.0, %v3217_v17  ;;  %v3126_v9 = vmul.f32 %v4124_v32, %v5852_v4  ;;  %4141 = vpow2.f32 %v3388_v37  ;;  %v3670_v0 = vadd.f32 %v3669_v15, %v3668_v31  ;;  %v3671_v3 = vpop.f32.mrb[118].mxu1 }
 0x927   :  { %v4126_v10 = vpop.eup %4125  ;;  %3250 = vst [vmem:[%s6158_s12 + $0x8] sm:$0xff] %v3234_v56  ;;  %4143 = vpow2.f32 %v3178_v55  ;;  %v3389_v14 = vmul.f32 -1.442695, %v3017_v63  ;;  %v3672_v11 = vpop.f32.mrb[119].mxu1  ;;  %v3184_v63 = vmul.f32 1.442695, %v5893_v34 }
 0x928   :  { %v4128_v42 = vpop.eup %4127  ;;  %v3146_v47 = vadd.f32 %v5858_v33, %v3126_v9  ;;  %v3127_v38 = vmul.f32 %v4126_v10, %v5852_v4  ;;  %v5934_v61 = vadd.f32 %v3670_v0, %v5785_v36  ;;  %v3673_v29 = vadd.f32 %v3672_v11, %v3671_v3  ;;  %v3005_v0 = vld [vmem:[%s6157_s3 + $0x68] sm:$0xff] }
 0x929   :  { %v4130_v45 = vpop.eup %4129  ;;  %v3078_v22 = vadd.f32 1.0, %v4128_v42  ;;  %4145 = vpow2.f32 %v3389_v14 }
 0x92a   :  { %v4132_v18 = vpop.eup %4131  ;;  %v3202_v25 = vsel %vm5874_vm6, %v4130_v45, %v3146_v47  ;;  %v3147_v26 = vadd.f32 %v5858_v33, %v3127_v38  ;;  %v3018_v16 = vadd.f32 %v3002_v12, %v5934_v61  ;;  %v5948_v50 = vadd.f32 %v3673_v29, %v5785_v36 }
 0x92b   :  { %v4134_v6 = vpop.eup %4133  ;;  %v3218_v7 = vsel %vm5887_vm7, %v5805_v41, %v3202_v25  ;;  %4147 = vrcp.f32 %v3078_v22  ;;  %v3079_v59 = vadd.f32 1.0, %v4132_v18  ;;  %v3186_v29 = vmul.f32 1.442695, %v5908_v23 }
 0x92c   :  { %v3235_v51 = vsel %vm3232_vm8, 0.0, %v3218_v7  ;;  %v3203_v43 = vsel %vm5874_vm6, %v4134_v6, %v3147_v26  ;;  %4149 = vpow2.f32 %v3180_v52  ;;  %v3390_v44 = vmul.f32 -1.442695, %v3018_v16  ;;  %v3674_v8 = vpop.f32.mrb[120].mxu1  ;;  %v3006_v6 = vld [vmem:[%s6157_s3 + $0x70] sm:$0xff] }
 0x92d   :  { %v4136_v62 = vpop.eup %4135  ;;  %3251 = vst [vmem:[%s6158_s12 + $0x10] sm:$0xff] %v3235_v51  ;;  %v3219_v41 = vsel %vm5887_vm7, %v5812_v21, %v3203_v43  ;;  %4151 = vrcp.f32 %v3079_v59  ;;  %v3019_v1 = vadd.f32 %v3003_v48, %v5948_v50  ;;  %v3675_v19 = vpop.f32.mrb[121].mxu1 }
 0x92e   :  { %v4138_v39 = vpop.eup %4137  ;;  %v3236_v49 = vsel %vm3232_vm8, 0.0, %v3219_v41  ;;  %v3128_v58 = vmul.f32 %v4136_v62, %v5852_v4  ;;  %4153 = vpow2.f32 %v3390_v44  ;;  %v3676_v55 = vadd.f32 %v3675_v19, %v3674_v8  ;;  %v3677_v28 = vpop.f32.mrb[122].mxu1 }
 0x92f   :  { %v4140_v54 = vpop.eup %4139  ;;  %3252 = vst [vmem:[%s6158_s12 + $0x18] sm:$0xff] %v3236_v49  ;;  %4155 = vpow2.f32 %v3182_v2  ;;  %v3391_v21 = vmul.f32 -1.442695, %v3019_v1  ;;  %v3678_v40 = vpop.f32.mrb[123].mxu1  ;;  %v3188_v41 = vmul.f32 1.442695, %v5934_v61 }
 0x930   :  { %v4142_v24 = vpop.eup %4141  ;;  %v3148_v35 = vadd.f32 %v5858_v33, %v3128_v58  ;;  %v3129_v13 = vmul.f32 %v4140_v54, %v5852_v4  ;;  %v5973_v37 = vadd.f32 %v3676_v55, %v5785_v36  ;;  %v3679_v31 = vadd.f32 %v3678_v40, %v3677_v28  ;;  %v3007_v58 = vld [vmem:[%s6157_s3 + $0x78] sm:$0xff] }
 0x931   :  { %v4144_v32 = vpop.eup %4143  ;;  %v3080_v17 = vadd.f32 1.0, %v4142_v24  ;;  %4157 = vpow2.f32 %v3391_v21 }
 0x932   :  { %v3204_v15 = vsel %vm5874_vm6, %v4138_v39, %v3148_v35  ;;  %v3149_v56 = vadd.f32 %v5858_v33, %v3129_v13  ;;  %v3020_v9 = vadd.f32 %v3004_v60, %v5973_v37  ;;  %v5987_v52 = vadd.f32 %v3679_v31, %v5785_v36 }
 0x933   :  { %v4146_v3 = vpop.eup %4145  ;;  %v3220_v10 = vsel %vm5887_vm7, %v5819_v46, %v3204_v15  ;;  %4159 = vrcp.f32 %v3080_v17 }
 0x934   :  { %v3237_v14 = vsel %vm3232_vm8, 0.0, %v3220_v10  ;;  %v3205_v12 = vsel %vm5874_vm6, %v4144_v32, %v3149_v56  ;;  %v3081_v11 = vadd.f32 1.0, %v4146_v3  ;;  %v3392_v42 = vmul.f32 -1.442695, %v3020_v9  ;;  %v3680_v47 = vpop.f32.mrb[124].mxu1 }
 0x935   :  { %v4148_v38 = vpop.eup %4147  ;;  %3253 = vst [vmem:[%s6158_s12 + $0x20] sm:$0xff] %v3237_v14  ;;  %v3221_v46 = vsel %vm5887_vm7, %v5826_v30, %v3205_v12  ;;  %4161 = vpow2.f32 %v3184_v63  ;;  %v3021_v45 = vadd.f32 %v3005_v0, %v5987_v52  ;;  %v3681_v22 = vpop.f32.mrb[125].mxu1  ;;  %v3190_v32 = vmul.f32 1.442695, %v5948_v50 }
 0x936   :  { %v4150_v18 = vpop.eup %4149  ;;  %v3238_v25 = vsel %vm3232_vm8, 0.0, %v3221_v46  ;;  %v3130_v26 = vmul.f32 %v4148_v38, %v5852_v4  ;;  %4163 = vrcp.f32 %v3081_v11  ;;  %v3682_v2 = vadd.f32 %v3681_v22, %v3680_v47  ;;  %v3683_v16 = vpop.f32.mrb[126].mxu1 }
 0x937   :  { %v4152_v48 = vpop.eup %4151  ;;  %3254 = vst [vmem:[%s6158_s12 + $0x28] sm:$0xff] %v3238_v25  ;;  %4165 = vpow2.f32 %v3392_v42  ;;  %v3393_v30 = vmul.f32 -1.442695, %v3021_v45  ;;  %v3684_v7 = vpop.f32.mrb[127].mxu1  ;;  %v3192_v47 = vmul.f32 1.442695, %v5973_v37 }
 0x938   :  { %v4154_v59 = vpop.eup %4153  ;;  %v3150_v51 = vadd.f32 %v5858_v33, %v3130_v26  ;;  %v3131_v43 = vmul.f32 %v4152_v48, %v5852_v4  ;;  %v6013_v44 = vadd.f32 %v3682_v2, %v5785_v36  ;;  %v3685_v1 = vadd.f32 %v3684_v7, %v3683_v16 }
 0x939   :  { %v4156_v8 = vpop.eup %4155  ;;  %v3082_v62 = vadd.f32 1.0, %v4154_v59  ;;  %4167 = vpow2.f32 %v3393_v30  ;;  %v3194_v22 = vmul.f32 1.442695, %v5987_v52 }
 0x93a   :  { %v3206_v19 = vsel %vm5874_vm6, %v4150_v18, %v3150_v51  ;;  %v3151_v39 = vadd.f32 %v5858_v33, %v3131_v43  ;;  %4169 = vpow2.f32 %v3186_v29  ;;  %v3022_v49 = vadd.f32 %v3006_v6, %v6013_v44 }
 0x93b   :  { %v4158_v55 = vpop.eup %4157  ;;  %v3222_v28 = vsel %vm5887_vm7, %v5838_v57, %v3206_v19  ;;  %4171 = vrcp.f32 %v3082_v62  ;;  %v6027_v54 = vadd.f32 %v3685_v1, %v5785_v36 }
 0x93c   :  { %v3239_v21 = vsel %vm3232_vm8, 0.0, %v3222_v28  ;;  %v3207_v60 = vsel %vm5874_vm6, %v4156_v8, %v3151_v39  ;;  %v3083_v40 = vadd.f32 1.0, %v4158_v55  ;;  %v3394_v24 = vmul.f32 -1.442695, %v3022_v49 }
 0x93d   :  { %v4160_v35 = vpop.eup %4159  ;;  %3255 = vst [vmem:[%s6158_s12 + $0x30] sm:$0xff] %v3239_v21  ;;  %v3223_v57 = vsel %vm5887_vm7, %v5847_v53, %v3207_v60  ;;  %4173 = vpow2.f32 %v3188_v41  ;;  %v3023_v36 = vadd.f32 %v3007_v58, %v6027_v54  ;;  %v3196_v8 = vmul.f32 1.442695, %v6013_v44 }
 0x93e   :  { %v3240_v13 = vsel %vm3232_vm8, 0.0, %v3223_v57  ;;  %v3132_v31 = vmul.f32 %v4160_v35, %v5852_v4  ;;  %4175 = vrcp.f32 %v3083_v40  ;;  %v3198_v19 = vmul.f32 1.442695, %v6027_v54 }
 0x93f   :  { %v4162_v17 = vpop.eup %4161  ;;  %3256 = vst [vmem:[%s6158_s12 + $0x38] sm:$0xff] %v3240_v13  ;;  %4177 = vpow2.f32 %v3394_v24  ;;  %v3395_v63 = vmul.f32 -1.442695, %v3023_v36 }
 0x940   :  { %v4164_v15 = vpop.eup %4163  ;;  %v3152_v53 = vadd.f32 %v5858_v33, %v3132_v31 }
 0x941   :  { %v4166_v56 = vpop.eup %4165  ;;  %v3133_v9 = vmul.f32 %v4164_v15, %v5852_v4  ;;  %4179 = vpow2.f32 %v3395_v63 }
 0x942   :  { %v3208_v0 = vsel %vm5874_vm6, %v4162_v17, %v3152_v53  ;;  %4181 = vpow2.f32 %v3190_v32  ;;  %v3084_v3 = vadd.f32 1.0, %v4166_v56 }
 0x943   :  { %v4168_v10 = vpop.eup %4167  ;;  %v3224_v14 = vsel %vm5887_vm7, %v5893_v34, %v3208_v0  ;;  %v3153_v12 = vadd.f32 %v5858_v33, %v3133_v9 }
 0x944   :  { %v4170_v11 = vpop.eup %4169  ;;  %v3241_v42 = vsel %vm3232_vm8, 0.0, %v3224_v14  ;;  %4183 = vrcp.f32 %v3084_v3  ;;  %v3085_v38 = vadd.f32 1.0, %v4168_v10 }
 0x945   :  { %v4172_v46 = vpop.eup %4171  ;;  %3257 = vst [vmem:[%s6158_s12 + $0x40] sm:$0xff] %v3241_v42  ;;  %v3209_v29 = vsel %vm5874_vm6, %v4170_v11, %v3153_v12 }
 0x946   :  { %v3225_v34 = vsel %vm5887_vm7, %v5908_v23, %v3209_v29  ;;  %v3134_v45 = vmul.f32 %v4172_v46, %v5852_v4  ;;  %4185 = vrcp.f32 %v3085_v38 }
 0x947   :  { %v4174_v18 = vpop.eup %4173  ;;  %v3242_v25 = vsel %vm3232_vm8, 0.0, %v3225_v34  ;;  %4187 = vpow2.f32 %v3192_v47 }
 0x948   :  { %v4176_v26 = vpop.eup %4175  ;;  %3258 = vst [vmem:[%s6158_s12 + $0x48] sm:$0xff] %v3242_v25  ;;  %v3154_v2 = vadd.f32 %v5858_v33, %v3134_v45  ;;  %4189 = vpow2.f32 %v3194_v22 }
 0x949   :  { %v4178_v16 = vpop.eup %4177  ;;  %v3135_v23 = vmul.f32 %v4176_v26, %v5852_v4 }
 0x94a   :  { %v3210_v48 = vsel %vm5874_vm6, %v4174_v18, %v3154_v2  ;;  %v3086_v30 = vadd.f32 1.0, %v4178_v16 }
 0x94b   :  { %v4180_v6 = vpop.eup %4179  ;;  %v3226_v7 = vsel %vm5887_vm7, %v5934_v61, %v3210_v48  ;;  %v3155_v59 = vadd.f32 %v5858_v33, %v3135_v23 }
 0x94c   :  { %v4182_v51 = vpop.eup %4181  ;;  %v3243_v43 = vsel %vm3232_vm8, 0.0, %v3226_v7  ;;  %4191 = vrcp.f32 %v3086_v30  ;;  %v3087_v62 = vadd.f32 1.0, %v4180_v6 }
 0x94d   :  { %3259 = vst [vmem:[%s6158_s12 + $0x50] sm:$0xff] %v3243_v43  ;;  %v3211_v41 = vsel %vm5874_vm6, %v4182_v51, %v3155_v59 }
 0x94e   :  { %v4184_v1 = vpop.eup %4183  ;;  %v3227_v61 = vsel %vm5887_vm7, %v5948_v50, %v3211_v41  ;;  %4193 = vrcp.f32 %v3087_v62 }
 0x94f   :  { %v3244_v39 = vsel %vm3232_vm8, 0.0, %v3227_v61  ;;  %v3136_v49 = vmul.f32 %v4184_v1, %v5852_v4  ;;  %4195 = vpow2.f32 %v3196_v8 }
 0x950   :  { %v4186_v58 = vpop.eup %4185  ;;  %3260 = vst [vmem:[%s6158_s12 + $0x58] sm:$0xff] %v3244_v39  ;;  %4197 = vpow2.f32 %v3198_v19 }
 0x951   :  { %v3156_v55 = vadd.f32 %v5858_v33, %v3136_v49  ;;  %v3137_v28 = vmul.f32 %v4186_v58, %v5852_v4  ;;  %v4188_v21 = vpop.eup %4187 }
 0x952   :  { %v4190_v40 = vpop.eup %4189 }
 0x953   :  { %v3212_v50 = vsel %vm5874_vm6, %v4188_v21, %v3156_v55  ;;  %v3157_v60 = vadd.f32 %v5858_v33, %v3137_v28 }
 0x954   :  { %v3228_v24 = vsel %vm5887_vm7, %v5973_v37, %v3212_v50 }
 0x955   :  { %v3245_v35 = vsel %vm3232_vm8, 0.0, %v3228_v24  ;;  %v3213_v57 = vsel %vm5874_vm6, %v4190_v40, %v3157_v60 }
 0x956   :  { %v4192_v36 = vpop.eup %4191  ;;  %3261 = vst [vmem:[%s6158_s12 + $0x60] sm:$0xff] %v3245_v35  ;;  %v3229_v13 = vsel %vm5887_vm7, %v5987_v52, %v3213_v57 }
 0x957   :  { %v3246_v31 = vsel %vm3232_vm8, 0.0, %v3229_v13  ;;  %v3138_v37 = vmul.f32 %v4192_v36, %v5852_v4 }
 0x958   :  { %v4194_v32 = vpop.eup %4193  ;;  %3262 = vst [vmem:[%s6158_s12 + $0x68] sm:$0xff] %v3246_v31 }
 0x959   :  { %v3158_v17 = vadd.f32 %v5858_v33, %v3138_v37  ;;  %v3139_v63 = vmul.f32 %v4194_v32, %v5852_v4  ;;  %v4196_v15 = vpop.eup %4195 }
 0x95a   :  { %v4198_v56 = vpop.eup %4197 }
 0x95b   :  { %v3214_v53 = vsel %vm5874_vm6, %v4196_v15, %v3158_v17  ;;  %v3159_v52 = vadd.f32 %v5858_v33, %v3139_v63 }
 0x95c   :  { %v3230_v9 = vsel %vm5887_vm7, %v6013_v44, %v3214_v53 }
 0x95d   :  { %v3247_v0 = vsel %vm3232_vm8, 0.0, %v3230_v9  ;;  %v3215_v3 = vsel %vm5874_vm6, %v4198_v56, %v3159_v52 }
 0x95e   :  { %3263 = vst [vmem:[%s6158_s12 + $0x70] sm:$0xff] %v3247_v0  ;;  %v3231_v4 = vsel %vm5887_vm7, %v6027_v54, %v3215_v3 }
 0x95f   :  { %v3248_v33 = vsel %vm3232_vm8, 0.0, %v3231_v4 }
 0x960   :  { %3264 = vst [vmem:[%s6158_s12 + $0x78] sm:$0xff] %v3248_v33 }

</bundles_post_ra>
